<compile_context>
chip_gen: v6e
topology: v6e:2x2x1
jax: 0.10.0
libtpu: 0.0.40
codegen_flags: <defaults>
</compile_context>

<pallas_src>
import functools

import jax
import jax.numpy as jnp
from jax import lax
from jax.experimental import pallas as pl
from jax.experimental.pallas import tpu as pltpu

_TAIL = 8          # extra zero lanes at the end of padded scratches / planes
_VMEM_LIMIT = 64 * 1024 * 1024


# --------------------------------------------------------------------------
# stride-2 (5x5) tap enumeration: taps grouped by (row parity, col parity)
# quarter-resolution plane;  kh = 2*qh + ph,  kw = 2*qw + pw.
# --------------------------------------------------------------------------
_PARITIES = ((0, 0), (0, 1), (1, 0), (1, 1))


def _s2_taps(K=5):
    taps = []
    for pidx, (ph, pw) in enumerate(_PARITIES):
        for qh in range(3):
            if 2 * qh + ph >= K:
                continue
            for qw in range(3):
                if 2 * qw + pw >= K:
                    continue
                taps.append((pidx, qh, qw, 2 * qh + ph, 2 * qw + pw))
    return tuple(taps)


_S2_TAPS = _s2_taps()          # 25 taps: 9 + 6 + 6 + 4


def _pick_rc(nrows, row_bytes, budget=4 * 1024 * 1024):
    """Largest divisor of `nrows` whose per-chunk working set fits `budget`."""
    for rc in range(nrows, 0, -1):
        if nrows % rc == 0 and rc * row_bytes <= budget:
            return rc
    return 1


# --------------------------------------------------------------------------
# Kernels
# --------------------------------------------------------------------------
def _fused_pair_kernel(x_ref, w1_ref, b1_ref, w2_ref, b2_ref, o_ref,
                       xp_scr, mid_scr, *, H, W, Wp, RC, relu2):
    """Two fused 3x3 / stride-1 convs (conv+BN+ReLU, conv+[BN+ReLU]) for one
    image.  x_ref/o_ref are flat-row (C, H*Wp) views; the intermediate lives
    only in `mid_scr` (VMEM)."""
    L = H * Wp
    RCL = RC * Wp
    cin = xp_scr.shape[0]
    c1 = mid_scr.shape[0]

    # Stage the input into a zero-rimmed padded scratch (in-VMEM padding).
    # Producers already zero the 2 garbage lanes per row, so this single flat
    # copy lands exactly on the padded-image layout.
    xp_scr[:, :Wp + 1] = jnp.zeros((cin, Wp + 1), xp_scr.dtype)
    xp_scr[:, Wp + 1 + L:] = jnp.zeros((cin, Wp - 1 + _TAIL), xp_scr.dtype)
    xp_scr[:, Wp + 1:Wp + 1 + L] = x_ref[...]
    mid_scr[:, :Wp + 1] = jnp.zeros((c1, Wp + 1), mid_scr.dtype)
    mid_scr[:, Wp + 1 + L:] = jnp.zeros((c1, Wp - 1 + _TAIL), mid_scr.dtype)

    # Column mask (zero the 2 garbage lanes per row) -- hoisted, chunk-invariant
    # because chunk bases are multiples of Wp.
    mask = (lax.broadcasted_iota(jnp.int32, (1, RCL), 1) % Wp) < W

    w1 = w1_ref[...]
    b1 = b1_ref[...]
    w2 = w2_ref[...]
    b2 = b2_ref[...]

    def conv(src, w, b, relu, emit):
        for j in range(H // RC):                      # short static chunk loop
            base = j * RCL
            pieces = [src[:, base + kh * Wp + kw: base + kh * Wp + kw + RCL]
                      for kh in range(3) for kw in range(3)]
            patch = jnp.concatenate(pieces, axis=0)   # (9*C, RC*Wp) bf16
            y = jnp.dot(w, patch, preferred_element_type=jnp.float32) + b
            if relu:
                y = jnp.maximum(y, 0.0)
            y = jnp.where(mask, y, 0.0)               # keep pad lanes at zero
            emit(base, y)

    def write_mid(base, y):
        mid_scr[:, Wp + 1 + base: Wp + 1 + base + RCL] = y.astype(mid_scr.dtype)

    def write_out(base, y):
        o_ref[:, base: base + RCL] = y.astype(o_ref.dtype)

    conv(xp_scr, w1, b1, True, write_mid)    # conv A (always ConvBnReLU)
    conv(mid_scr, w2, b2, relu2, write_out)  # conv B (ReLU off for `feature`)


def _s2_kernel(planes_ref, w_ref, b_ref, o_ref, *, Ho, Wo, PWp, RC):
    """5x5 / stride-2 ConvBnReLU for one image from 4 parity planes.
    planes_ref: (4, C, (Ho+2)*PWp + tail) flat padded planes."""
    RCL = RC * PWp
    w = w_ref[...]
    b = b_ref[...]
    mask = (lax.broadcasted_iota(jnp.int32, (1, RCL), 1) % PWp) < Wo

    for j in range(Ho // RC):
        base = j * RCL
        pieces = [planes_ref[pidx, :, base + qh * PWp + qw:
                             base + qh * PWp + qw + RCL]
                  for (pidx, qh, qw, _kh, _kw) in _S2_TAPS]
        patch = jnp.concatenate(pieces, axis=0)       # (25*C, RC*PWp) bf16
        y = jnp.dot(w, patch, preferred_element_type=jnp.float32) + b
        y = jnp.where(mask, jnp.maximum(y, 0.0), 0.0)
        o_ref[:, base: base + RCL] = y.astype(o_ref.dtype)


# --------------------------------------------------------------------------
# pallas_call wrappers
# --------------------------------------------------------------------------
def _fused_pair_call(x_flat, p1, p2, *, H, W, relu2, out_dtype):
    N, C_in, L = x_flat.shape
    Wp = W + 2
    assert L == H * Wp
    w1, b1 = p1["w"], p1["b"]
    w2, b2 = p2["w"], p2["b"]
    C1, C2 = w1.shape[0], w2.shape[0]
    assert w1.shape[1] == 9 * C_in and w2.shape[1] == 9 * C1

    row_bytes = 9 * max(C_in, C1) * Wp * 2 + max(C1, C2) * Wp * 4
    RC = _pick_rc(H, row_bytes)
    slen = (H + 2) * Wp + _TAIL

    kernel = functools.partial(_fused_pair_kernel, H=H, W=W, Wp=Wp, RC=RC,
                               relu2=relu2)
    return pl.pallas_call(
        kernel,
        out_shape=jax.ShapeDtypeStruct((N, C2, L), out_dtype),
        grid=(N,),
        in_specs=[pl.BlockSpec((None, C_in, L), lambda n: (n, 0, 0)),
                  pl.BlockSpec((C1, 9 * C_in), lambda n: (0, 0)),
                  pl.BlockSpec((C1, 1), lambda n: (0, 0)),
                  pl.BlockSpec((C2, 9 * C1), lambda n: (0, 0)),
                  pl.BlockSpec((C2, 1), lambda n: (0, 0))],
        out_specs=pl.BlockSpec((None, C2, L), lambda n: (n, 0, 0)),
        scratch_shapes=[pltpu.VMEM((C_in, slen), jnp.bfloat16),
                        pltpu.VMEM((C1, slen), jnp.bfloat16)],
        compiler_params=pltpu.CompilerParams(
            dimension_semantics=("parallel",),
            vmem_limit_bytes=_VMEM_LIMIT),
    )(x_flat, w1, b1, w2, b2)


def _conv_s2_call(planes, p, *, Ho, Wo, out_dtype):
    N, _four, C, Lp = planes.shape
    PWp = Wo + 2
    L = Ho * PWp
    w, b = p["w"], p["b"]
    Cout = w.shape[0]
    assert w.shape[1] == 25 * C
    assert Lp >= (Ho + 2) * PWp + 2

    row_bytes = 25 * C * PWp * 2 + Cout * PWp * 4
    RC = _pick_rc(Ho, row_bytes)

    kernel = functools.partial(_s2_kernel, Ho=Ho, Wo=Wo, PWp=PWp, RC=RC)
    return pl.pallas_call(
        kernel,
        out_shape=jax.ShapeDtypeStruct((N, Cout, L), out_dtype),
        grid=(N,),
        in_specs=[pl.BlockSpec((None, 4, C, Lp), lambda n: (n, 0, 0, 0)),
                  pl.BlockSpec((Cout, 25 * C), lambda n: (0, 0)),
                  pl.BlockSpec((Cout, 1), lambda n: (0, 0))],
        out_specs=pl.BlockSpec((None, Cout, L), lambda n: (n, 0, 0)),
        compiler_params=pltpu.CompilerParams(
            dimension_semantics=("parallel",),
            vmem_limit_bytes=_VMEM_LIMIT),
    )(planes, w, b)


# --------------------------------------------------------------------------
# Glue (XLA) -- input prep, parity-plane split for the stride-2 convs.
# --------------------------------------------------------------------------
def _prep_input(x):
    """(N, 3, H, W) f32 -> (N, 4, H*(W+2)) bf16 flat rows (zero lane pad)."""
    N, C, H, W = x.shape
    x = jnp.pad(x, ((0, 0), (0, 1), (0, 0), (0, 2)))   # Cin 3->4, W -> W+2
    return x.reshape(N, 4, H * (W + 2)).astype(jnp.bfloat16)


def _make_planes(x_flat, H, W):
    """Flat rows (N, C, H*(W+2)) -> 4 parity planes (N, 4, C, (H/2+2)*(W/2+2)+tail)."""
    N, C, _L = x_flat.shape
    Wp = W + 2
    x = x_flat.reshape(N, C, H, Wp)[..., :W]
    xpad = jnp.pad(x, ((0, 0), (0, 0), (2, 2), (2, 2)))
    planes = jnp.stack([xpad[:, :, ph::2, pw::2] for (ph, pw) in _PARITIES],
                       axis=1)                          # (N,4,C,H/2+2,W/2+2)
    Hp, PWp = H // 2 + 2, W // 2 + 2
    planes = planes.reshape(N, 4, C, Hp * PWp)
    return jnp.pad(planes, ((0, 0), (0, 0), (0, 0), (0, _TAIL)))


# --------------------------------------------------------------------------
# Parameters (deterministic synthetic; shapes match the PyTorch module).
# --------------------------------------------------------------------------
# (name, cin, cout, k, stride, has_bn_relu, cin_pad)
_LAYER_CFG = [
    ("conv0", 3, 8, 3, 1, True, 4),
    ("conv1", 8, 8, 3, 1, True, 8),
    ("conv2", 8, 16, 5, 2, True, 8),
    ("conv3", 16, 16, 3, 1, True, 16),
    ("conv4", 16, 16, 3, 1, True, 16),
    ("conv5", 16, 32, 5, 2, True, 16),
    ("conv6", 32, 32, 3, 1, True, 32),
    ("feature", 32, 32, 3, 1, False, 32),
]


def _pack_w_s1(w_eff, cin_pad):
    """(cout, cin, 3, 3) -> (cout, 9*cin_pad), column order (kh, kw, cin)."""
    cout, cin, K, _ = w_eff.shape
    if cin_pad > cin:
        w_eff = jnp.pad(w_eff, ((0, 0), (0, cin_pad - cin), (0, 0), (0, 0)))
    return jnp.transpose(w_eff, (0, 2, 3, 1)).reshape(cout, K * K * cin_pad)


def _pack_w_s2(w_eff):
    """(cout, cin, 5, 5) -> (cout, 25*cin), tap order = _S2_TAPS, cin minor."""
    cols = [w_eff[:, :, kh, kw] for (_p, _qh, _qw, kh, kw) in _S2_TAPS]
    return jnp.concatenate(cols, axis=1)


def init_featurenet_params(key):
    eps = 1e-5
    params, ref = {}, {}
    for (name, cin, cout, k, stride, bn, cin_pad) in _LAYER_CFG:
        key, kw, kg, kb, km, kv = jax.random.split(key, 6)
        fan_in = cin * k * k
        w = jax.random.normal(kw, (cout, cin, k, k), jnp.float32) / jnp.sqrt(fan_in)
        if bn:
            gamma = 1.0 + 0.1 * jax.random.normal(kg, (cout,), jnp.float32)
            beta = 0.1 * jax.random.normal(kb, (cout,), jnp.float32)
            mean = 0.1 * jax.random.normal(km, (cout,), jnp.float32)
            var = 0.5 + jax.random.uniform(kv, (cout,), jnp.float32)
            scale = gamma / jnp.sqrt(var + eps)          # eval-mode BN folded
            bias = beta - mean * scale
        else:                                            # plain conv with bias
            scale = jnp.ones((cout,), jnp.float32)
            bias = 0.1 * jax.random.normal(kb, (cout,), jnp.float32)
        w_eff = (w * scale[:, None, None, None]).astype(jnp.bfloat16)
        wm = _pack_w_s1(w_eff, cin_pad) if stride == 1 else _pack_w_s2(w_eff)
        params[name] = {"w": wm.astype(jnp.bfloat16),
                        "b": bias.reshape(cout, 1).astype(jnp.float32)}
        ref[name] = {"w": w_eff, "b": bias}
    return params, ref


# --------------------------------------------------------------------------
# Forward
# --------------------------------------------------------------------------
@jax.jit
def featurenet_forward(x, params):
    """FeatureNet.forward: (N, 3, H, W) f32 -> (N, 32, H/4, W/4) f32."""
    N, C, H, W = x.shape
    assert C == 3 and H % 4 == 0 and W % 4 == 0

    x0 = _prep_input(x)                                               # (N,4,H*(W+2))
    a = _fused_pair_call(x0, params["conv0"], params["conv1"],
                         H=H, W=W, relu2=True, out_dtype=jnp.bfloat16)
    p2 = _make_planes(a, H, W)
    b = _conv_s2_call(p2, params["conv2"], Ho=H // 2, Wo=W // 2,
                      out_dtype=jnp.bfloat16)
    c = _fused_pair_call(b, params["conv3"], params["conv4"],
                         H=H // 2, W=W // 2, relu2=True, out_dtype=jnp.bfloat16)
    p5 = _make_planes(c, H // 2, W // 2)
    d = _conv_s2_call(p5, params["conv5"], Ho=H // 4, Wo=W // 4,
                      out_dtype=jnp.bfloat16)
    e = _fused_pair_call(d, params["conv6"], params["feature"],
                         H=H // 4, W=W // 4, relu2=False, out_dtype=jnp.float32)
    Hf, Wf = H // 4, W // 4
    return e.reshape(N, 32, Hf, Wf + 2)[..., :Wf]


def featurenet_reference(x, ref):
    """Pure-JAX reference with the same quantization points (bf16 weights and
    inter-layer activations, f32 accumulation) as the Pallas pipeline."""
    order = [("conv0", 1, True), ("conv1", 1, True), ("conv2", 2, True),
             ("conv3", 1, True), ("conv4", 1, True), ("conv5", 2, True),
             ("conv6", 1, True), ("feature", 1, False)]
    y = x.astype(jnp.bfloat16)
    for name, stride, relu in order:
        w = ref[name]["w"].astype(jnp.float32)
        b = ref[name]["b"]
        k = w.shape[2]
        y32 = lax.conv_general_dilated(
            y.astype(jnp.float32), w, window_strides=(stride, stride),
            padding=[(k // 2, k // 2), (k // 2, k // 2)],
            dimension_numbers=("NCHW", "OIHW", "NCHW"),
            precision=lax.Precision.HIGHEST)
        y32 = y32 + b.reshape(1, -1, 1, 1)
        if relu:
            y32 = jnp.maximum(y32, 0.0)
        y = y32 if name == "feature" else y32.astype(jnp.bfloat16)
    return y


if __name__ == "__main__":
    key = jax.random.PRNGKey(0)
    kp, kx = jax.random.split(key)

    params, ref_params = init_featurenet_params(kp)
    x = jax.random.normal(kx, (2, 3, 16, 16), jnp.float32)    # NCHW like PyTorch

    out = featurenet_forward(x, params)
    out = jax.block_until_ready(out)

    assert out.shape == (2, 32, 4, 4), out.shape
    assert out.dtype == jnp.float32
    assert bool(jnp.all(jnp.isfinite(out)))

    ref = featurenet_reference(x, ref_params)
    assert bool(jnp.allclose(out, ref, rtol=1e-2, atol=1e-2))

    print("KERNEL_OK")
</pallas_src>

<mosaic_0001>
module attributes {stable_mosaic.version = 11 : i64} {
  func.func @_fused_pair_kernel(%arg0: i32, %arg1: memref<1x4x288xbf16, #tpu.memory_space<vmem>>, %arg2: memref<8x36xbf16, #tpu.memory_space<vmem>>, %arg3: memref<8x1xf32, #tpu.memory_space<vmem>>, %arg4: memref<8x72xbf16, #tpu.memory_space<vmem>>, %arg5: memref<8x1xf32, #tpu.memory_space<vmem>>, %arg6: memref<1x8x288xbf16, #tpu.memory_space<vmem>>, %arg7: memref<4x332xbf16, #tpu.memory_space<vmem>>, %arg8: memref<8x332xbf16, #tpu.memory_space<vmem>>) attributes {dimension_semantics = [#tpu.dimension_semantics<parallel>], iteration_bounds = array<i64: 2>, scalar_prefetch = 0 : i64, scratch_operands = 2 : i64, tpu.core_type = #tpu.core_type<tc>, window_params = [{transform_indices = @transform_0, window_bounds = array<i64: 1, 4, 288>}, {pipeline_mode = #tpu.pipeline_mode<synchronous>, transform_indices = @transform_1, window_bounds = array<i64: 8, 36>}, {pipeline_mode = #tpu.pipeline_mode<synchronous>, transform_indices = @transform_2, window_bounds = array<i64: 8, 1>}, {pipeline_mode = #tpu.pipeline_mode<synchronous>, transform_indices = @transform_3, window_bounds = array<i64: 8, 72>}, {pipeline_mode = #tpu.pipeline_mode<synchronous>, transform_indices = @transform_4, window_bounds = array<i64: 8, 1>}, {transform_indices = @transform_5, window_bounds = array<i64: 1, 8, 288>}]} {
    %cst = arith.constant 0.000000e+00 : bf16
    %0 = vector.broadcast %cst : bf16 to vector<4x19xbf16>
    %c0 = arith.constant 0 : index
    %c0_0 = arith.constant 0 : index
    %1 = vector.load %arg7[%c0, %c0_0] : memref<4x332xbf16, #tpu.memory_space<vmem>>, vector<4x19xbf16>
    tpu.vector_store %arg7[%c0, %c0_0], %0 {strides = array<i32>} : memref<4x332xbf16, #tpu.memory_space<vmem>>, vector<4x19xbf16>,
    %cst_1 = arith.constant 0.000000e+00 : bf16
    %2 = vector.broadcast %cst_1 : bf16 to vector<4x25xbf16>
    %c0_2 = arith.constant 0 : index
    %c307 = arith.constant 307 : index
    %3 = vector.load %arg7[%c0_2, %c307] : memref<4x332xbf16, #tpu.memory_space<vmem>>, vector<4x25xbf16>
    tpu.vector_store %arg7[%c0_2, %c307], %2 {strides = array<i32>} : memref<4x332xbf16, #tpu.memory_space<vmem>>, vector<4x25xbf16>,
    %c0_3 = arith.constant 0 : index
    %c0_4 = arith.constant 0 : index
    %c0_5 = arith.constant 0 : index
    %4 = vector.load %arg1[%c0_3, %c0_4, %c0_5] : memref<1x4x288xbf16, #tpu.memory_space<vmem>>, vector<1x4x288xbf16>
    %5 = vector.shape_cast %4 : vector<1x4x288xbf16> to vector<4x288xbf16>
    %c0_6 = arith.constant 0 : index
    %c19 = arith.constant 19 : index
    %6 = vector.load %arg7[%c0_6, %c19] : memref<4x332xbf16, #tpu.memory_space<vmem>>, vector<4x288xbf16>
    tpu.vector_store %arg7[%c0_6, %c19], %5 {strides = array<i32>} : memref<4x332xbf16, #tpu.memory_space<vmem>>, vector<4x288xbf16>,
    %cst_7 = arith.constant 0.000000e+00 : bf16
    %7 = vector.broadcast %cst_7 : bf16 to vector<8x19xbf16>
    %c0_8 = arith.constant 0 : index
    %c0_9 = arith.constant 0 : index
    %8 = vector.load %arg8[%c0_8, %c0_9] : memref<8x332xbf16, #tpu.memory_space<vmem>>, vector<8x19xbf16>
    tpu.vector_store %arg8[%c0_8, %c0_9], %7 {strides = array<i32>} : memref<8x332xbf16, #tpu.memory_space<vmem>>, vector<8x19xbf16>,
    %cst_10 = arith.constant 0.000000e+00 : bf16
    %9 = vector.broadcast %cst_10 : bf16 to vector<8x25xbf16>
    %c0_11 = arith.constant 0 : index
    %c307_12 = arith.constant 307 : index
    %10 = vector.load %arg8[%c0_11, %c307_12] : memref<8x332xbf16, #tpu.memory_space<vmem>>, vector<8x25xbf16>
    tpu.vector_store %arg8[%c0_11, %c307_12], %9 {strides = array<i32>} : memref<8x332xbf16, #tpu.memory_space<vmem>>, vector<8x25xbf16>,
    %11 = tpu.iota {dimensions = array<i32: 1>} : vector<1x288xi32>
    %c18_i32 = arith.constant 18 : i32
    %c0_i32 = arith.constant 0 : i32
    %12 = arith.cmpi eq, %c18_i32, %c0_i32 : i32
    %c1_i32 = arith.constant 1 : i32
    %13 = arith.select %12, %c1_i32, %c18_i32 : i32
    %14 = vector.broadcast %13 : i32 to vector<1x288xi32>
    %15 = arith.remsi %11, %14 : vector<1x288xi32>
    %c0_i32_13 = arith.constant 0 : i32
    %16 = vector.broadcast %c0_i32_13 : i32 to vector<1x288xi32>
    %17 = arith.cmpi ne, %15, %16 : vector<1x288xi32>
    %c0_i32_14 = arith.constant 0 : i32
    %18 = vector.broadcast %c0_i32_14 : i32 to vector<1x288xi32>
    %19 = arith.cmpi slt, %15, %18 : vector<1x288xi32>
    %c0_i32_15 = arith.constant 0 : i32
    %20 = arith.cmpi slt, %13, %c0_i32_15 : i32
    %21 = vector.broadcast %20 : i1 to vector<1x288xi1>
    %22 = vector.broadcast %21 : vector<1x288xi1> to vector<1x288xi1>
    %23 = arith.xori %19, %22 : vector<1x288xi1>
    %24 = arith.andi %23, %17 : vector<1x288xi1>
    %25 = vector.broadcast %13 : i32 to vector<1x288xi32>
    %26 = arith.addi %15, %25 : vector<1x288xi32>
    %27 = arith.select %24, %26, %15 : vector<1x288xi1>, vector<1x288xi32>
    %c16_i32 = arith.constant 16 : i32
    %28 = vector.broadcast %c16_i32 : i32 to vector<1x288xi32>
    %29 = arith.cmpi slt, %27, %28 : vector<1x288xi32>
    %c0_16 = arith.constant 0 : index
    %c0_17 = arith.constant 0 : index
    %30 = vector.load %arg2[%c0_16, %c0_17] : memref<8x36xbf16, #tpu.memory_space<vmem>>, vector<8x36xbf16>
    %c0_18 = arith.constant 0 : index
    %c0_19 = arith.constant 0 : index
    %31 = vector.load %arg3[%c0_18, %c0_19] : memref<8x1xf32, #tpu.memory_space<vmem>>, vector<8x1xf32>
    %c0_20 = arith.constant 0 : index
    %c0_21 = arith.constant 0 : index
    %32 = vector.load %arg4[%c0_20, %c0_21] : memref<8x72xbf16, #tpu.memory_space<vmem>>, vector<8x72xbf16>
    %c0_22 = arith.constant 0 : index
    %c0_23 = arith.constant 0 : index
    %33 = vector.load %arg5[%c0_22, %c0_23] : memref<8x1xf32, #tpu.memory_space<vmem>>, vector<8x1xf32>
    %c0_24 = arith.constant 0 : index
    %c0_25 = arith.constant 0 : index
    %34 = vector.load %arg7[%c0_24, %c0_25] : memref<4x332xbf16, #tpu.memory_space<vmem>>, vector<4x288xbf16>
    %c0_26 = arith.constant 0 : index
    %c1 = arith.constant 1 : index
    %35 = vector.load %arg7[%c0_26, %c1] : memref<4x332xbf16, #tpu.memory_space<vmem>>, vector<4x288xbf16>
    %c0_27 = arith.constant 0 : index
    %c2 = arith.constant 2 : index
    %36 = vector.load %arg7[%c0_27, %c2] : memref<4x332xbf16, #tpu.memory_space<vmem>>, vector<4x288xbf16>
    %c0_28 = arith.constant 0 : index
    %c18 = arith.constant 18 : index
    %37 = vector.load %arg7[%c0_28, %c18] : memref<4x332xbf16, #tpu.memory_space<vmem>>, vector<4x288xbf16>
    %c0_29 = arith.constant 0 : index
    %c19_30 = arith.constant 19 : index
    %38 = vector.load %arg7[%c0_29, %c19_30] : memref<4x332xbf16, #tpu.memory_space<vmem>>, vector<4x288xbf16>
    %c0_31 = arith.constant 0 : index
    %c20 = arith.constant 20 : index
    %39 = vector.load %arg7[%c0_31, %c20] : memref<4x332xbf16, #tpu.memory_space<vmem>>, vector<4x288xbf16>
    %c0_32 = arith.constant 0 : index
    %c36 = arith.constant 36 : index
    %40 = vector.load %arg7[%c0_32, %c36] : memref<4x332xbf16, #tpu.memory_space<vmem>>, vector<4x288xbf16>
    %c0_33 = arith.constant 0 : index
    %c37 = arith.constant 37 : index
    %41 = vector.load %arg7[%c0_33, %c37] : memref<4x332xbf16, #tpu.memory_space<vmem>>, vector<4x288xbf16>
    %c0_34 = arith.constant 0 : index
    %c38 = arith.constant 38 : index
    %42 = vector.load %arg7[%c0_34, %c38] : memref<4x332xbf16, #tpu.memory_space<vmem>>, vector<4x288xbf16>
    %43 = tpu.concatenate %34, %35, %36, %37, %38, %39, %40, %41, %42 in 0 : vector<4x288xbf16>, vector<4x288xbf16>, vector<4x288xbf16>, vector<4x288xbf16>, vector<4x288xbf16>, vector<4x288xbf16>, vector<4x288xbf16>, vector<4x288xbf16>, vector<4x288xbf16> -> vector<36x288xbf16>
    %cst_35 = arith.constant dense<0.000000e+00> : vector<8x288xf32>
    %44 = tpu.matmul %30, %43, %cst_35 {dimension_numbers = #tpu.dot_dimension_numbers<[1], [0], [0], [1], [0, 0, 1, 1], [], []>} : vector<8x36xbf16>, vector<36x288xbf16>, vector<8x288xf32> -> vector<8x288xf32>
    %45 = vector.broadcast %31 : vector<8x1xf32> to vector<8x288xf32>
    %46 = arith.addf %44, %45 : vector<8x288xf32>
    %cst_36 = arith.constant 0.000000e+00 : f32
    %47 = vector.broadcast %cst_36 : f32 to vector<8x288xf32>
    %48 = arith.maximumf %46, %47 : vector<8x288xf32>
    %cst_37 = arith.constant 0.000000e+00 : f32
    %49 = vector.shape_cast %29 : vector<1x288xi1> to vector<1x288xi1>
    %50 = vector.broadcast %49 : vector<1x288xi1> to vector<8x288xi1>
    %51 = vector.broadcast %cst_37 : f32 to vector<8x288xf32>
    %52 = arith.select %50, %48, %51 : vector<8x288xi1>, vector<8x288xf32>
    %53 = arith.truncf %52 : vector<8x288xf32> to vector<8x288xbf16>
    %c0_38 = arith.constant 0 : index
    %c19_39 = arith.constant 19 : index
    %54 = vector.load %arg8[%c0_38, %c19_39] : memref<8x332xbf16, #tpu.memory_space<vmem>>, vector<8x288xbf16>
    tpu.vector_store %arg8[%c0_38, %c19_39], %53 {strides = array<i32>} : memref<8x332xbf16, #tpu.memory_space<vmem>>, vector<8x288xbf16>,
    %c0_40 = arith.constant 0 : index
    %c0_41 = arith.constant 0 : index
    %55 = vector.load %arg8[%c0_40, %c0_41] : memref<8x332xbf16, #tpu.memory_space<vmem>>, vector<8x288xbf16>
    %c0_42 = arith.constant 0 : index
    %c1_43 = arith.constant 1 : index
    %56 = vector.load %arg8[%c0_42, %c1_43] : memref<8x332xbf16, #tpu.memory_space<vmem>>, vector<8x288xbf16>
    %c0_44 = arith.constant 0 : index
    %c2_45 = arith.constant 2 : index
    %57 = vector.load %arg8[%c0_44, %c2_45] : memref<8x332xbf16, #tpu.memory_space<vmem>>, vector<8x288xbf16>
    %c0_46 = arith.constant 0 : index
    %c18_47 = arith.constant 18 : index
    %58 = vector.load %arg8[%c0_46, %c18_47] : memref<8x332xbf16, #tpu.memory_space<vmem>>, vector<8x288xbf16>
    %c0_48 = arith.constant 0 : index
    %c19_49 = arith.constant 19 : index
    %59 = vector.load %arg8[%c0_48, %c19_49] : memref<8x332xbf16, #tpu.memory_space<vmem>>, vector<8x288xbf16>
    %c0_50 = arith.constant 0 : index
    %c20_51 = arith.constant 20 : index
    %60 = vector.load %arg8[%c0_50, %c20_51] : memref<8x332xbf16, #tpu.memory_space<vmem>>, vector<8x288xbf16>
    %c0_52 = arith.constant 0 : index
    %c36_53 = arith.constant 36 : index
    %61 = vector.load %arg8[%c0_52, %c36_53] : memref<8x332xbf16, #tpu.memory_space<vmem>>, vector<8x288xbf16>
    %c0_54 = arith.constant 0 : index
    %c37_55 = arith.constant 37 : index
    %62 = vector.load %arg8[%c0_54, %c37_55] : memref<8x332xbf16, #tpu.memory_space<vmem>>, vector<8x288xbf16>
    %c0_56 = arith.constant 0 : index
    %c38_57 = arith.constant 38 : index
    %63 = vector.load %arg8[%c0_56, %c38_57] : memref<8x332xbf16, #tpu.memory_space<vmem>>, vector<8x288xbf16>
    %64 = tpu.concatenate %55, %56, %57, %58, %59, %60, %61, %62, %63 in 0 : vector<8x288xbf16>, vector<8x288xbf16>, vector<8x288xbf16>, vector<8x288xbf16>, vector<8x288xbf16>, vector<8x288xbf16>, vector<8x288xbf16>, vector<8x288xbf16>, vector<8x288xbf16> -> vector<72x288xbf16>
    %cst_58 = arith.constant dense<0.000000e+00> : vector<8x288xf32>
    %65 = tpu.matmul %32, %64, %cst_58 {dimension_numbers = #tpu.dot_dimension_numbers<[1], [0], [0], [1], [0, 0, 1, 1], [], []>} : vector<8x72xbf16>, vector<72x288xbf16>, vector<8x288xf32> -> vector<8x288xf32>
    %66 = vector.broadcast %33 : vector<8x1xf32> to vector<8x288xf32>
    %67 = arith.addf %65, %66 : vector<8x288xf32>
    %cst_59 = arith.constant 0.000000e+00 : f32
    %68 = vector.broadcast %cst_59 : f32 to vector<8x288xf32>
    %69 = arith.maximumf %67, %68 : vector<8x288xf32>
    %cst_60 = arith.constant 0.000000e+00 : f32
    %70 = vector.shape_cast %29 : vector<1x288xi1> to vector<1x288xi1>
    %71 = vector.broadcast %70 : vector<1x288xi1> to vector<8x288xi1>
    %72 = vector.broadcast %cst_60 : f32 to vector<8x288xf32>
    %73 = arith.select %71, %69, %72 : vector<8x288xi1>, vector<8x288xf32>
    %74 = arith.truncf %73 : vector<8x288xf32> to vector<8x288xbf16>
    %c0_61 = arith.constant 0 : index
    %c0_62 = arith.constant 0 : index
    %c0_63 = arith.constant 0 : index
    %75 = vector.load %arg6[%c0_61, %c0_62, %c0_63] : memref<1x8x288xbf16, #tpu.memory_space<vmem>>, vector<1x8x288xbf16>
    %76 = vector.shape_cast %75 : vector<1x8x288xbf16> to vector<8x288xbf16>
    %77 = vector.shape_cast %74 : vector<8x288xbf16> to vector<1x8x288xbf16>
    tpu.vector_store %arg6[%c0_61, %c0_62, %c0_63], %77 {strides = array<i32>} : memref<1x8x288xbf16, #tpu.memory_space<vmem>>, vector<1x8x288xbf16>,
    return
  }
  func.func @transform_0(%arg0: i32) -> (i32, i32, i32) {
    %c0_i32 = arith.constant 0 : i32
    %c0_i32_0 = arith.constant 0 : i32
    %c0_i32_1 = arith.constant 0 : i32
    return %arg0, %c0_i32, %c0_i32_0 : i32, i32, i32
  }
  func.func @transform_1(%arg0: i32) -> (i32, i32) {
    %c0_i32 = arith.constant 0 : i32
    %c0_i32_0 = arith.constant 0 : i32
    %c0_i32_1 = arith.constant 0 : i32
    return %c0_i32, %c0_i32_0 : i32, i32
  }
  func.func @transform_2(%arg0: i32) -> (i32, i32) {
    %c0_i32 = arith.constant 0 : i32
    %c0_i32_0 = arith.constant 0 : i32
    %c0_i32_1 = arith.constant 0 : i32
    return %c0_i32, %c0_i32_0 : i32, i32
  }
  func.func @transform_3(%arg0: i32) -> (i32, i32) {
    %c0_i32 = arith.constant 0 : i32
    %c0_i32_0 = arith.constant 0 : i32
    %c0_i32_1 = arith.constant 0 : i32
    return %c0_i32, %c0_i32_0 : i32, i32
  }
  func.func @transform_4(%arg0: i32) -> (i32, i32) {
    %c0_i32 = arith.constant 0 : i32
    %c0_i32_0 = arith.constant 0 : i32
    %c0_i32_1 = arith.constant 0 : i32
    return %c0_i32, %c0_i32_0 : i32, i32
  }
  func.func @transform_5(%arg0: i32) -> (i32, i32, i32) {
    %c0_i32 = arith.constant 0 : i32
    %c0_i32_0 = arith.constant 0 : i32
    %c0_i32_1 = arith.constant 0 : i32
    return %arg0, %c0_i32, %c0_i32_0 : i32, i32, i32
  }
}

module attributes {stable_mosaic.version = 11 : i64} {
  func.func @_fused_pair_kernel(%arg0: i32, %arg1: memref<1x16x80xbf16, #tpu.memory_space<vmem>>, %arg2: memref<16x144xbf16, #tpu.memory_space<vmem>>, %arg3: memref<16x1xf32, #tpu.memory_space<vmem>>, %arg4: memref<16x144xbf16, #tpu.memory_space<vmem>>, %arg5: memref<16x1xf32, #tpu.memory_space<vmem>>, %arg6: memref<1x16x80xbf16, #tpu.memory_space<vmem>>, %arg7: memref<16x108xbf16, #tpu.memory_space<vmem>>, %arg8: memref<16x108xbf16, #tpu.memory_space<vmem>>) attributes {dimension_semantics = [#tpu.dimension_semantics<parallel>], iteration_bounds = array<i64: 2>, scalar_prefetch = 0 : i64, scratch_operands = 2 : i64, tpu.core_type = #tpu.core_type<tc>, window_params = [{transform_indices = @transform_0, window_bounds = array<i64: 1, 16, 80>}, {pipeline_mode = #tpu.pipeline_mode<synchronous>, transform_indices = @transform_1, window_bounds = array<i64: 16, 144>}, {pipeline_mode = #tpu.pipeline_mode<synchronous>, transform_indices = @transform_2, window_bounds = array<i64: 16, 1>}, {pipeline_mode = #tpu.pipeline_mode<synchronous>, transform_indices = @transform_3, window_bounds = array<i64: 16, 144>}, {pipeline_mode = #tpu.pipeline_mode<synchronous>, transform_indices = @transform_4, window_bounds = array<i64: 16, 1>}, {transform_indices = @transform_5, window_bounds = array<i64: 1, 16, 80>}]} {
    %cst = arith.constant 0.000000e+00 : bf16
    %0 = vector.broadcast %cst : bf16 to vector<16x11xbf16>
    %c0 = arith.constant 0 : index
    %c0_0 = arith.constant 0 : index
    %1 = vector.load %arg7[%c0, %c0_0] : memref<16x108xbf16, #tpu.memory_space<vmem>>, vector<16x11xbf16>
    tpu.vector_store %arg7[%c0, %c0_0], %0 {strides = array<i32>} : memref<16x108xbf16, #tpu.memory_space<vmem>>, vector<16x11xbf16>,
    %cst_1 = arith.constant 0.000000e+00 : bf16
    %2 = vector.broadcast %cst_1 : bf16 to vector<16x17xbf16>
    %c0_2 = arith.constant 0 : index
    %c91 = arith.constant 91 : index
    %3 = vector.load %arg7[%c0_2, %c91] : memref<16x108xbf16, #tpu.memory_space<vmem>>, vector<16x17xbf16>
    tpu.vector_store %arg7[%c0_2, %c91], %2 {strides = array<i32>} : memref<16x108xbf16, #tpu.memory_space<vmem>>, vector<16x17xbf16>,
    %c0_3 = arith.constant 0 : index
    %c0_4 = arith.constant 0 : index
    %c0_5 = arith.constant 0 : index
    %4 = vector.load %arg1[%c0_3, %c0_4, %c0_5] : memref<1x16x80xbf16, #tpu.memory_space<vmem>>, vector<1x16x80xbf16>
    %5 = vector.shape_cast %4 : vector<1x16x80xbf16> to vector<16x80xbf16>
    %c0_6 = arith.constant 0 : index
    %c11 = arith.constant 11 : index
    %6 = vector.load %arg7[%c0_6, %c11] : memref<16x108xbf16, #tpu.memory_space<vmem>>, vector<16x80xbf16>
    tpu.vector_store %arg7[%c0_6, %c11], %5 {strides = array<i32>} : memref<16x108xbf16, #tpu.memory_space<vmem>>, vector<16x80xbf16>,
    %cst_7 = arith.constant 0.000000e+00 : bf16
    %7 = vector.broadcast %cst_7 : bf16 to vector<16x11xbf16>
    %c0_8 = arith.constant 0 : index
    %c0_9 = arith.constant 0 : index
    %8 = vector.load %arg8[%c0_8, %c0_9] : memref<16x108xbf16, #tpu.memory_space<vmem>>, vector<16x11xbf16>
    tpu.vector_store %arg8[%c0_8, %c0_9], %7 {strides = array<i32>} : memref<16x108xbf16, #tpu.memory_space<vmem>>, vector<16x11xbf16>,
    %cst_10 = arith.constant 0.000000e+00 : bf16
    %9 = vector.broadcast %cst_10 : bf16 to vector<16x17xbf16>
    %c0_11 = arith.constant 0 : index
    %c91_12 = arith.constant 91 : index
    %10 = vector.load %arg8[%c0_11, %c91_12] : memref<16x108xbf16, #tpu.memory_space<vmem>>, vector<16x17xbf16>
    tpu.vector_store %arg8[%c0_11, %c91_12], %9 {strides = array<i32>} : memref<16x108xbf16, #tpu.memory_space<vmem>>, vector<16x17xbf16>,
    %11 = tpu.iota {dimensions = array<i32: 1>} : vector<1x80xi32>
    %c10_i32 = arith.constant 10 : i32
    %c0_i32 = arith.constant 0 : i32
    %12 = arith.cmpi eq, %c10_i32, %c0_i32 : i32
    %c1_i32 = arith.constant 1 : i32
    %13 = arith.select %12, %c1_i32, %c10_i32 : i32
    %14 = vector.broadcast %13 : i32 to vector<1x80xi32>
    %15 = arith.remsi %11, %14 : vector<1x80xi32>
    %c0_i32_13 = arith.constant 0 : i32
    %16 = vector.broadcast %c0_i32_13 : i32 to vector<1x80xi32>
    %17 = arith.cmpi ne, %15, %16 : vector<1x80xi32>
    %c0_i32_14 = arith.constant 0 : i32
    %18 = vector.broadcast %c0_i32_14 : i32 to vector<1x80xi32>
    %19 = arith.cmpi slt, %15, %18 : vector<1x80xi32>
    %c0_i32_15 = arith.constant 0 : i32
    %20 = arith.cmpi slt, %13, %c0_i32_15 : i32
    %21 = vector.broadcast %20 : i1 to vector<1x80xi1>
    %22 = vector.broadcast %21 : vector<1x80xi1> to vector<1x80xi1>
    %23 = arith.xori %19, %22 : vector<1x80xi1>
    %24 = arith.andi %23, %17 : vector<1x80xi1>
    %25 = vector.broadcast %13 : i32 to vector<1x80xi32>
    %26 = arith.addi %15, %25 : vector<1x80xi32>
    %27 = arith.select %24, %26, %15 : vector<1x80xi1>, vector<1x80xi32>
    %c8_i32 = arith.constant 8 : i32
    %28 = vector.broadcast %c8_i32 : i32 to vector<1x80xi32>
    %29 = arith.cmpi slt, %27, %28 : vector<1x80xi32>
    %c0_16 = arith.constant 0 : index
    %c0_17 = arith.constant 0 : index
    %30 = vector.load %arg2[%c0_16, %c0_17] : memref<16x144xbf16, #tpu.memory_space<vmem>>, vector<16x144xbf16>
    %c0_18 = arith.constant 0 : index
    %c0_19 = arith.constant 0 : index
    %31 = vector.load %arg3[%c0_18, %c0_19] : memref<16x1xf32, #tpu.memory_space<vmem>>, vector<16x1xf32>
    %c0_20 = arith.constant 0 : index
    %c0_21 = arith.constant 0 : index
    %32 = vector.load %arg4[%c0_20, %c0_21] : memref<16x144xbf16, #tpu.memory_space<vmem>>, vector<16x144xbf16>
    %c0_22 = arith.constant 0 : index
    %c0_23 = arith.constant 0 : index
    %33 = vector.load %arg5[%c0_22, %c0_23] : memref<16x1xf32, #tpu.memory_space<vmem>>, vector<16x1xf32>
    %c0_24 = arith.constant 0 : index
    %c0_25 = arith.constant 0 : index
    %34 = vector.load %arg7[%c0_24, %c0_25] : memref<16x108xbf16, #tpu.memory_space<vmem>>, vector<16x80xbf16>
    %c0_26 = arith.constant 0 : index
    %c1 = arith.constant 1 : index
    %35 = vector.load %arg7[%c0_26, %c1] : memref<16x108xbf16, #tpu.memory_space<vmem>>, vector<16x80xbf16>
    %c0_27 = arith.constant 0 : index
    %c2 = arith.constant 2 : index
    %36 = vector.load %arg7[%c0_27, %c2] : memref<16x108xbf16, #tpu.memory_space<vmem>>, vector<16x80xbf16>
    %c0_28 = arith.constant 0 : index
    %c10 = arith.constant 10 : index
    %37 = vector.load %arg7[%c0_28, %c10] : memref<16x108xbf16, #tpu.memory_space<vmem>>, vector<16x80xbf16>
    %c0_29 = arith.constant 0 : index
    %c11_30 = arith.constant 11 : index
    %38 = vector.load %arg7[%c0_29, %c11_30] : memref<16x108xbf16, #tpu.memory_space<vmem>>, vector<16x80xbf16>
    %c0_31 = arith.constant 0 : index
    %c12 = arith.constant 12 : index
    %39 = vector.load %arg7[%c0_31, %c12] : memref<16x108xbf16, #tpu.memory_space<vmem>>, vector<16x80xbf16>
    %c0_32 = arith.constant 0 : index
    %c20 = arith.constant 20 : index
    %40 = vector.load %arg7[%c0_32, %c20] : memref<16x108xbf16, #tpu.memory_space<vmem>>, vector<16x80xbf16>
    %c0_33 = arith.constant 0 : index
    %c21 = arith.constant 21 : index
    %41 = vector.load %arg7[%c0_33, %c21] : memref<16x108xbf16, #tpu.memory_space<vmem>>, vector<16x80xbf16>
    %c0_34 = arith.constant 0 : index
    %c22 = arith.constant 22 : index
    %42 = vector.load %arg7[%c0_34, %c22] : memref<16x108xbf16, #tpu.memory_space<vmem>>, vector<16x80xbf16>
    %43 = tpu.concatenate %34, %35, %36, %37, %38, %39, %40, %41, %42 in 0 : vector<16x80xbf16>, vector<16x80xbf16>, vector<16x80xbf16>, vector<16x80xbf16>, vector<16x80xbf16>, vector<16x80xbf16>, vector<16x80xbf16>, vector<16x80xbf16>, vector<16x80xbf16> -> vector<144x80xbf16>
    %cst_35 = arith.constant dense<0.000000e+00> : vector<16x80xf32>
    %44 = tpu.matmul %30, %43, %cst_35 {dimension_numbers = #tpu.dot_dimension_numbers<[1], [0], [0], [1], [0, 0, 1, 1], [], []>} : vector<16x144xbf16>, vector<144x80xbf16>, vector<16x80xf32> -> vector<16x80xf32>
    %45 = vector.broadcast %31 : vector<16x1xf32> to vector<16x80xf32>
    %46 = arith.addf %44, %45 : vector<16x80xf32>
    %cst_36 = arith.constant 0.000000e+00 : f32
    %47 = vector.broadcast %cst_36 : f32 to vector<16x80xf32>
    %48 = arith.maximumf %46, %47 : vector<16x80xf32>
    %cst_37 = arith.constant 0.000000e+00 : f32
    %49 = vector.shape_cast %29 : vector<1x80xi1> to vector<1x80xi1>
    %50 = vector.broadcast %49 : vector<1x80xi1> to vector<16x80xi1>
    %51 = vector.broadcast %cst_37 : f32 to vector<16x80xf32>
    %52 = arith.select %50, %48, %51 : vector<16x80xi1>, vector<16x80xf32>
    %53 = arith.truncf %52 : vector<16x80xf32> to vector<16x80xbf16>
    %c0_38 = arith.constant 0 : index
    %c11_39 = arith.constant 11 : index
    %54 = vector.load %arg8[%c0_38, %c11_39] : memref<16x108xbf16, #tpu.memory_space<vmem>>, vector<16x80xbf16>
    tpu.vector_store %arg8[%c0_38, %c11_39], %53 {strides = array<i32>} : memref<16x108xbf16, #tpu.memory_space<vmem>>, vector<16x80xbf16>,
    %c0_40 = arith.constant 0 : index
    %c0_41 = arith.constant 0 : index
    %55 = vector.load %arg8[%c0_40, %c0_41] : memref<16x108xbf16, #tpu.memory_space<vmem>>, vector<16x80xbf16>
    %c0_42 = arith.constant 0 : index
    %c1_43 = arith.constant 1 : index
    %56 = vector.load %arg8[%c0_42, %c1_43] : memref<16x108xbf16, #tpu.memory_space<vmem>>, vector<16x80xbf16>
    %c0_44 = arith.constant 0 : index
    %c2_45 = arith.constant 2 : index
    %57 = vector.load %arg8[%c0_44, %c2_45] : memref<16x108xbf16, #tpu.memory_space<vmem>>, vector<16x80xbf16>
    %c0_46 = arith.constant 0 : index
    %c10_47 = arith.constant 10 : index
    %58 = vector.load %arg8[%c0_46, %c10_47] : memref<16x108xbf16, #tpu.memory_space<vmem>>, vector<16x80xbf16>
    %c0_48 = arith.constant 0 : index
    %c11_49 = arith.constant 11 : index
    %59 = vector.load %arg8[%c0_48, %c11_49] : memref<16x108xbf16, #tpu.memory_space<vmem>>, vector<16x80xbf16>
    %c0_50 = arith.constant 0 : index
    %c12_51 = arith.constant 12 : index
    %60 = vector.load %arg8[%c0_50, %c12_51] : memref<16x108xbf16, #tpu.memory_space<vmem>>, vector<16x80xbf16>
    %c0_52 = arith.constant 0 : index
    %c20_53 = arith.constant 20 : index
    %61 = vector.load %arg8[%c0_52, %c20_53] : memref<16x108xbf16, #tpu.memory_space<vmem>>, vector<16x80xbf16>
    %c0_54 = arith.constant 0 : index
    %c21_55 = arith.constant 21 : index
    %62 = vector.load %arg8[%c0_54, %c21_55] : memref<16x108xbf16, #tpu.memory_space<vmem>>, vector<16x80xbf16>
    %c0_56 = arith.constant 0 : index
    %c22_57 = arith.constant 22 : index
    %63 = vector.load %arg8[%c0_56, %c22_57] : memref<16x108xbf16, #tpu.memory_space<vmem>>, vector<16x80xbf16>
    %64 = tpu.concatenate %55, %56, %57, %58, %59, %60, %61, %62, %63 in 0 : vector<16x80xbf16>, vector<16x80xbf16>, vector<16x80xbf16>, vector<16x80xbf16>, vector<16x80xbf16>, vector<16x80xbf16>, vector<16x80xbf16>, vector<16x80xbf16>, vector<16x80xbf16> -> vector<144x80xbf16>
    %cst_58 = arith.constant dense<0.000000e+00> : vector<16x80xf32>
    %65 = tpu.matmul %32, %64, %cst_58 {dimension_numbers = #tpu.dot_dimension_numbers<[1], [0], [0], [1], [0, 0, 1, 1], [], []>} : vector<16x144xbf16>, vector<144x80xbf16>, vector<16x80xf32> -> vector<16x80xf32>
    %66 = vector.broadcast %33 : vector<16x1xf32> to vector<16x80xf32>
    %67 = arith.addf %65, %66 : vector<16x80xf32>
    %cst_59 = arith.constant 0.000000e+00 : f32
    %68 = vector.broadcast %cst_59 : f32 to vector<16x80xf32>
    %69 = arith.maximumf %67, %68 : vector<16x80xf32>
    %cst_60 = arith.constant 0.000000e+00 : f32
    %70 = vector.shape_cast %29 : vector<1x80xi1> to vector<1x80xi1>
    %71 = vector.broadcast %70 : vector<1x80xi1> to vector<16x80xi1>
    %72 = vector.broadcast %cst_60 : f32 to vector<16x80xf32>
    %73 = arith.select %71, %69, %72 : vector<16x80xi1>, vector<16x80xf32>
    %74 = arith.truncf %73 : vector<16x80xf32> to vector<16x80xbf16>
    %c0_61 = arith.constant 0 : index
    %c0_62 = arith.constant 0 : index
    %c0_63 = arith.constant 0 : index
    %75 = vector.load %arg6[%c0_61, %c0_62, %c0_63] : memref<1x16x80xbf16, #tpu.memory_space<vmem>>, vector<1x16x80xbf16>
    %76 = vector.shape_cast %75 : vector<1x16x80xbf16> to vector<16x80xbf16>
    %77 = vector.shape_cast %74 : vector<16x80xbf16> to vector<1x16x80xbf16>
    tpu.vector_store %arg6[%c0_61, %c0_62, %c0_63], %77 {strides = array<i32>} : memref<1x16x80xbf16, #tpu.memory_space<vmem>>, vector<1x16x80xbf16>,
    return
  }
  func.func @transform_0(%arg0: i32) -> (i32, i32, i32) {
    %c0_i32 = arith.constant 0 : i32
    %c0_i32_0 = arith.constant 0 : i32
    %c0_i32_1 = arith.constant 0 : i32
    return %arg0, %c0_i32, %c0_i32_0 : i32, i32, i32
  }
  func.func @transform_1(%arg0: i32) -> (i32, i32) {
    %c0_i32 = arith.constant 0 : i32
    %c0_i32_0 = arith.constant 0 : i32
    %c0_i32_1 = arith.constant 0 : i32
    return %c0_i32, %c0_i32_0 : i32, i32
  }
  func.func @transform_2(%arg0: i32) -> (i32, i32) {
    %c0_i32 = arith.constant 0 : i32
    %c0_i32_0 = arith.constant 0 : i32
    %c0_i32_1 = arith.constant 0 : i32
    return %c0_i32, %c0_i32_0 : i32, i32
  }
  func.func @transform_3(%arg0: i32) -> (i32, i32) {
    %c0_i32 = arith.constant 0 : i32
    %c0_i32_0 = arith.constant 0 : i32
    %c0_i32_1 = arith.constant 0 : i32
    return %c0_i32, %c0_i32_0 : i32, i32
  }
  func.func @transform_4(%arg0: i32) -> (i32, i32) {
    %c0_i32 = arith.constant 0 : i32
    %c0_i32_0 = arith.constant 0 : i32
    %c0_i32_1 = arith.constant 0 : i32
    return %c0_i32, %c0_i32_0 : i32, i32
  }
  func.func @transform_5(%arg0: i32) -> (i32, i32, i32) {
    %c0_i32 = arith.constant 0 : i32
    %c0_i32_0 = arith.constant 0 : i32
    %c0_i32_1 = arith.constant 0 : i32
    return %arg0, %c0_i32, %c0_i32_0 : i32, i32, i32
  }
}

module attributes {stable_mosaic.version = 11 : i64} {
  func.func @_s2_kernel(%arg0: i32, %arg1: memref<1x4x8x108xbf16, #tpu.memory_space<vmem>>, %arg2: memref<16x200xbf16, #tpu.memory_space<vmem>>, %arg3: memref<16x1xf32, #tpu.memory_space<vmem>>, %arg4: memref<1x16x80xbf16, #tpu.memory_space<vmem>>) attributes {dimension_semantics = [#tpu.dimension_semantics<parallel>], iteration_bounds = array<i64: 2>, scalar_prefetch = 0 : i64, scratch_operands = 0 : i64, tpu.core_type = #tpu.core_type<tc>, window_params = [{transform_indices = @transform_0, window_bounds = array<i64: 1, 4, 8, 108>}, {pipeline_mode = #tpu.pipeline_mode<synchronous>, transform_indices = @transform_1, window_bounds = array<i64: 16, 200>}, {pipeline_mode = #tpu.pipeline_mode<synchronous>, transform_indices = @transform_2, window_bounds = array<i64: 16, 1>}, {transform_indices = @transform_3, window_bounds = array<i64: 1, 16, 80>}]} {
    %c0 = arith.constant 0 : index
    %c0_0 = arith.constant 0 : index
    %0 = vector.load %arg2[%c0, %c0_0] : memref<16x200xbf16, #tpu.memory_space<vmem>>, vector<16x200xbf16>
    %c0_1 = arith.constant 0 : index
    %c0_2 = arith.constant 0 : index
    %1 = vector.load %arg3[%c0_1, %c0_2] : memref<16x1xf32, #tpu.memory_space<vmem>>, vector<16x1xf32>
    %2 = tpu.iota {dimensions = array<i32: 1>} : vector<1x80xi32>
    %c10_i32 = arith.constant 10 : i32
    %c0_i32 = arith.constant 0 : i32
    %3 = arith.cmpi eq, %c10_i32, %c0_i32 : i32
    %c1_i32 = arith.constant 1 : i32
    %4 = arith.select %3, %c1_i32, %c10_i32 : i32
    %5 = vector.broadcast %4 : i32 to vector<1x80xi32>
    %6 = arith.remsi %2, %5 : vector<1x80xi32>
    %c0_i32_3 = arith.constant 0 : i32
    %7 = vector.broadcast %c0_i32_3 : i32 to vector<1x80xi32>
    %8 = arith.cmpi ne, %6, %7 : vector<1x80xi32>
    %c0_i32_4 = arith.constant 0 : i32
    %9 = vector.broadcast %c0_i32_4 : i32 to vector<1x80xi32>
    %10 = arith.cmpi slt, %6, %9 : vector<1x80xi32>
    %c0_i32_5 = arith.constant 0 : i32
    %11 = arith.cmpi slt, %4, %c0_i32_5 : i32
    %12 = vector.broadcast %11 : i1 to vector<1x80xi1>
    %13 = vector.broadcast %12 : vector<1x80xi1> to vector<1x80xi1>
    %14 = arith.xori %10, %13 : vector<1x80xi1>
    %15 = arith.andi %14, %8 : vector<1x80xi1>
    %16 = vector.broadcast %4 : i32 to vector<1x80xi32>
    %17 = arith.addi %6, %16 : vector<1x80xi32>
    %18 = arith.select %15, %17, %6 : vector<1x80xi1>, vector<1x80xi32>
    %c8_i32 = arith.constant 8 : i32
    %19 = vector.broadcast %c8_i32 : i32 to vector<1x80xi32>
    %20 = arith.cmpi slt, %18, %19 : vector<1x80xi32>
    %c0_6 = arith.constant 0 : index
    %c0_7 = arith.constant 0 : index
    %c0_8 = arith.constant 0 : index
    %c0_9 = arith.constant 0 : index
    %21 = vector.load %arg1[%c0_6, %c0_7, %c0_8, %c0_9] : memref<1x4x8x108xbf16, #tpu.memory_space<vmem>>, vector<1x1x8x80xbf16>
    %22 = vector.shape_cast %21 : vector<1x1x8x80xbf16> to vector<8x80xbf16>
    %c0_10 = arith.constant 0 : index
    %c0_11 = arith.constant 0 : index
    %c0_12 = arith.constant 0 : index
    %c1 = arith.constant 1 : index
    %23 = vector.load %arg1[%c0_10, %c0_11, %c0_12, %c1] : memref<1x4x8x108xbf16, #tpu.memory_space<vmem>>, vector<1x1x8x80xbf16>
    %24 = vector.shape_cast %23 : vector<1x1x8x80xbf16> to vector<8x80xbf16>
    %c0_13 = arith.constant 0 : index
    %c0_14 = arith.constant 0 : index
    %c0_15 = arith.constant 0 : index
    %c2 = arith.constant 2 : index
    %25 = vector.load %arg1[%c0_13, %c0_14, %c0_15, %c2] : memref<1x4x8x108xbf16, #tpu.memory_space<vmem>>, vector<1x1x8x80xbf16>
    %26 = vector.shape_cast %25 : vector<1x1x8x80xbf16> to vector<8x80xbf16>
    %c0_16 = arith.constant 0 : index
    %c0_17 = arith.constant 0 : index
    %c0_18 = arith.constant 0 : index
    %c10 = arith.constant 10 : index
    %27 = vector.load %arg1[%c0_16, %c0_17, %c0_18, %c10] : memref<1x4x8x108xbf16, #tpu.memory_space<vmem>>, vector<1x1x8x80xbf16>
    %28 = vector.shape_cast %27 : vector<1x1x8x80xbf16> to vector<8x80xbf16>
    %c0_19 = arith.constant 0 : index
    %c0_20 = arith.constant 0 : index
    %c0_21 = arith.constant 0 : index
    %c11 = arith.constant 11 : index
    %29 = vector.load %arg1[%c0_19, %c0_20, %c0_21, %c11] : memref<1x4x8x108xbf16, #tpu.memory_space<vmem>>, vector<1x1x8x80xbf16>
    %30 = vector.shape_cast %29 : vector<1x1x8x80xbf16> to vector<8x80xbf16>
    %c0_22 = arith.constant 0 : index
    %c0_23 = arith.constant 0 : index
    %c0_24 = arith.constant 0 : index
    %c12 = arith.constant 12 : index
    %31 = vector.load %arg1[%c0_22, %c0_23, %c0_24, %c12] : memref<1x4x8x108xbf16, #tpu.memory_space<vmem>>, vector<1x1x8x80xbf16>
    %32 = vector.shape_cast %31 : vector<1x1x8x80xbf16> to vector<8x80xbf16>
    %c0_25 = arith.constant 0 : index
    %c0_26 = arith.constant 0 : index
    %c0_27 = arith.constant 0 : index
    %c20 = arith.constant 20 : index
    %33 = vector.load %arg1[%c0_25, %c0_26, %c0_27, %c20] : memref<1x4x8x108xbf16, #tpu.memory_space<vmem>>, vector<1x1x8x80xbf16>
    %34 = vector.shape_cast %33 : vector<1x1x8x80xbf16> to vector<8x80xbf16>
    %c0_28 = arith.constant 0 : index
    %c0_29 = arith.constant 0 : index
    %c0_30 = arith.constant 0 : index
    %c21 = arith.constant 21 : index
    %35 = vector.load %arg1[%c0_28, %c0_29, %c0_30, %c21] : memref<1x4x8x108xbf16, #tpu.memory_space<vmem>>, vector<1x1x8x80xbf16>
    %36 = vector.shape_cast %35 : vector<1x1x8x80xbf16> to vector<8x80xbf16>
    %c0_31 = arith.constant 0 : index
    %c0_32 = arith.constant 0 : index
    %c0_33 = arith.constant 0 : index
    %c22 = arith.constant 22 : index
    %37 = vector.load %arg1[%c0_31, %c0_32, %c0_33, %c22] : memref<1x4x8x108xbf16, #tpu.memory_space<vmem>>, vector<1x1x8x80xbf16>
    %38 = vector.shape_cast %37 : vector<1x1x8x80xbf16> to vector<8x80xbf16>
    %c0_34 = arith.constant 0 : index
    %c1_35 = arith.constant 1 : index
    %c0_36 = arith.constant 0 : index
    %c0_37 = arith.constant 0 : index
    %39 = vector.load %arg1[%c0_34, %c1_35, %c0_36, %c0_37] : memref<1x4x8x108xbf16, #tpu.memory_space<vmem>>, vector<1x1x8x80xbf16>
    %40 = vector.shape_cast %39 : vector<1x1x8x80xbf16> to vector<8x80xbf16>
    %c0_38 = arith.constant 0 : index
    %c1_39 = arith.constant 1 : index
    %c0_40 = arith.constant 0 : index
    %c1_41 = arith.constant 1 : index
    %41 = vector.load %arg1[%c0_38, %c1_39, %c0_40, %c1_41] : memref<1x4x8x108xbf16, #tpu.memory_space<vmem>>, vector<1x1x8x80xbf16>
    %42 = vector.shape_cast %41 : vector<1x1x8x80xbf16> to vector<8x80xbf16>
    %c0_42 = arith.constant 0 : index
    %c1_43 = arith.constant 1 : index
    %c0_44 = arith.constant 0 : index
    %c10_45 = arith.constant 10 : index
    %43 = vector.load %arg1[%c0_42, %c1_43, %c0_44, %c10_45] : memref<1x4x8x108xbf16, #tpu.memory_space<vmem>>, vector<1x1x8x80xbf16>
    %44 = vector.shape_cast %43 : vector<1x1x8x80xbf16> to vector<8x80xbf16>
    %c0_46 = arith.constant 0 : index
    %c1_47 = arith.constant 1 : index
    %c0_48 = arith.constant 0 : index
    %c11_49 = arith.constant 11 : index
    %45 = vector.load %arg1[%c0_46, %c1_47, %c0_48, %c11_49] : memref<1x4x8x108xbf16, #tpu.memory_space<vmem>>, vector<1x1x8x80xbf16>
    %46 = vector.shape_cast %45 : vector<1x1x8x80xbf16> to vector<8x80xbf16>
    %c0_50 = arith.constant 0 : index
    %c1_51 = arith.constant 1 : index
    %c0_52 = arith.constant 0 : index
    %c20_53 = arith.constant 20 : index
    %47 = vector.load %arg1[%c0_50, %c1_51, %c0_52, %c20_53] : memref<1x4x8x108xbf16, #tpu.memory_space<vmem>>, vector<1x1x8x80xbf16>
    %48 = vector.shape_cast %47 : vector<1x1x8x80xbf16> to vector<8x80xbf16>
    %c0_54 = arith.constant 0 : index
    %c1_55 = arith.constant 1 : index
    %c0_56 = arith.constant 0 : index
    %c21_57 = arith.constant 21 : index
    %49 = vector.load %arg1[%c0_54, %c1_55, %c0_56, %c21_57] : memref<1x4x8x108xbf16, #tpu.memory_space<vmem>>, vector<1x1x8x80xbf16>
    %50 = vector.shape_cast %49 : vector<1x1x8x80xbf16> to vector<8x80xbf16>
    %c0_58 = arith.constant 0 : index
    %c2_59 = arith.constant 2 : index
    %c0_60 = arith.constant 0 : index
    %c0_61 = arith.constant 0 : index
    %51 = vector.load %arg1[%c0_58, %c2_59, %c0_60, %c0_61] : memref<1x4x8x108xbf16, #tpu.memory_space<vmem>>, vector<1x1x8x80xbf16>
    %52 = vector.shape_cast %51 : vector<1x1x8x80xbf16> to vector<8x80xbf16>
    %c0_62 = arith.constant 0 : index
    %c2_63 = arith.constant 2 : index
    %c0_64 = arith.constant 0 : index
    %c1_65 = arith.constant 1 : index
    %53 = vector.load %arg1[%c0_62, %c2_63, %c0_64, %c1_65] : memref<1x4x8x108xbf16, #tpu.memory_space<vmem>>, vector<1x1x8x80xbf16>
    %54 = vector.shape_cast %53 : vector<1x1x8x80xbf16> to vector<8x80xbf16>
    %c0_66 = arith.constant 0 : index
    %c2_67 = arith.constant 2 : index
    %c0_68 = arith.constant 0 : index
    %c2_69 = arith.constant 2 : index
    %55 = vector.load %arg1[%c0_66, %c2_67, %c0_68, %c2_69] : memref<1x4x8x108xbf16, #tpu.memory_space<vmem>>, vector<1x1x8x80xbf16>
    %56 = vector.shape_cast %55 : vector<1x1x8x80xbf16> to vector<8x80xbf16>
    %c0_70 = arith.constant 0 : index
    %c2_71 = arith.constant 2 : index
    %c0_72 = arith.constant 0 : index
    %c10_73 = arith.constant 10 : index
    %57 = vector.load %arg1[%c0_70, %c2_71, %c0_72, %c10_73] : memref<1x4x8x108xbf16, #tpu.memory_space<vmem>>, vector<1x1x8x80xbf16>
    %58 = vector.shape_cast %57 : vector<1x1x8x80xbf16> to vector<8x80xbf16>
    %c0_74 = arith.constant 0 : index
    %c2_75 = arith.constant 2 : index
    %c0_76 = arith.constant 0 : index
    %c11_77 = arith.constant 11 : index
    %59 = vector.load %arg1[%c0_74, %c2_75, %c0_76, %c11_77] : memref<1x4x8x108xbf16, #tpu.memory_space<vmem>>, vector<1x1x8x80xbf16>
    %60 = vector.shape_cast %59 : vector<1x1x8x80xbf16> to vector<8x80xbf16>
    %c0_78 = arith.constant 0 : index
    %c2_79 = arith.constant 2 : index
    %c0_80 = arith.constant 0 : index
    %c12_81 = arith.constant 12 : index
    %61 = vector.load %arg1[%c0_78, %c2_79, %c0_80, %c12_81] : memref<1x4x8x108xbf16, #tpu.memory_space<vmem>>, vector<1x1x8x80xbf16>
    %62 = vector.shape_cast %61 : vector<1x1x8x80xbf16> to vector<8x80xbf16>
    %c0_82 = arith.constant 0 : index
    %c3 = arith.constant 3 : index
    %c0_83 = arith.constant 0 : index
    %c0_84 = arith.constant 0 : index
    %63 = vector.load %arg1[%c0_82, %c3, %c0_83, %c0_84] : memref<1x4x8x108xbf16, #tpu.memory_space<vmem>>, vector<1x1x8x80xbf16>
    %64 = vector.shape_cast %63 : vector<1x1x8x80xbf16> to vector<8x80xbf16>
    %c0_85 = arith.constant 0 : index
    %c3_86 = arith.constant 3 : index
    %c0_87 = arith.constant 0 : index
    %c1_88 = arith.constant 1 : index
    %65 = vector.load %arg1[%c0_85, %c3_86, %c0_87, %c1_88] : memref<1x4x8x108xbf16, #tpu.memory_space<vmem>>, vector<1x1x8x80xbf16>
    %66 = vector.shape_cast %65 : vector<1x1x8x80xbf16> to vector<8x80xbf16>
    %c0_89 = arith.constant 0 : index
    %c3_90 = arith.constant 3 : index
    %c0_91 = arith.constant 0 : index
    %c10_92 = arith.constant 10 : index
    %67 = vector.load %arg1[%c0_89, %c3_90, %c0_91, %c10_92] : memref<1x4x8x108xbf16, #tpu.memory_space<vmem>>, vector<1x1x8x80xbf16>
    %68 = vector.shape_cast %67 : vector<1x1x8x80xbf16> to vector<8x80xbf16>
    %c0_93 = arith.constant 0 : index
    %c3_94 = arith.constant 3 : index
    %c0_95 = arith.constant 0 : index
    %c11_96 = arith.constant 11 : index
    %69 = vector.load %arg1[%c0_93, %c3_94, %c0_95, %c11_96] : memref<1x4x8x108xbf16, #tpu.memory_space<vmem>>, vector<1x1x8x80xbf16>
    %70 = vector.shape_cast %69 : vector<1x1x8x80xbf16> to vector<8x80xbf16>
    %71 = tpu.concatenate %22, %24, %26, %28, %30, %32, %34, %36, %38, %40, %42, %44, %46, %48, %50, %52 in 0 : vector<8x80xbf16>, vector<8x80xbf16>, vector<8x80xbf16>, vector<8x80xbf16>, vector<8x80xbf16>, vector<8x80xbf16>, vector<8x80xbf16>, vector<8x80xbf16>, vector<8x80xbf16>, vector<8x80xbf16>, vector<8x80xbf16>, vector<8x80xbf16>, vector<8x80xbf16>, vector<8x80xbf16>, vector<8x80xbf16>, vector<8x80xbf16> -> vector<128x80xbf16>
    %72 = tpu.concatenate %54, %56, %58, %60, %62, %64, %66, %68, %70 in 0 : vector<8x80xbf16>, vector<8x80xbf16>, vector<8x80xbf16>, vector<8x80xbf16>, vector<8x80xbf16>, vector<8x80xbf16>, vector<8x80xbf16>, vector<8x80xbf16>, vector<8x80xbf16> -> vector<72x80xbf16>
    %73 = tpu.concatenate %71, %72 in 0 : vector<128x80xbf16>, vector<72x80xbf16> -> vector<200x80xbf16>
    %cst = arith.constant dense<0.000000e+00> : vector<16x80xf32>
    %74 = tpu.matmul %0, %73, %cst {dimension_numbers = #tpu.dot_dimension_numbers<[1], [0], [0], [1], [0, 0, 1, 1], [], []>} : vector<16x200xbf16>, vector<200x80xbf16>, vector<16x80xf32> -> vector<16x80xf32>
    %75 = vector.broadcast %1 : vector<16x1xf32> to vector<16x80xf32>
    %76 = arith.addf %74, %75 : vector<16x80xf32>
    %cst_97 = arith.constant 0.000000e+00 : f32
    %77 = vector.broadcast %cst_97 : f32 to vector<16x80xf32>
    %78 = arith.maximumf %76, %77 : vector<16x80xf32>
    %cst_98 = arith.constant 0.000000e+00 : f32
    %79 = vector.shape_cast %20 : vector<1x80xi1> to vector<1x80xi1>
    %80 = vector.broadcast %79 : vector<1x80xi1> to vector<16x80xi1>
    %81 = vector.broadcast %cst_98 : f32 to vector<16x80xf32>
    %82 = arith.select %80, %78, %81 : vector<16x80xi1>, vector<16x80xf32>
    %83 = arith.truncf %82 : vector<16x80xf32> to vector<16x80xbf16>
    %c0_99 = arith.constant 0 : index
    %c0_100 = arith.constant 0 : index
    %c0_101 = arith.constant 0 : index
    %84 = vector.load %arg4[%c0_99, %c0_100, %c0_101] : memref<1x16x80xbf16, #tpu.memory_space<vmem>>, vector<1x16x80xbf16>
    %85 = vector.shape_cast %84 : vector<1x16x80xbf16> to vector<16x80xbf16>
    %86 = vector.shape_cast %83 : vector<16x80xbf16> to vector<1x16x80xbf16>
    tpu.vector_store %arg4[%c0_99, %c0_100, %c0_101], %86 {strides = array<i32>} : memref<1x16x80xbf16, #tpu.memory_space<vmem>>, vector<1x16x80xbf16>,
    return
  }
  func.func @transform_0(%arg0: i32) -> (i32, i32, i32, i32) {
    %c0_i32 = arith.constant 0 : i32
    %c0_i32_0 = arith.constant 0 : i32
    %c0_i32_1 = arith.constant 0 : i32
    %c0_i32_2 = arith.constant 0 : i32
    return %arg0, %c0_i32, %c0_i32_0, %c0_i32_1 : i32, i32, i32, i32
  }
  func.func @transform_1(%arg0: i32) -> (i32, i32) {
    %c0_i32 = arith.constant 0 : i32
    %c0_i32_0 = arith.constant 0 : i32
    %c0_i32_1 = arith.constant 0 : i32
    return %c0_i32, %c0_i32_0 : i32, i32
  }
  func.func @transform_2(%arg0: i32) -> (i32, i32) {
    %c0_i32 = arith.constant 0 : i32
    %c0_i32_0 = arith.constant 0 : i32
    %c0_i32_1 = arith.constant 0 : i32
    return %c0_i32, %c0_i32_0 : i32, i32
  }
  func.func @transform_3(%arg0: i32) -> (i32, i32, i32) {
    %c0_i32 = arith.constant 0 : i32
    %c0_i32_0 = arith.constant 0 : i32
    %c0_i32_1 = arith.constant 0 : i32
    return %arg0, %c0_i32, %c0_i32_0 : i32, i32, i32
  }
}

module attributes {stable_mosaic.version = 11 : i64} {
  func.func @_s2_kernel(%arg0: i32, %arg1: memref<1x4x16x44xbf16, #tpu.memory_space<vmem>>, %arg2: memref<32x400xbf16, #tpu.memory_space<vmem>>, %arg3: memref<32x1xf32, #tpu.memory_space<vmem>>, %arg4: memref<1x32x24xbf16, #tpu.memory_space<vmem>>) attributes {dimension_semantics = [#tpu.dimension_semantics<parallel>], iteration_bounds = array<i64: 2>, scalar_prefetch = 0 : i64, scratch_operands = 0 : i64, tpu.core_type = #tpu.core_type<tc>, window_params = [{transform_indices = @transform_0, window_bounds = array<i64: 1, 4, 16, 44>}, {pipeline_mode = #tpu.pipeline_mode<synchronous>, transform_indices = @transform_1, window_bounds = array<i64: 32, 400>}, {pipeline_mode = #tpu.pipeline_mode<synchronous>, transform_indices = @transform_2, window_bounds = array<i64: 32, 1>}, {transform_indices = @transform_3, window_bounds = array<i64: 1, 32, 24>}]} {
    %c0 = arith.constant 0 : index
    %c0_0 = arith.constant 0 : index
    %0 = vector.load %arg2[%c0, %c0_0] : memref<32x400xbf16, #tpu.memory_space<vmem>>, vector<32x400xbf16>
    %c0_1 = arith.constant 0 : index
    %c0_2 = arith.constant 0 : index
    %1 = vector.load %arg3[%c0_1, %c0_2] : memref<32x1xf32, #tpu.memory_space<vmem>>, vector<32x1xf32>
    %2 = tpu.iota {dimensions = array<i32: 1>} : vector<1x24xi32>
    %c6_i32 = arith.constant 6 : i32
    %c0_i32 = arith.constant 0 : i32
    %3 = arith.cmpi eq, %c6_i32, %c0_i32 : i32
    %c1_i32 = arith.constant 1 : i32
    %4 = arith.select %3, %c1_i32, %c6_i32 : i32
    %5 = vector.broadcast %4 : i32 to vector<1x24xi32>
    %6 = arith.remsi %2, %5 : vector<1x24xi32>
    %c0_i32_3 = arith.constant 0 : i32
    %7 = vector.broadcast %c0_i32_3 : i32 to vector<1x24xi32>
    %8 = arith.cmpi ne, %6, %7 : vector<1x24xi32>
    %c0_i32_4 = arith.constant 0 : i32
    %9 = vector.broadcast %c0_i32_4 : i32 to vector<1x24xi32>
    %10 = arith.cmpi slt, %6, %9 : vector<1x24xi32>
    %c0_i32_5 = arith.constant 0 : i32
    %11 = arith.cmpi slt, %4, %c0_i32_5 : i32
    %12 = vector.broadcast %11 : i1 to vector<1x24xi1>
    %13 = vector.broadcast %12 : vector<1x24xi1> to vector<1x24xi1>
    %14 = arith.xori %10, %13 : vector<1x24xi1>
    %15 = arith.andi %14, %8 : vector<1x24xi1>
    %16 = vector.broadcast %4 : i32 to vector<1x24xi32>
    %17 = arith.addi %6, %16 : vector<1x24xi32>
    %18 = arith.select %15, %17, %6 : vector<1x24xi1>, vector<1x24xi32>
    %c4_i32 = arith.constant 4 : i32
    %19 = vector.broadcast %c4_i32 : i32 to vector<1x24xi32>
    %20 = arith.cmpi slt, %18, %19 : vector<1x24xi32>
    %c0_6 = arith.constant 0 : index
    %c0_7 = arith.constant 0 : index
    %c0_8 = arith.constant 0 : index
    %c0_9 = arith.constant 0 : index
    %21 = vector.load %arg1[%c0_6, %c0_7, %c0_8, %c0_9] : memref<1x4x16x44xbf16, #tpu.memory_space<vmem>>, vector<1x1x16x24xbf16>
    %22 = vector.shape_cast %21 : vector<1x1x16x24xbf16> to vector<16x24xbf16>
    %c0_10 = arith.constant 0 : index
    %c0_11 = arith.constant 0 : index
    %c0_12 = arith.constant 0 : index
    %c1 = arith.constant 1 : index
    %23 = vector.load %arg1[%c0_10, %c0_11, %c0_12, %c1] : memref<1x4x16x44xbf16, #tpu.memory_space<vmem>>, vector<1x1x16x24xbf16>
    %24 = vector.shape_cast %23 : vector<1x1x16x24xbf16> to vector<16x24xbf16>
    %c0_13 = arith.constant 0 : index
    %c0_14 = arith.constant 0 : index
    %c0_15 = arith.constant 0 : index
    %c2 = arith.constant 2 : index
    %25 = vector.load %arg1[%c0_13, %c0_14, %c0_15, %c2] : memref<1x4x16x44xbf16, #tpu.memory_space<vmem>>, vector<1x1x16x24xbf16>
    %26 = vector.shape_cast %25 : vector<1x1x16x24xbf16> to vector<16x24xbf16>
    %c0_16 = arith.constant 0 : index
    %c0_17 = arith.constant 0 : index
    %c0_18 = arith.constant 0 : index
    %c6 = arith.constant 6 : index
    %27 = vector.load %arg1[%c0_16, %c0_17, %c0_18, %c6] : memref<1x4x16x44xbf16, #tpu.memory_space<vmem>>, vector<1x1x16x24xbf16>
    %28 = vector.shape_cast %27 : vector<1x1x16x24xbf16> to vector<16x24xbf16>
    %c0_19 = arith.constant 0 : index
    %c0_20 = arith.constant 0 : index
    %c0_21 = arith.constant 0 : index
    %c7 = arith.constant 7 : index
    %29 = vector.load %arg1[%c0_19, %c0_20, %c0_21, %c7] : memref<1x4x16x44xbf16, #tpu.memory_space<vmem>>, vector<1x1x16x24xbf16>
    %30 = vector.shape_cast %29 : vector<1x1x16x24xbf16> to vector<16x24xbf16>
    %c0_22 = arith.constant 0 : index
    %c0_23 = arith.constant 0 : index
    %c0_24 = arith.constant 0 : index
    %c8 = arith.constant 8 : index
    %31 = vector.load %arg1[%c0_22, %c0_23, %c0_24, %c8] : memref<1x4x16x44xbf16, #tpu.memory_space<vmem>>, vector<1x1x16x24xbf16>
    %32 = vector.shape_cast %31 : vector<1x1x16x24xbf16> to vector<16x24xbf16>
    %c0_25 = arith.constant 0 : index
    %c0_26 = arith.constant 0 : index
    %c0_27 = arith.constant 0 : index
    %c12 = arith.constant 12 : index
    %33 = vector.load %arg1[%c0_25, %c0_26, %c0_27, %c12] : memref<1x4x16x44xbf16, #tpu.memory_space<vmem>>, vector<1x1x16x24xbf16>
    %34 = vector.shape_cast %33 : vector<1x1x16x24xbf16> to vector<16x24xbf16>
    %c0_28 = arith.constant 0 : index
    %c0_29 = arith.constant 0 : index
    %c0_30 = arith.constant 0 : index
    %c13 = arith.constant 13 : index
    %35 = vector.load %arg1[%c0_28, %c0_29, %c0_30, %c13] : memref<1x4x16x44xbf16, #tpu.memory_space<vmem>>, vector<1x1x16x24xbf16>
    %36 = vector.shape_cast %35 : vector<1x1x16x24xbf16> to vector<16x24xbf16>
    %c0_31 = arith.constant 0 : index
    %c0_32 = arith.constant 0 : index
    %c0_33 = arith.constant 0 : index
    %c14 = arith.constant 14 : index
    %37 = vector.load %arg1[%c0_31, %c0_32, %c0_33, %c14] : memref<1x4x16x44xbf16, #tpu.memory_space<vmem>>, vector<1x1x16x24xbf16>
    %38 = vector.shape_cast %37 : vector<1x1x16x24xbf16> to vector<16x24xbf16>
    %c0_34 = arith.constant 0 : index
    %c1_35 = arith.constant 1 : index
    %c0_36 = arith.constant 0 : index
    %c0_37 = arith.constant 0 : index
    %39 = vector.load %arg1[%c0_34, %c1_35, %c0_36, %c0_37] : memref<1x4x16x44xbf16, #tpu.memory_space<vmem>>, vector<1x1x16x24xbf16>
    %40 = vector.shape_cast %39 : vector<1x1x16x24xbf16> to vector<16x24xbf16>
    %c0_38 = arith.constant 0 : index
    %c1_39 = arith.constant 1 : index
    %c0_40 = arith.constant 0 : index
    %c1_41 = arith.constant 1 : index
    %41 = vector.load %arg1[%c0_38, %c1_39, %c0_40, %c1_41] : memref<1x4x16x44xbf16, #tpu.memory_space<vmem>>, vector<1x1x16x24xbf16>
    %42 = vector.shape_cast %41 : vector<1x1x16x24xbf16> to vector<16x24xbf16>
    %c0_42 = arith.constant 0 : index
    %c1_43 = arith.constant 1 : index
    %c0_44 = arith.constant 0 : index
    %c6_45 = arith.constant 6 : index
    %43 = vector.load %arg1[%c0_42, %c1_43, %c0_44, %c6_45] : memref<1x4x16x44xbf16, #tpu.memory_space<vmem>>, vector<1x1x16x24xbf16>
    %44 = vector.shape_cast %43 : vector<1x1x16x24xbf16> to vector<16x24xbf16>
    %c0_46 = arith.constant 0 : index
    %c1_47 = arith.constant 1 : index
    %c0_48 = arith.constant 0 : index
    %c7_49 = arith.constant 7 : index
    %45 = vector.load %arg1[%c0_46, %c1_47, %c0_48, %c7_49] : memref<1x4x16x44xbf16, #tpu.memory_space<vmem>>, vector<1x1x16x24xbf16>
    %46 = vector.shape_cast %45 : vector<1x1x16x24xbf16> to vector<16x24xbf16>
    %c0_50 = arith.constant 0 : index
    %c1_51 = arith.constant 1 : index
    %c0_52 = arith.constant 0 : index
    %c12_53 = arith.constant 12 : index
    %47 = vector.load %arg1[%c0_50, %c1_51, %c0_52, %c12_53] : memref<1x4x16x44xbf16, #tpu.memory_space<vmem>>, vector<1x1x16x24xbf16>
    %48 = vector.shape_cast %47 : vector<1x1x16x24xbf16> to vector<16x24xbf16>
    %c0_54 = arith.constant 0 : index
    %c1_55 = arith.constant 1 : index
    %c0_56 = arith.constant 0 : index
    %c13_57 = arith.constant 13 : index
    %49 = vector.load %arg1[%c0_54, %c1_55, %c0_56, %c13_57] : memref<1x4x16x44xbf16, #tpu.memory_space<vmem>>, vector<1x1x16x24xbf16>
    %50 = vector.shape_cast %49 : vector<1x1x16x24xbf16> to vector<16x24xbf16>
    %c0_58 = arith.constant 0 : index
    %c2_59 = arith.constant 2 : index
    %c0_60 = arith.constant 0 : index
    %c0_61 = arith.constant 0 : index
    %51 = vector.load %arg1[%c0_58, %c2_59, %c0_60, %c0_61] : memref<1x4x16x44xbf16, #tpu.memory_space<vmem>>, vector<1x1x16x24xbf16>
    %52 = vector.shape_cast %51 : vector<1x1x16x24xbf16> to vector<16x24xbf16>
    %c0_62 = arith.constant 0 : index
    %c2_63 = arith.constant 2 : index
    %c0_64 = arith.constant 0 : index
    %c1_65 = arith.constant 1 : index
    %53 = vector.load %arg1[%c0_62, %c2_63, %c0_64, %c1_65] : memref<1x4x16x44xbf16, #tpu.memory_space<vmem>>, vector<1x1x16x24xbf16>
    %54 = vector.shape_cast %53 : vector<1x1x16x24xbf16> to vector<16x24xbf16>
    %c0_66 = arith.constant 0 : index
    %c2_67 = arith.constant 2 : index
    %c0_68 = arith.constant 0 : index
    %c2_69 = arith.constant 2 : index
    %55 = vector.load %arg1[%c0_66, %c2_67, %c0_68, %c2_69] : memref<1x4x16x44xbf16, #tpu.memory_space<vmem>>, vector<1x1x16x24xbf16>
    %56 = vector.shape_cast %55 : vector<1x1x16x24xbf16> to vector<16x24xbf16>
    %c0_70 = arith.constant 0 : index
    %c2_71 = arith.constant 2 : index
    %c0_72 = arith.constant 0 : index
    %c6_73 = arith.constant 6 : index
    %57 = vector.load %arg1[%c0_70, %c2_71, %c0_72, %c6_73] : memref<1x4x16x44xbf16, #tpu.memory_space<vmem>>, vector<1x1x16x24xbf16>
    %58 = vector.shape_cast %57 : vector<1x1x16x24xbf16> to vector<16x24xbf16>
    %c0_74 = arith.constant 0 : index
    %c2_75 = arith.constant 2 : index
    %c0_76 = arith.constant 0 : index
    %c7_77 = arith.constant 7 : index
    %59 = vector.load %arg1[%c0_74, %c2_75, %c0_76, %c7_77] : memref<1x4x16x44xbf16, #tpu.memory_space<vmem>>, vector<1x1x16x24xbf16>
    %60 = vector.shape_cast %59 : vector<1x1x16x24xbf16> to vector<16x24xbf16>
    %c0_78 = arith.constant 0 : index
    %c2_79 = arith.constant 2 : index
    %c0_80 = arith.constant 0 : index
    %c8_81 = arith.constant 8 : index
    %61 = vector.load %arg1[%c0_78, %c2_79, %c0_80, %c8_81] : memref<1x4x16x44xbf16, #tpu.memory_space<vmem>>, vector<1x1x16x24xbf16>
    %62 = vector.shape_cast %61 : vector<1x1x16x24xbf16> to vector<16x24xbf16>
    %c0_82 = arith.constant 0 : index
    %c3 = arith.constant 3 : index
    %c0_83 = arith.constant 0 : index
    %c0_84 = arith.constant 0 : index
    %63 = vector.load %arg1[%c0_82, %c3, %c0_83, %c0_84] : memref<1x4x16x44xbf16, #tpu.memory_space<vmem>>, vector<1x1x16x24xbf16>
    %64 = vector.shape_cast %63 : vector<1x1x16x24xbf16> to vector<16x24xbf16>
    %c0_85 = arith.constant 0 : index
    %c3_86 = arith.constant 3 : index
    %c0_87 = arith.constant 0 : index
    %c1_88 = arith.constant 1 : index
    %65 = vector.load %arg1[%c0_85, %c3_86, %c0_87, %c1_88] : memref<1x4x16x44xbf16, #tpu.memory_space<vmem>>, vector<1x1x16x24xbf16>
    %66 = vector.shape_cast %65 : vector<1x1x16x24xbf16> to vector<16x24xbf16>
    %c0_89 = arith.constant 0 : index
    %c3_90 = arith.constant 3 : index
    %c0_91 = arith.constant 0 : index
    %c6_92 = arith.constant 6 : index
    %67 = vector.load %arg1[%c0_89, %c3_90, %c0_91, %c6_92] : memref<1x4x16x44xbf16, #tpu.memory_space<vmem>>, vector<1x1x16x24xbf16>
    %68 = vector.shape_cast %67 : vector<1x1x16x24xbf16> to vector<16x24xbf16>
    %c0_93 = arith.constant 0 : index
    %c3_94 = arith.constant 3 : index
    %c0_95 = arith.constant 0 : index
    %c7_96 = arith.constant 7 : index
    %69 = vector.load %arg1[%c0_93, %c3_94, %c0_95, %c7_96] : memref<1x4x16x44xbf16, #tpu.memory_space<vmem>>, vector<1x1x16x24xbf16>
    %70 = vector.shape_cast %69 : vector<1x1x16x24xbf16> to vector<16x24xbf16>
    %71 = tpu.concatenate %22, %24, %26, %28, %30, %32, %34, %36, %38, %40, %42, %44, %46, %48, %50, %52 in 0 : vector<16x24xbf16>, vector<16x24xbf16>, vector<16x24xbf16>, vector<16x24xbf16>, vector<16x24xbf16>, vector<16x24xbf16>, vector<16x24xbf16>, vector<16x24xbf16>, vector<16x24xbf16>, vector<16x24xbf16>, vector<16x24xbf16>, vector<16x24xbf16>, vector<16x24xbf16>, vector<16x24xbf16>, vector<16x24xbf16>, vector<16x24xbf16> -> vector<256x24xbf16>
    %72 = tpu.concatenate %54, %56, %58, %60, %62, %64, %66, %68, %70 in 0 : vector<16x24xbf16>, vector<16x24xbf16>, vector<16x24xbf16>, vector<16x24xbf16>, vector<16x24xbf16>, vector<16x24xbf16>, vector<16x24xbf16>, vector<16x24xbf16>, vector<16x24xbf16> -> vector<144x24xbf16>
    %73 = tpu.concatenate %71, %72 in 0 : vector<256x24xbf16>, vector<144x24xbf16> -> vector<400x24xbf16>
    %cst = arith.constant dense<0.000000e+00> : vector<32x24xf32>
    %74 = tpu.matmul %0, %73, %cst {dimension_numbers = #tpu.dot_dimension_numbers<[1], [0], [0], [1], [0, 0, 1, 1], [], []>} : vector<32x400xbf16>, vector<400x24xbf16>, vector<32x24xf32> -> vector<32x24xf32>
    %75 = vector.broadcast %1 : vector<32x1xf32> to vector<32x24xf32>
    %76 = arith.addf %74, %75 : vector<32x24xf32>
    %cst_97 = arith.constant 0.000000e+00 : f32
    %77 = vector.broadcast %cst_97 : f32 to vector<32x24xf32>
    %78 = arith.maximumf %76, %77 : vector<32x24xf32>
    %cst_98 = arith.constant 0.000000e+00 : f32
    %79 = vector.shape_cast %20 : vector<1x24xi1> to vector<1x24xi1>
    %80 = vector.broadcast %79 : vector<1x24xi1> to vector<32x24xi1>
    %81 = vector.broadcast %cst_98 : f32 to vector<32x24xf32>
    %82 = arith.select %80, %78, %81 : vector<32x24xi1>, vector<32x24xf32>
    %83 = arith.truncf %82 : vector<32x24xf32> to vector<32x24xbf16>
    %c0_99 = arith.constant 0 : index
    %c0_100 = arith.constant 0 : index
    %c0_101 = arith.constant 0 : index
    %84 = vector.load %arg4[%c0_99, %c0_100, %c0_101] : memref<1x32x24xbf16, #tpu.memory_space<vmem>>, vector<1x32x24xbf16>
    %85 = vector.shape_cast %84 : vector<1x32x24xbf16> to vector<32x24xbf16>
    %86 = vector.shape_cast %83 : vector<32x24xbf16> to vector<1x32x24xbf16>
    tpu.vector_store %arg4[%c0_99, %c0_100, %c0_101], %86 {strides = array<i32>} : memref<1x32x24xbf16, #tpu.memory_space<vmem>>, vector<1x32x24xbf16>,
    return
  }
  func.func @transform_0(%arg0: i32) -> (i32, i32, i32, i32) {
    %c0_i32 = arith.constant 0 : i32
    %c0_i32_0 = arith.constant 0 : i32
    %c0_i32_1 = arith.constant 0 : i32
    %c0_i32_2 = arith.constant 0 : i32
    return %arg0, %c0_i32, %c0_i32_0, %c0_i32_1 : i32, i32, i32, i32
  }
  func.func @transform_1(%arg0: i32) -> (i32, i32) {
    %c0_i32 = arith.constant 0 : i32
    %c0_i32_0 = arith.constant 0 : i32
    %c0_i32_1 = arith.constant 0 : i32
    return %c0_i32, %c0_i32_0 : i32, i32
  }
  func.func @transform_2(%arg0: i32) -> (i32, i32) {
    %c0_i32 = arith.constant 0 : i32
    %c0_i32_0 = arith.constant 0 : i32
    %c0_i32_1 = arith.constant 0 : i32
    return %c0_i32, %c0_i32_0 : i32, i32
  }
  func.func @transform_3(%arg0: i32) -> (i32, i32, i32) {
    %c0_i32 = arith.constant 0 : i32
    %c0_i32_0 = arith.constant 0 : i32
    %c0_i32_1 = arith.constant 0 : i32
    return %arg0, %c0_i32, %c0_i32_0 : i32, i32, i32
  }
}

module attributes {stable_mosaic.version = 11 : i64} {
  func.func @_fused_pair_kernel(%arg0: i32, %arg1: memref<1x32x24xbf16, #tpu.memory_space<vmem>>, %arg2: memref<32x288xbf16, #tpu.memory_space<vmem>>, %arg3: memref<32x1xf32, #tpu.memory_space<vmem>>, %arg4: memref<32x288xbf16, #tpu.memory_space<vmem>>, %arg5: memref<32x1xf32, #tpu.memory_space<vmem>>, %arg6: memref<1x32x24xf32, #tpu.memory_space<vmem>>, %arg7: memref<32x44xbf16, #tpu.memory_space<vmem>>, %arg8: memref<32x44xbf16, #tpu.memory_space<vmem>>) attributes {dimension_semantics = [#tpu.dimension_semantics<parallel>], iteration_bounds = array<i64: 2>, scalar_prefetch = 0 : i64, scratch_operands = 2 : i64, tpu.core_type = #tpu.core_type<tc>, window_params = [{transform_indices = @transform_0, window_bounds = array<i64: 1, 32, 24>}, {pipeline_mode = #tpu.pipeline_mode<synchronous>, transform_indices = @transform_1, window_bounds = array<i64: 32, 288>}, {pipeline_mode = #tpu.pipeline_mode<synchronous>, transform_indices = @transform_2, window_bounds = array<i64: 32, 1>}, {pipeline_mode = #tpu.pipeline_mode<synchronous>, transform_indices = @transform_3, window_bounds = array<i64: 32, 288>}, {pipeline_mode = #tpu.pipeline_mode<synchronous>, transform_indices = @transform_4, window_bounds = array<i64: 32, 1>}, {transform_indices = @transform_5, window_bounds = array<i64: 1, 32, 24>}]} {
    %cst = arith.constant 0.000000e+00 : bf16
    %0 = vector.broadcast %cst : bf16 to vector<32x7xbf16>
    %c0 = arith.constant 0 : index
    %c0_0 = arith.constant 0 : index
    %1 = vector.load %arg7[%c0, %c0_0] : memref<32x44xbf16, #tpu.memory_space<vmem>>, vector<32x7xbf16>
    tpu.vector_store %arg7[%c0, %c0_0], %0 {strides = array<i32>} : memref<32x44xbf16, #tpu.memory_space<vmem>>, vector<32x7xbf16>,
    %cst_1 = arith.constant 0.000000e+00 : bf16
    %2 = vector.broadcast %cst_1 : bf16 to vector<32x13xbf16>
    %c0_2 = arith.constant 0 : index
    %c31 = arith.constant 31 : index
    %3 = vector.load %arg7[%c0_2, %c31] : memref<32x44xbf16, #tpu.memory_space<vmem>>, vector<32x13xbf16>
    tpu.vector_store %arg7[%c0_2, %c31], %2 {strides = array<i32>} : memref<32x44xbf16, #tpu.memory_space<vmem>>, vector<32x13xbf16>,
    %c0_3 = arith.constant 0 : index
    %c0_4 = arith.constant 0 : index
    %c0_5 = arith.constant 0 : index
    %4 = vector.load %arg1[%c0_3, %c0_4, %c0_5] : memref<1x32x24xbf16, #tpu.memory_space<vmem>>, vector<1x32x24xbf16>
    %5 = vector.shape_cast %4 : vector<1x32x24xbf16> to vector<32x24xbf16>
    %c0_6 = arith.constant 0 : index
    %c7 = arith.constant 7 : index
    %6 = vector.load %arg7[%c0_6, %c7] : memref<32x44xbf16, #tpu.memory_space<vmem>>, vector<32x24xbf16>
    tpu.vector_store %arg7[%c0_6, %c7], %5 {strides = array<i32>} : memref<32x44xbf16, #tpu.memory_space<vmem>>, vector<32x24xbf16>,
    %cst_7 = arith.constant 0.000000e+00 : bf16
    %7 = vector.broadcast %cst_7 : bf16 to vector<32x7xbf16>
    %c0_8 = arith.constant 0 : index
    %c0_9 = arith.constant 0 : index
    %8 = vector.load %arg8[%c0_8, %c0_9] : memref<32x44xbf16, #tpu.memory_space<vmem>>, vector<32x7xbf16>
    tpu.vector_store %arg8[%c0_8, %c0_9], %7 {strides = array<i32>} : memref<32x44xbf16, #tpu.memory_space<vmem>>, vector<32x7xbf16>,
    %cst_10 = arith.constant 0.000000e+00 : bf16
    %9 = vector.broadcast %cst_10 : bf16 to vector<32x13xbf16>
    %c0_11 = arith.constant 0 : index
    %c31_12 = arith.constant 31 : index
    %10 = vector.load %arg8[%c0_11, %c31_12] : memref<32x44xbf16, #tpu.memory_space<vmem>>, vector<32x13xbf16>
    tpu.vector_store %arg8[%c0_11, %c31_12], %9 {strides = array<i32>} : memref<32x44xbf16, #tpu.memory_space<vmem>>, vector<32x13xbf16>,
    %11 = tpu.iota {dimensions = array<i32: 1>} : vector<1x24xi32>
    %c6_i32 = arith.constant 6 : i32
    %c0_i32 = arith.constant 0 : i32
    %12 = arith.cmpi eq, %c6_i32, %c0_i32 : i32
    %c1_i32 = arith.constant 1 : i32
    %13 = arith.select %12, %c1_i32, %c6_i32 : i32
    %14 = vector.broadcast %13 : i32 to vector<1x24xi32>
    %15 = arith.remsi %11, %14 : vector<1x24xi32>
    %c0_i32_13 = arith.constant 0 : i32
    %16 = vector.broadcast %c0_i32_13 : i32 to vector<1x24xi32>
    %17 = arith.cmpi ne, %15, %16 : vector<1x24xi32>
    %c0_i32_14 = arith.constant 0 : i32
    %18 = vector.broadcast %c0_i32_14 : i32 to vector<1x24xi32>
    %19 = arith.cmpi slt, %15, %18 : vector<1x24xi32>
    %c0_i32_15 = arith.constant 0 : i32
    %20 = arith.cmpi slt, %13, %c0_i32_15 : i32
    %21 = vector.broadcast %20 : i1 to vector<1x24xi1>
    %22 = vector.broadcast %21 : vector<1x24xi1> to vector<1x24xi1>
    %23 = arith.xori %19, %22 : vector<1x24xi1>
    %24 = arith.andi %23, %17 : vector<1x24xi1>
    %25 = vector.broadcast %13 : i32 to vector<1x24xi32>
    %26 = arith.addi %15, %25 : vector<1x24xi32>
    %27 = arith.select %24, %26, %15 : vector<1x24xi1>, vector<1x24xi32>
    %c4_i32 = arith.constant 4 : i32
    %28 = vector.broadcast %c4_i32 : i32 to vector<1x24xi32>
    %29 = arith.cmpi slt, %27, %28 : vector<1x24xi32>
    %c0_16 = arith.constant 0 : index
    %c0_17 = arith.constant 0 : index
    %30 = vector.load %arg2[%c0_16, %c0_17] : memref<32x288xbf16, #tpu.memory_space<vmem>>, vector<32x288xbf16>
    %c0_18 = arith.constant 0 : index
    %c0_19 = arith.constant 0 : index
    %31 = vector.load %arg3[%c0_18, %c0_19] : memref<32x1xf32, #tpu.memory_space<vmem>>, vector<32x1xf32>
    %c0_20 = arith.constant 0 : index
    %c0_21 = arith.constant 0 : index
    %32 = vector.load %arg4[%c0_20, %c0_21] : memref<32x288xbf16, #tpu.memory_space<vmem>>, vector<32x288xbf16>
    %c0_22 = arith.constant 0 : index
    %c0_23 = arith.constant 0 : index
    %33 = vector.load %arg5[%c0_22, %c0_23] : memref<32x1xf32, #tpu.memory_space<vmem>>, vector<32x1xf32>
    %c0_24 = arith.constant 0 : index
    %c0_25 = arith.constant 0 : index
    %34 = vector.load %arg7[%c0_24, %c0_25] : memref<32x44xbf16, #tpu.memory_space<vmem>>, vector<32x24xbf16>
    %c0_26 = arith.constant 0 : index
    %c1 = arith.constant 1 : index
    %35 = vector.load %arg7[%c0_26, %c1] : memref<32x44xbf16, #tpu.memory_space<vmem>>, vector<32x24xbf16>
    %c0_27 = arith.constant 0 : index
    %c2 = arith.constant 2 : index
    %36 = vector.load %arg7[%c0_27, %c2] : memref<32x44xbf16, #tpu.memory_space<vmem>>, vector<32x24xbf16>
    %c0_28 = arith.constant 0 : index
    %c6 = arith.constant 6 : index
    %37 = vector.load %arg7[%c0_28, %c6] : memref<32x44xbf16, #tpu.memory_space<vmem>>, vector<32x24xbf16>
    %c0_29 = arith.constant 0 : index
    %c7_30 = arith.constant 7 : index
    %38 = vector.load %arg7[%c0_29, %c7_30] : memref<32x44xbf16, #tpu.memory_space<vmem>>, vector<32x24xbf16>
    %c0_31 = arith.constant 0 : index
    %c8 = arith.constant 8 : index
    %39 = vector.load %arg7[%c0_31, %c8] : memref<32x44xbf16, #tpu.memory_space<vmem>>, vector<32x24xbf16>
    %c0_32 = arith.constant 0 : index
    %c12 = arith.constant 12 : index
    %40 = vector.load %arg7[%c0_32, %c12] : memref<32x44xbf16, #tpu.memory_space<vmem>>, vector<32x24xbf16>
    %c0_33 = arith.constant 0 : index
    %c13 = arith.constant 13 : index
    %41 = vector.load %arg7[%c0_33, %c13] : memref<32x44xbf16, #tpu.memory_space<vmem>>, vector<32x24xbf16>
    %c0_34 = arith.constant 0 : index
    %c14 = arith.constant 14 : index
    %42 = vector.load %arg7[%c0_34, %c14] : memref<32x44xbf16, #tpu.memory_space<vmem>>, vector<32x24xbf16>
    %43 = tpu.concatenate %34, %35, %36, %37, %38, %39, %40, %41, %42 in 0 : vector<32x24xbf16>, vector<32x24xbf16>, vector<32x24xbf16>, vector<32x24xbf16>, vector<32x24xbf16>, vector<32x24xbf16>, vector<32x24xbf16>, vector<32x24xbf16>, vector<32x24xbf16> -> vector<288x24xbf16>
    %cst_35 = arith.constant dense<0.000000e+00> : vector<32x24xf32>
    %44 = tpu.matmul %30, %43, %cst_35 {dimension_numbers = #tpu.dot_dimension_numbers<[1], [0], [0], [1], [0, 0, 1, 1], [], []>} : vector<32x288xbf16>, vector<288x24xbf16>, vector<32x24xf32> -> vector<32x24xf32>
    %45 = vector.broadcast %31 : vector<32x1xf32> to vector<32x24xf32>
    %46 = arith.addf %44, %45 : vector<32x24xf32>
    %cst_36 = arith.constant 0.000000e+00 : f32
    %47 = vector.broadcast %cst_36 : f32 to vector<32x24xf32>
    %48 = arith.maximumf %46, %47 : vector<32x24xf32>
    %cst_37 = arith.constant 0.000000e+00 : f32
    %49 = vector.shape_cast %29 : vector<1x24xi1> to vector<1x24xi1>
    %50 = vector.broadcast %49 : vector<1x24xi1> to vector<32x24xi1>
    %51 = vector.broadcast %cst_37 : f32 to vector<32x24xf32>
    %52 = arith.select %50, %48, %51 : vector<32x24xi1>, vector<32x24xf32>
    %53 = arith.truncf %52 : vector<32x24xf32> to vector<32x24xbf16>
    %c0_38 = arith.constant 0 : index
    %c7_39 = arith.constant 7 : index
    %54 = vector.load %arg8[%c0_38, %c7_39] : memref<32x44xbf16, #tpu.memory_space<vmem>>, vector<32x24xbf16>
    tpu.vector_store %arg8[%c0_38, %c7_39], %53 {strides = array<i32>} : memref<32x44xbf16, #tpu.memory_space<vmem>>, vector<32x24xbf16>,
    %c0_40 = arith.constant 0 : index
    %c0_41 = arith.constant 0 : index
    %55 = vector.load %arg8[%c0_40, %c0_41] : memref<32x44xbf16, #tpu.memory_space<vmem>>, vector<32x24xbf16>
    %c0_42 = arith.constant 0 : index
    %c1_43 = arith.constant 1 : index
    %56 = vector.load %arg8[%c0_42, %c1_43] : memref<32x44xbf16, #tpu.memory_space<vmem>>, vector<32x24xbf16>
    %c0_44 = arith.constant 0 : index
    %c2_45 = arith.constant 2 : index
    %57 = vector.load %arg8[%c0_44, %c2_45] : memref<32x44xbf16, #tpu.memory_space<vmem>>, vector<32x24xbf16>
    %c0_46 = arith.constant 0 : index
    %c6_47 = arith.constant 6 : index
    %58 = vector.load %arg8[%c0_46, %c6_47] : memref<32x44xbf16, #tpu.memory_space<vmem>>, vector<32x24xbf16>
    %c0_48 = arith.constant 0 : index
    %c7_49 = arith.constant 7 : index
    %59 = vector.load %arg8[%c0_48, %c7_49] : memref<32x44xbf16, #tpu.memory_space<vmem>>, vector<32x24xbf16>
    %c0_50 = arith.constant 0 : index
    %c8_51 = arith.constant 8 : index
    %60 = vector.load %arg8[%c0_50, %c8_51] : memref<32x44xbf16, #tpu.memory_space<vmem>>, vector<32x24xbf16>
    %c0_52 = arith.constant 0 : index
    %c12_53 = arith.constant 12 : index
    %61 = vector.load %arg8[%c0_52, %c12_53] : memref<32x44xbf16, #tpu.memory_space<vmem>>, vector<32x24xbf16>
    %c0_54 = arith.constant 0 : index
    %c13_55 = arith.constant 13 : index
    %62 = vector.load %arg8[%c0_54, %c13_55] : memref<32x44xbf16, #tpu.memory_space<vmem>>, vector<32x24xbf16>
    %c0_56 = arith.constant 0 : index
    %c14_57 = arith.constant 14 : index
    %63 = vector.load %arg8[%c0_56, %c14_57] : memref<32x44xbf16, #tpu.memory_space<vmem>>, vector<32x24xbf16>
    %64 = tpu.concatenate %55, %56, %57, %58, %59, %60, %61, %62, %63 in 0 : vector<32x24xbf16>, vector<32x24xbf16>, vector<32x24xbf16>, vector<32x24xbf16>, vector<32x24xbf16>, vector<32x24xbf16>, vector<32x24xbf16>, vector<32x24xbf16>, vector<32x24xbf16> -> vector<288x24xbf16>
    %cst_58 = arith.constant dense<0.000000e+00> : vector<32x24xf32>
    %65 = tpu.matmul %32, %64, %cst_58 {dimension_numbers = #tpu.dot_dimension_numbers<[1], [0], [0], [1], [0, 0, 1, 1], [], []>} : vector<32x288xbf16>, vector<288x24xbf16>, vector<32x24xf32> -> vector<32x24xf32>
    %66 = vector.broadcast %33 : vector<32x1xf32> to vector<32x24xf32>
    %67 = arith.addf %65, %66 : vector<32x24xf32>
    %cst_59 = arith.constant 0.000000e+00 : f32
    %68 = vector.shape_cast %29 : vector<1x24xi1> to vector<1x24xi1>
    %69 = vector.broadcast %68 : vector<1x24xi1> to vector<32x24xi1>
    %70 = vector.broadcast %cst_59 : f32 to vector<32x24xf32>
    %71 = arith.select %69, %67, %70 : vector<32x24xi1>, vector<32x24xf32>
    %c0_60 = arith.constant 0 : index
    %c0_61 = arith.constant 0 : index
    %c0_62 = arith.constant 0 : index
    %72 = vector.load %arg6[%c0_60, %c0_61, %c0_62] : memref<1x32x24xf32, #tpu.memory_space<vmem>>, vector<1x32x24xf32>
    %73 = vector.shape_cast %72 : vector<1x32x24xf32> to vector<32x24xf32>
    %74 = vector.shape_cast %71 : vector<32x24xf32> to vector<1x32x24xf32>
    tpu.vector_store %arg6[%c0_60, %c0_61, %c0_62], %74 {strides = array<i32>} : memref<1x32x24xf32, #tpu.memory_space<vmem>>, vector<1x32x24xf32>,
    return
  }
  func.func @transform_0(%arg0: i32) -> (i32, i32, i32) {
    %c0_i32 = arith.constant 0 : i32
    %c0_i32_0 = arith.constant 0 : i32
    %c0_i32_1 = arith.constant 0 : i32
    return %arg0, %c0_i32, %c0_i32_0 : i32, i32, i32
  }
  func.func @transform_1(%arg0: i32) -> (i32, i32) {
    %c0_i32 = arith.constant 0 : i32
    %c0_i32_0 = arith.constant 0 : i32
    %c0_i32_1 = arith.constant 0 : i32
    return %c0_i32, %c0_i32_0 : i32, i32
  }
  func.func @transform_2(%arg0: i32) -> (i32, i32) {
    %c0_i32 = arith.constant 0 : i32
    %c0_i32_0 = arith.constant 0 : i32
    %c0_i32_1 = arith.constant 0 : i32
    return %c0_i32, %c0_i32_0 : i32, i32
  }
  func.func @transform_3(%arg0: i32) -> (i32, i32) {
    %c0_i32 = arith.constant 0 : i32
    %c0_i32_0 = arith.constant 0 : i32
    %c0_i32_1 = arith.constant 0 : i32
    return %c0_i32, %c0_i32_0 : i32, i32
  }
  func.func @transform_4(%arg0: i32) -> (i32, i32) {
    %c0_i32 = arith.constant 0 : i32
    %c0_i32_0 = arith.constant 0 : i32
    %c0_i32_1 = arith.constant 0 : i32
    return %c0_i32, %c0_i32_0 : i32, i32
  }
  func.func @transform_5(%arg0: i32) -> (i32, i32, i32) {
    %c0_i32 = arith.constant 0 : i32
    %c0_i32_0 = arith.constant 0 : i32
    %c0_i32_1 = arith.constant 0 : i32
    return %arg0, %c0_i32, %c0_i32_0 : i32, i32, i32
  }
}

</mosaic_0001>

<bundles_post_ra>
// kernel: featurenet_forward.5
= control target key start
LH: loop header
LB: loop body
LE: loop exit
PB: predicated region body
PF: predicated region fallthrough
CT: control target
= control target key end

     0   :  { %s1042_s18 = smov 0   ;;  %s1327_s0 = inlined_call_operand.vmem [shape: bf16[2,4,288], index: 0, kind: input, shape index: {}]   ;;  %s1328_s1 = inlined_call_operand.vmem [shape: bf16[8,36], index: 1, kind: input, shape index: {}]   ;;  %s1329_s2 = inlined_call_operand.vmem [shape: f32[8,1], index: 2, kind: input, shape index: {}]   ;;  %s1330_s3 = inlined_call_operand.vmem [shape: bf16[8,72], index: 3, kind: input, shape index: {}]   ;;  %s1331_s4 = inlined_call_operand.vmem [shape: f32[8,1], index: 4, kind: input, shape index: {}]   ;;  %s1332_s5 = inlined_call_operand.vmem [shape: bf16[2,8,288], index: 5, kind: output, shape index: {}]  }
   0x1 LB: > { %s895_s19 = sadd.s32 4294967295, %s997_s18   ;;  %p899_p0 = scmp.ge.s32.totalorder %s997_s18, 1  ;;  %s997_s18 = sphi %s1042_s18, %s15_s18  }
   0x2   : > { %p187_p1 = scmp.lt.s32.totalorder %s997_s18, 3 }
   0x4   : > { %p188_p2 = pnand %p899_p0, %p187_p1 }
   0x5   : > { %p215_p3 = scmp.lt.s32.totalorder (!%p188_p2), %s895_s19, 1  ;;  %s1000_s24 = smov (!%p188_p2), 19  }
   0x6   : > { %191 = sbr.rel (%p188_p2) target bundleno = 1007 (0x3ef), region = 40  ;;  %s1002_s25 = smov (!%p188_p2), 108  }
   0x7   : > { %s1003_s26 = smov (!%p188_p2), 90   ;;  %s1004_s27 = smov (!%p188_p2), 127  }
   0x8   : > { %s1005_s28 = smov (!%p188_p2), 109   ;;  %s1007_s29 = smov (!%p188_p2), 126  }
   0x9   : > { %s1008_s30 = smov (!%p188_p2), 92   ;;  %s1009_s6 = smov (!%p188_p2), 91  }
   0xa   : > { %s1010_s7 = smov (!%p188_p2), 110  }
   0xb   : > { %vm226_vm0 = vcmask 148480   ;;  %vm228_vm1 = vcmask 615832   ;;  %v999_v0 = vmov 0   ;;  %s1357_s19 = smov (!%p215_p3, %s895_s19), 1  ;;  %vm238_vm2 = vcmask 1041560   ;;  %v304_v23 = vld [vmem:[%s1329_s2] sm:$0xff] }
   0xc   : > { %227 = vst.msk [vmem:[#allocation2] sm:$0x3] %vm226_vm0, %v999_v0  ;;  %510 = vmatprep.mubr.bf16.mxu0 %v999_v0  ;;  %984 = vset.pattern.permute.xlu1 %v999_v0  ;;  %s955_s20 = smul.u32 6, %s1357_s19  ;;  %vm239_vm3 = vcmask 1043458   ;;  %vm241_vm5 = vcmask 414724   ;;  %vm235_vm6 = vcmask 154624   ;;  %v248_v3 = vlaneseq }
   0xd   : > { %229 = vst.msk [vmem:[#allocation2 + $0x4] sm:$0x3] %vm228_vm1, %v999_v0  ;;  %985 = vset.pattern.permute.xlu0 %v999_v0  ;;  %vm240_vm4 = vmor %vm239_vm3, %vm238_vm2  ;;  %v1001_v4 = vmov 1983009808   ;;  %v1006_v13 = vmov 0.0   ;;  %vm1011_vm8 = vmmov 0  }
   0xe   : > { %s219_s23 = scalar_lea.vmem %s1327_s0, %s955_s20  ;;  %v311_v5 = vunpack.c.l.s4 %v1001_v4  ;;  %vm242_vm7 = vmor %vm241_vm5, %vm240_vm4  ;;  %v314_v9 = vshrl.u32 %v248_v3, 7  ;;  %931 = vmatprep.subr.bf16.mxu1 %v1006_v13  ;;  %937 = vmatprep.mubr.msk.bf16.mxu1 %vm1011_vm8, %v1006_v13  ;;  %vm406_vm9 = vcmask 736256   ;;  %vm409_vm10 = vcmask 1041408   ;;  %s956_s16 = smul.u32 12, %s1357_s19 }
   0xf   : > { %v230_v1 = vld [vmem:[%s219_s23] sm:$0x3f]  ;;  %vm1336_vm11 = vcmask 883712   ;;  %vm1337_vm12 = vcmask 891904   ;;  %vm397_vm13 = vcmask 744448   ;;  %vm388_vm14 = vcmask 752640  }
  0x10   : > { %232 = vrot.lane.b32.xlu0 %v230_v1, %s1000_s24  ;;  %v312_v8 = vunpack.c.0.s8 %v311_v5  ;;  %vm1333_vm15 = vcmask 1039360   ;;  %vm426_vm0 = vcmask 1045504   ;;  %vm419_vm1 = vcmask 1043456   ;;  %s224_s21 = scalar_lea.vmem %s1332_s5, %s956_s16 }
  0x11   : > { %vm1335_vm2 = vcmask 1031168   ;;  %vm1334_vm3 = vcmask 900096   ;;  %vm465_vm4 = vcmask 293888  }
  0x12   : > { %v315_v10 = vsub.s32 %v312_v8, %v314_v9 }
  0x82   : > { %v233_v2 = vpop.permute.xlu0 %232 }
  0x83   : > { %v234_v6 = vrot.slane %v233_v2, 6 }
  0x85   : > { %v236_v7 = vsel %vm235_vm6, %v234_v6, %v233_v2 }
  0x86   : > { %243 = vst.msk [vmem:[#allocation2] sm:$0x3f] %vm242_vm7, %v236_v7 }
  0x8d   : > { %v307_v11 = vld [vmem:[#allocation2] sm:$0x3f] }
  0x8e   : > { %v1064_v12 = vrot.slane %v307_v11, %v315_v10  ;;  %v309_v15 = vcombine.high %v307_v11, %v307_v11  ;;  %v325_v18 = vcombine.low %v307_v11, %v307_v11 }
  0x90   : > { %377 = vrot.lane.b32.xlu1 %v1064_v12, %s1002_s25  ;;  %400 = vrot.lane.b32.xlu0 %v1064_v12, %s1003_s26  ;;  %v1081_v14 = vcombine.high %v1064_v12, %v1064_v12  ;;  %v343_v16 = vcombine.low %v1064_v12, %v1064_v12  ;;  %v1089_v17 = vrot.slane %v309_v15, %v315_v10 }
  0x91   : > { %v332_v19 = vrot.slane %v325_v18, %v315_v10 }
  0x92   : > { %v344_v21 = vcombine.low %v1089_v17, %v1089_v17 }
  0x93   : > { %v333_v20 = vcombine.high %v332_v19, %v332_v19  ;;  %v354_v22 = vcombine.low %v332_v19, %v332_v19 }
  0x94   : > { %338 = vrot.lane.b32.xlu1 %v1064_v12, %s1004_s27  ;;  %364 = vrot.lane.b32.xlu0 %v1064_v12, %s1005_s28 }
  0x98   : > { %347 = vrot.lane.b32.xlu1 %v1064_v12, %s1007_s29  ;;  %384 = vrot.lane.b32.xlu0 %v1064_v12, %s1008_s30 }
  0x9c   : > { %366 = vrot.lane.b32.xlu0 %v1081_v14, %s1005_s28  ;;  %402 = vrot.lane.b32.xlu1 %v1081_v14, %s1003_s26 }
  0xa0   : > { %382 = vrot.lane.b32.xlu0 %v343_v16, %s1008_s30  ;;  %404 = vrot.lane.b32.xlu1 %v1089_v17, %s1003_s26 }
  0xa4   : > { %395 = vrot.lane.b32.xlu0 %v343_v16, %s1009_s6  ;;  %368 = vrot.lane.b32.xlu1 %v1089_v17, %s1005_s28 }
  0xa8   : > { %334 = vrot.lane.b32.xlu0 %v332_v19, %s1004_s27  ;;  %373 = vrot.lane.b32.xlu1 %v332_v19, %s1002_s25 }
  0xac   : > { %357 = vrot.lane.b32.xlu0 %v332_v19, %s1010_s7  ;;  %393 = vrot.lane.b32.xlu1 %v332_v19, %s1009_s6 }
  0xb0   : > { %375 = vrot.lane.b32.xlu0 %v333_v20, %s1002_s25  ;;  %345 = vrot.lane.b32.xlu1 %v343_v16, %s1007_s29 }
  0xb4   : > { %336 = vrot.lane.b32.xlu0 %v333_v20, %s1004_s27  ;;  %386 = vrot.lane.b32.xlu1 %v344_v21, %s1008_s30 }
  0xb8   : > { %349 = vrot.lane.b32.xlu0 %v344_v21, %s1007_s29  ;;  %391 = vrot.lane.b32.xlu1 %v354_v22, %s1009_s6 }
  0xbc   : > { %355 = vrot.lane.b32.xlu0 %v354_v22, %s1010_s7  ;;  %359 = vrot.lane.b32.xlu1 %v343_v16, %s1010_s7 }
  0xc0   : > { %462 = vperm.xlu1 %984, %v304_v23  }
 0x102   : > { %v378_v24 = vpop.permute.xlu1 %377  ;;  %v401_v25 = vpop.permute.xlu0 %400 }
 0x106   : > { %v1116_v26 = vpop.permute.xlu1 %338  ;;  %v365_v27 = vpop.permute.xlu0 %364 }
 0x107   : > { %v418_v9 = vsel %vm409_vm10, %v1089_v17, %v1116_v26 }
 0x10a   : > { %v1118_v28 = vpop.permute.xlu1 %347  ;;  %v385_v29 = vpop.permute.xlu0 %384 }
 0x10e   : > { %v367_v30 = vpop.permute.xlu0 %366  ;;  %v403_v31 = vpop.permute.xlu1 %402 }
 0x10f   : > { %v407_v32 = vsel %vm406_vm9, %v401_v25, %v403_v31  ;;  %v371_v48 = vsel %vm1337_vm12, %v365_v27, %v367_v30 }
 0x110   : > { %v470_v37 = vsel %vm409_vm10, %v407_v32, 0 }
 0x112   : > { %v383_v33 = vpop.permute.xlu0 %382  ;;  %v405_v34 = vpop.permute.xlu1 %404 }
 0x113   : > { %v408_v35 = vsel %vm406_vm9, %v403_v31, %v405_v34  ;;  %v476_v36 = vsel %vm409_vm10, %v405_v34, 0  ;;  %v389_v62 = vsel %vm388_vm14, %v383_v33, %v385_v29 }
 0x114   : > { %902 = vmatprep.subr.msk.bf16.mxu0 %vm409_vm10, %v408_v35  ;;  %932 = vmatpush3.bf16.msra.mxu1 %v476_v36 }
 0x115   : > { %489 = vmatpush1.bf16.msra.mxu0 %v470_v37  ;;  %933 = vmatprep.subr.bf16.mxu1 %v1006_v13 }
 0x116   : > { %v396_v38 = vpop.permute.xlu0 %395  ;;  %v369_v39 = vpop.permute.xlu1 %368 }
 0x117   : > { %v372_v49 = vsel %vm1337_vm12, %v367_v30, %v369_v39  ;;  %v444_v50 = vsel %vm409_vm10, %v369_v39, %v378_v24 }
 0x11a   : > { %v335_v40 = vpop.permute.xlu0 %334  ;;  %v374_v41 = vpop.permute.xlu1 %373 }
 0x11e   : > { %v358_v42 = vpop.permute.xlu0 %357  ;;  %v394_v43 = vpop.permute.xlu1 %393 }
 0x11f   : > { %v399_v53 = vsel %vm397_vm13, %v394_v43, %v396_v38 }
 0x122   : > { %v376_v44 = vpop.permute.xlu0 %375  ;;  %v346_v45 = vpop.permute.xlu1 %345 }
 0x123   : > { %v381_v46 = vsel %vm1336_vm11, %v376_v44, %v378_v24  ;;  %v380_v47 = vsel %vm1336_vm11, %v374_v41, %v376_v44  ;;  %v352_v10 = vsel %vm1335_vm2, %v346_v45, %v1118_v28  ;;  %v249_v24 = vand.u32 127, %v248_v3 }
 0x124   : > { %v441_v54 = vsel %vm409_vm10, %v372_v49, %v381_v46  ;;  %v438_v57 = vsel %vm409_vm10, %v371_v48, %v380_v47 }
 0x125   : > { %v446_v6 = vsel %vm419_vm1, %v438_v57, %v389_v62  ;;  %v251_v25 = vadd.s32 256, %v249_v24 }
 0x126   : > { %v337_v51 = vpop.permute.xlu0 %336  ;;  %v387_v52 = vpop.permute.xlu1 %386 }
 0x127   : > { %v390_v55 = vsel %vm388_vm14, %v385_v29, %v387_v52  ;;  %v450_v56 = vsel %vm419_vm1, %v444_v50, %v387_v52  ;;  %v341_v58 = vsel %vm1333_vm15, %v335_v40, %v337_v51  ;;  %v342_v2 = vsel %vm1333_vm15, %v337_v51, %v1116_v26 }
 0x128   : > { %v458_v59 = vsel %vm426_vm0, %v450_v56, %v396_v38  ;;  %v448_v60 = vsel %vm419_vm1, %v441_v54, %v390_v55  ;;  %v412_v4 = vsel %vm409_vm10, %v1064_v12, %v341_v58  ;;  %v415_v11 = vsel %vm409_vm10, %v1081_v14, %v342_v2  ;;  %v303_v14 = vld [vmem:[%s1328_s1] sm:$0xf] }
 0x129   : > { %934 = vmatpush3.bf16.msra.mxu1 %v458_v59  ;;  %v455_v61 = vsel %vm426_vm0, %v448_v60, %v399_v53  ;;  %v421_v18 = vsel %vm419_vm1, %v412_v4, %v352_v10  ;;  %v250_v26 = vadd.s32 128, %v249_v24  ;;  %vm246_vm10 = vcmask 617880  }
 0x12a   : > { %v350_v63 = vpop.permute.xlu0 %349  ;;  %490 = vmatprep.subr.bf16.mxu0 %v455_v61  ;;  %v392_v1 = vpop.permute.xlu1 %391  ;;  %935 = vmatprep.subr.bf16.mxu1 %v1006_v13  ;;  %v1177_v29 = vmul.u32.u64.low 3817748708, %v249_v24  ;;  %v1178_v30 = vmul.u32.u64.high 3817748708, %v249_v24, %v1177_v29  ;;  %247 = vst.msk [vmem:[#allocation3 + $0x8] sm:$0xf] %vm246_vm10, %v999_v0  ;;  %vm1351_vm10 = vcmask 900096  }
 0x12b   : > { %v398_v5 = vsel %vm397_vm13, %v392_v1, %v394_v43  ;;  %v353_v7 = vsel %vm1335_vm2, %v1118_v28, %v350_v63  ;;  %v425_v12 = vsel %vm419_vm1, %v418_v9, %v350_v63 }
 0x12c   : > { %v452_v8 = vsel %vm426_vm0, %v446_v6, %v398_v5  ;;  %v423_v17 = vsel %vm419_vm1, %v415_v11, %v353_v7  ;;  %v1174_v27 = vmul.u32.u64.low 3817748708, %v251_v25  ;;  %v1175_v28 = vmul.u32.u64.high 3817748708, %v251_v25, %v1174_v27 }
 0x12d   : > { %491 = vmatpush1.bf16.msra.mxu0 %v452_v8  ;;  %v1180_v31 = vmul.u32.u64.low 3817748708, %v250_v26  ;;  %v1181_v32 = vmul.u32.u64.high 3817748708, %v250_v26, %v1180_v31  ;;  %v258_v34 = vshrl.u32 %v1178_v30, 4 }
 0x12e   : > { %v356_v15 = vpop.permute.xlu0 %355  ;;  %v360_v16 = vpop.permute.xlu1 %359  ;;  %v280_v33 = vshrl.u32 %v1175_v28, 4 }
 0x12f   : > { %v362_v19 = vsel %vm1334_vm3, %v356_v15, %v358_v42  ;;  %v363_v20 = vsel %vm1334_vm3, %v358_v42, %v360_v16  ;;  %v434_v21 = vsel %vm426_vm0, %v425_v12, %v360_v16  ;;  %v269_v35 = vshrl.u32 %v1181_v32, 4 }
 0x130   : > { %936 = vmatpush3.bf16.msra.mxu1 %v434_v21  ;;  %v431_v22 = vsel %vm426_vm0, %v423_v17, %v363_v20  ;;  %v428_v23 = vsel %vm426_vm0, %v421_v18, %v362_v19  ;;  %v281_v36 = vmul.u32 18, %v280_v33  ;;  %v259_v37 = vmul.u32 18, %v258_v34  ;;  %v306_v20 = vld [vmem:[%s1331_s4] sm:$0xff] }
 0x131   : > { %492 = vmatprep.subr.bf16.mxu0 %v431_v22  ;;  %941 = vmatprep.subr.bf16.mxu1 %v1006_v13  ;;  %v270_v3 = vmul.u32 18, %v269_v35 }
 0x132   : > { %493 = vmatpush1.bf16.msra.mxu0 %v428_v23  ;;  %v282_v38 = vsub.s32 %v251_v25, %v281_v36  ;;  %v260_v39 = vsub.s32 %v249_v24, %v259_v37 }
 0x133   : > { %938 = vmatmul.mubr.msk.bf16.vlgmr.msra.gmra.mxu1 %vm465_vm4, %v303_v14  ;;  %v271_v40 = vsub.s32 %v250_v26, %v270_v3 }
 0x134   : > { %951 = vmatprep.mubr.msk.bf16.mxu1 %vm1011_vm8, %v1006_v13  ;;  %vm287_vm5 = vcmp.ne.s32.totalorder %v282_v38, 0  ;;  %vm290_vm7 = vcmp.lt.s32.totalorder %v282_v38, 0  ;;  %vm244_vm8 = vcmask 150528   ;;  %v296_v41 = vadd.s32 18, %v282_v38 }
 0x135   : > { %903 = vmatmul.mubr.msk.bf16.vlgmr.msra.gmra.mxu0 %vm465_vm4, %v303_v14  ;;  %245 = vst.msk [vmem:[#allocation3] sm:$0xf] %vm244_vm8, %v999_v0  ;;  %vm293_vm0 = vmand %vm290_vm7, %vm287_vm5  ;;  %vm285_vm4 = vcmp.ne.s32.totalorder %v260_v39, 0  ;;  %vm288_vm15 = vcmp.lt.s32.totalorder %v260_v39, 0  ;;  %vm286_vm3 = vcmp.ne.s32.totalorder %v271_v40, 0  ;;  %vm289_vm2 = vcmp.lt.s32.totalorder %v271_v40, 0 }
 0x136   : > { %769 = vmatprep.mubr.bf16.mxu0 %v999_v0  ;;  %v295_v42 = vadd.s32 18, %v271_v40  ;;  %v299_v43 = vsel %vm293_vm0, %v296_v41, %v282_v38  ;;  %vm1188_vm11 = vmand %vm288_vm15, %vm285_vm4  ;;  %v294_v45 = vadd.s32 18, %v260_v39  ;;  %vm595_vm5 = vcmask 412672  }
 0x137   : > { %vm292_vm12 = vmand %vm289_vm2, %vm286_vm3  ;;  %vm1192_vm8 = vcmp.lt.s32.totalorder %v299_v43, 16  ;;  %vm1350_vm7 = vcmask 1031168  }
 0x138   : > { %v298_v52 = vsel %vm292_vm12, %v295_v42, %v271_v40  ;;  %v297_v54 = vsel %vm1188_vm11, %v294_v45, %v260_v39  ;;  %vm591_vm11 = vcmask 1043608   ;;  %vm592_vm12 = vcmask 1047556   ;;  %vm1352_vm0 = vmmov %vm1350_vm7 }
 0x139   : > { %vm1200_vm15 = vcmp.lt.s32.totalorder %v298_v52, 16  ;;  %vm1204_vm2 = vcmp.lt.s32.totalorder %v297_v54, 16  ;;  %vm593_vm3 = vmor %vm592_vm12, %vm591_vm11  ;;  %vm1354_vm11 = vcmask 1039360  }
 0x13a   : > { %vm1353_vm4 = vmmov %vm1351_vm10 }
 0x13b   : > { %v463_v46 = vpop.permute.xlu1 %462  ;;  %vm1355_vm12 = vmmov %vm1354_vm11 }
 0x1f3   : > { %v553_v47 = vpop.f32.mrf.mxu1 }
 0x1f4   : > { %v554_v48 = vadd.f32 %v553_v47, %v463_v46 }
 0x1f5   : > { %v512_v49 = vpop.f32.mrf.mxu0  ;;  %v939_v0 = vpop.f32.mrf.mxu1 }
 0x1f6   : > { %v513_v51 = vadd.f32 %v512_v49, %v463_v46  ;;  %v561_v53 = vmax.f32 %v554_v48, 0.0 }
 0x1f7   : > { %v514_v55 = vpop.f32.mrf.mxu0  ;;  %v556_v56 = vpop.f32.mrf.mxu1 }
 0x1f8   : > { %v559_v57 = vmax.f32 %v513_v51, 0.0  ;;  %v515_v58 = vadd.f32 %v514_v55, %v463_v46  ;;  %v570_v59 = vsel %vm1192_vm8, %v561_v53, 0.0 }
 0x1f9   : > { %v918_v61 = vpack.c.bf16 %v570_v59, %v570_v59  ;;  %v516_v62 = vpop.f32.mrf.mxu0  ;;  %v940_v63 = vpop.f32.mrf.mxu1 }
 0x1fa   : > { %v560_v2 = vmax.f32 %v515_v58, 0.0  ;;  %v568_v6 = vsel %vm1204_vm2, %v559_v57, 0.0 }
 0x1fb   : > { %v517_v4 = vpop.f32.mrf.mxu0  ;;  %584 = vrot.lane.b32.xlu1 %v918_v61, %s1000_s24 }
 0x1fc   : > { %v569_v5 = vsel %vm1200_vm15, %v560_v2, 0.0 }
 0x1fd   : > { %v917_v7 = vpack.c.bf16 %v569_v5, %v568_v6 }
 0x1ff   : > { %582 = vrot.lane.b32.xlu0 %v917_v7, %s1000_s24 }
 0x26d   : > { %v585_v10 = vpop.permute.xlu1 %584 }
 0x271   : > { %v583_v8 = vpop.permute.xlu0 %582 }
 0x272   : > { %v586_v9 = vrot.slane %v583_v8, 4 }
 0x274   : > { %v587_v11 = vsel %vm235_vm6, %v586_v9, %v583_v8  ;;  %v588_v12 = vsel %vm235_vm6, %v586_v9, %v585_v10  ;;  %vm1346_vm6 = vcmask 891904  }
 0x275   : > { %594 = vst.msk [vmem:[#allocation3] sm:$0xff] %vm593_vm3, %v587_v11  ;;  %v305_v11 = vld [vmem:[%s1330_s3] sm:$0xf]  ;;  %vm724_vm3 = vcmask 588800  }
 0x276   : > { %596 = vst.msk [vmem:[#allocation3 + $0x8] sm:$0xf] %vm595_vm5, %v588_v12 }
 0x27c   : > { %v597_v15 = vld [vmem:[#allocation3] sm:$0xff] }
 0x27d   : > { %v1216_v16 = vcombine.low %v597_v15, %v597_v15  ;;  %v1218_v18 = vcombine.high %v597_v15, %v597_v15  ;;  %v1224_v19 = vld [vmem:[#allocation3 + $0x8] ss:$0 sps:$4 sm:$0xff]  }
 0x27f   : > { %665 = vrot.lane.b32.xlu1 %v1218_v18, %s1003_s26  ;;  %663 = vrot.lane.b32.xlu0 %v1216_v16, %s1003_s26 }
 0x283   : > { %649 = vrot.lane.b32.xlu1 %v1218_v18, %s1008_s30  ;;  %667 = vrot.lane.b32.xlu0 %v1224_v19, %s1003_s26 }
 0x287   : > { %657 = vrot.lane.b32.xlu1 %v1218_v18, %s1009_s6  ;;  %651 = vrot.lane.b32.xlu0 %v1224_v19, %s1008_s30 }
 0x28b   : > { %647 = vrot.lane.b32.xlu1 %v1216_v16, %s1008_s30  ;;  %659 = vrot.lane.b32.xlu0 %v1224_v19, %s1009_s6 }
 0x28f   : > { %633 = vrot.lane.b32.xlu1 %v1218_v18, %s1005_s28  ;;  %655 = vrot.lane.b32.xlu0 %v1216_v16, %s1009_s6 }
 0x293   : > { %641 = vrot.lane.b32.xlu1 %v1218_v18, %s1002_s25  ;;  %635 = vrot.lane.b32.xlu0 %v1224_v19, %s1005_s28 }
 0x297   : > { %631 = vrot.lane.b32.xlu1 %v1216_v16, %s1005_s28  ;;  %643 = vrot.lane.b32.xlu0 %v1224_v19, %s1002_s25 }
 0x29b   : > { %617 = vrot.lane.b32.xlu1 %v1218_v18, %s1007_s29  ;;  %639 = vrot.lane.b32.xlu0 %v1216_v16, %s1002_s25 }
 0x29f   : > { %625 = vrot.lane.b32.xlu1 %v1218_v18, %s1010_s7  ;;  %619 = vrot.lane.b32.xlu0 %v1224_v19, %s1007_s29 }
 0x2a3   : > { %615 = vrot.lane.b32.xlu1 %v1216_v16, %s1007_s29  ;;  %627 = vrot.lane.b32.xlu0 %v1224_v19, %s1010_s7 }
 0x2a7   : > { %609 = vrot.lane.b32.xlu1 %v1218_v18, %s1004_s27  ;;  %623 = vrot.lane.b32.xlu0 %v1216_v16, %s1010_s7 }
 0x2ab   : > { %607 = vrot.lane.b32.xlu1 %v1216_v16, %s1004_s27  ;;  %611 = vrot.lane.b32.xlu0 %v1224_v19, %s1004_s27 }
 0x2af   : > { %721 = vperm.xlu0 %985, %v306_v20  }
 0x2f1   : > { %v666_v21 = vpop.permute.xlu1 %665  ;;  %v664_v17 = vpop.permute.xlu0 %663 }
 0x2f2   : > { %v669_v22 = vsel %vm406_vm9, %v664_v17, %v666_v21 }
 0x2f3   : > { %v729_v26 = vsel %vm419_vm1, %v669_v22, 0 }
 0x2f5   : > { %v650_v23 = vpop.permute.xlu1 %649  ;;  %v668_v14 = vpop.permute.xlu0 %667 }
 0x2f6   : > { %v670_v24 = vsel %vm406_vm9, %v666_v21, %v668_v14  ;;  %v735_v25 = vsel %vm419_vm1, %v668_v14, 0  ;;  %vm1347_vm9 = vcmask 883712  }
 0x2f7   : > { %910 = vmatprep.subr.msk.bf16.mxu0 %vm419_vm1, %v670_v24  ;;  %942 = vmatpush3.bf16.msra.mxu1 %v735_v25 }
 0x2f8   : > { %744 = vmatpush1.bf16.msra.mxu0 %v729_v26  ;;  %943 = vmatprep.subr.bf16.mxu1 %v1006_v13 }
 0x2f9   : > { %v658_v27 = vpop.permute.xlu1 %657  ;;  %v652_v28 = vpop.permute.xlu0 %651 }
 0x2fa   : > { %v654_v31 = vsel %vm388_vm14, %v650_v23, %v652_v28 }
 0x2fd   : > { %v648_v29 = vpop.permute.xlu1 %647  ;;  %v660_v30 = vpop.permute.xlu0 %659 }
 0x2fe   : > { %v662_v32 = vsel %vm397_vm13, %v658_v27, %v660_v30  ;;  %v717_v33 = vsel %vm419_vm1, %v652_v28, %v660_v30  ;;  %v653_v37 = vsel %vm388_vm14, %v648_v29, %v650_v23  ;;  %vm1349_vm14 = vmmov %vm1347_vm9 }
 0x2ff   : > { %944 = vmatpush3.bf16.msra.mxu1 %v717_v33  ;;  %v713_v34 = vsel %vm419_vm1, %v654_v31, %v662_v32 }
 0x300   : > { %745 = vmatprep.subr.bf16.mxu0 %v713_v34  ;;  %945 = vmatprep.subr.bf16.mxu1 %v1006_v13 }
 0x301   : > { %v634_v35 = vpop.permute.xlu1 %633  ;;  %v656_v36 = vpop.permute.xlu0 %655 }
 0x302   : > { %v661_v3 = vsel %vm397_vm13, %v656_v36, %v658_v27  ;;  %vm1348_vm13 = vmmov %vm1346_vm6 }
 0x303   : > { %v709_v38 = vsel %vm419_vm1, %v653_v37, %v661_v3 }
 0x304   : > { %746 = vmatpush1.bf16.msra.mxu0 %v709_v38 }
 0x305   : > { %v642_v39 = vpop.permute.xlu1 %641  ;;  %v636_v40 = vpop.permute.xlu0 %635 }
 0x306   : > { %v638_v43 = vsel %vm1346_vm6, %v634_v35, %v636_v40 }
 0x309   : > { %v632_v41 = vpop.permute.xlu1 %631  ;;  %v644_v42 = vpop.permute.xlu0 %643 }
 0x30a   : > { %v646_v44 = vsel %vm1347_vm9, %v642_v39, %v644_v42  ;;  %v705_v45 = vsel %vm419_vm1, %v636_v40, %v644_v42  ;;  %v637_v49 = vsel %vm1348_vm13, %v632_v41, %v634_v35 }
 0x30b   : > { %946 = vmatpush3.bf16.msra.mxu1 %v705_v45  ;;  %v701_v46 = vsel %vm419_vm1, %v638_v43, %v646_v44 }
 0x30c   : > { %747 = vmatprep.subr.bf16.mxu0 %v701_v46  ;;  %947 = vmatprep.subr.bf16.mxu1 %v1006_v13 }
 0x30d   : > { %v618_v47 = vpop.permute.xlu1 %617  ;;  %v640_v48 = vpop.permute.xlu0 %639 }
 0x30e   : > { %v645_v0 = vsel %vm1349_vm14, %v640_v48, %v642_v39 }
 0x30f   : > { %v697_v51 = vsel %vm419_vm1, %v637_v49, %v645_v0 }
 0x310   : > { %748 = vmatpush1.bf16.msra.mxu0 %v697_v51 }
 0x311   : > { %v626_v52 = vpop.permute.xlu1 %625  ;;  %v620_v53 = vpop.permute.xlu0 %619 }
 0x312   : > { %v622_v56 = vsel %vm1350_vm7, %v618_v47, %v620_v53 }
 0x315   : > { %v616_v54 = vpop.permute.xlu1 %615  ;;  %v628_v55 = vpop.permute.xlu0 %627 }
 0x316   : > { %v630_v57 = vsel %vm1351_vm10, %v626_v52, %v628_v55  ;;  %v693_v58 = vsel %vm419_vm1, %v620_v53, %v628_v55  ;;  %v621_v63 = vsel %vm1352_vm0, %v616_v54, %v618_v47 }
 0x317   : > { %948 = vmatpush3.bf16.msra.mxu1 %v693_v58  ;;  %v689_v59 = vsel %vm419_vm1, %v622_v56, %v630_v57 }
 0x318   : > { %749 = vmatprep.subr.bf16.mxu0 %v689_v59  ;;  %949 = vmatprep.subr.bf16.mxu1 %v1006_v13 }
 0x319   : > { %v610_v61 = vpop.permute.xlu1 %609  ;;  %v624_v62 = vpop.permute.xlu0 %623 }
 0x31a   : > { %v629_v2 = vsel %vm1353_vm4, %v624_v62, %v626_v52 }
 0x31b   : > { %v685_v4 = vsel %vm419_vm1, %v621_v63, %v629_v2 }
 0x31c   : > { %750 = vmatpush1.bf16.msra.mxu0 %v685_v4 }
 0x31d   : > { %v608_v5 = vpop.permute.xlu1 %607  ;;  %v612_v6 = vpop.permute.xlu0 %611 }
 0x31e   : > { %v613_v7 = vsel %vm1354_vm11, %v608_v5, %v610_v61  ;;  %v614_v8 = vsel %vm1355_vm12, %v610_v61, %v612_v6  ;;  %v681_v9 = vsel %vm419_vm1, %v1224_v19, %v612_v6 }
 0x31f   : > { %950 = vmatpush3.bf16.msra.mxu1 %v681_v9  ;;  %v677_v13 = vsel %vm419_vm1, %v1218_v18, %v614_v8  ;;  %v673_v10 = vsel %vm419_vm1, %v1216_v16, %v613_v7  ;;  %vm838_vm1 = vcmask 257024  }
 0x320   : > { %751 = vmatprep.subr.bf16.mxu0 %v677_v13 }
 0x321   : > { %752 = vmatpush1.bf16.msra.mxu0 %v673_v10 }
 0x322   : > { %952 = vmatmul.mubr.msk.bf16.vlgmr.msra.gmra.mxu1 %vm724_vm3, %v305_v11 }
 0x324   : > { %911 = vmatmul.mubr.msk.bf16.vlgmr.msra.gmra.mxu0 %vm724_vm3, %v305_v11 }
 0x32a   : > { %v722_v15 = vpop.permute.xlu0 %721 }
 0x3e2   : > { %v812_v12 = vpop.f32.mrf.mxu1 }
 0x3e3   : > { %v813_v19 = vadd.f32 %v812_v12, %v722_v15 }
 0x3e4   : > { %v771_v20 = vpop.f32.mrf.mxu0  ;;  %v953_v21 = vpop.f32.mrf.mxu1 }
 0x3e5   : > { %v772_v17 = vadd.f32 %v771_v20, %v722_v15  ;;  %v820_v18 = vmax.f32 %v813_v19, 0.0 }
 0x3e6   : > { %v773_v22 = vpop.f32.mrf.mxu0  ;;  %v815_v23 = vpop.f32.mrf.mxu1 }
 0x3e7   : > { %v818_v16 = vmax.f32 %v772_v17, 0.0  ;;  %v823_v14 = vsel %vm1192_vm8, %v820_v18, 0.0  ;;  %v774_v24 = vadd.f32 %v773_v22, %v722_v15 }
 0x3e8   : > { %v920_v25 = vpack.c.bf16 %v823_v14, %v823_v14  ;;  %v775_v26 = vpop.f32.mrf.mxu0  ;;  %v954_v27 = vpop.f32.mrf.mxu1 }
 0x3e9   : > { %v819_v28 = vmax.f32 %v774_v24, 0.0  ;;  %v821_v30 = vsel %vm1204_vm2, %v818_v16, 0.0 }
 0x3ea   : > { %839 = vst.msk [vmem:[%s224_s21 + $0x8] sm:$0xf] %vm838_vm1, %v920_v25  ;;  %v776_v29 = vpop.f32.mrf.mxu0 }
 0x3eb   : > { %v822_v31 = vsel %vm1200_vm15, %v819_v28, 0.0 }
 0x3ec   : > { %v919_v32 = vpack.c.bf16 %v822_v31, %v821_v30 }
 0x3ee   : > { %837 = vst [vmem:[%s224_s21] sm:$0xff] %v919_v32 }
 0x3ef PF: > { %s15_s18 = sadd.s32 1, %s997_s18  }
 0x3f0   : > { %p12_p4 = scmp.ge.s32.totalorder %s15_s18, 4  }
 0x3f2   :  { %14 = sbr.rel (!%p12_p4) target bundleno = 1 (0x1), region = 70 }

// kernel: featurenet_forward.7
= control target key start
LH: loop header
LB: loop body
LE: loop exit
PB: predicated region body
PF: predicated region fallthrough
CT: control target
= control target key end

     0   :  { %s662_s18 = smov 0   ;;  %s780_s0 = inlined_call_operand.vmem [shape: bf16[2,16,80], index: 0, kind: input, shape index: {}]   ;;  %s781_s1 = inlined_call_operand.vmem [shape: bf16[16,144], index: 1, kind: input, shape index: {}]   ;;  %s782_s2 = inlined_call_operand.vmem [shape: f32[16,1], index: 2, kind: input, shape index: {}]   ;;  %s783_s3 = inlined_call_operand.vmem [shape: bf16[16,144], index: 3, kind: input, shape index: {}]   ;;  %s784_s4 = inlined_call_operand.vmem [shape: f32[16,1], index: 4, kind: input, shape index: {}]   ;;  %s785_s5 = inlined_call_operand.vmem [shape: bf16[2,16,80], index: 5, kind: output, shape index: {}]  }
   0x1 LB: > { %s557_s19 = sadd.s32 4294967295, %s620_s18   ;;  %p561_p0 = scmp.ge.s32.totalorder %s620_s18, 1  ;;  %s620_s18 = sphi %s662_s18, %s15_s18  }
   0x2   : > { %p187_p1 = scmp.lt.s32.totalorder %s620_s18, 3 }
   0x4   : > { %p188_p2 = pnand %p561_p0, %p187_p1 }
   0x5   : > { %p215_p3 = scmp.lt.s32.totalorder (!%p188_p2), %s557_s19, 1  ;;  %s623_s24 = smov (!%p188_p2), 11  }
   0x6   : > { %191 = sbr.rel (%p188_p2) target bundleno = 978 (0x3d2), region = 40  ;;  %s624_s25 = smov (!%p188_p2), 116  }
   0x7   : > { %s625_s26 = smov (!%p188_p2), 107   ;;  %s626_s27 = smov (!%p188_p2), 118  }
   0x8   : > { %s627_s28 = smov (!%p188_p2), 108   ;;  %s628_s29 = smov (!%p188_p2), 127  }
   0x9   : > { %s629_s30 = smov (!%p188_p2), 117   ;;  %s630_s6 = smov (!%p188_p2), 126  }
   0xa   : > { %s631_s7 = smov (!%p188_p2), 106  }
   0xb   : > { %vm226_vm0 = vcmask 84992   ;;  %vm229_vm1 = vcmask 880344   ;;  %v622_v0 = vmov 0   ;;  %s789_s19 = smov (!%p215_p3, %s557_s19), 1  ;;  %vm242_vm2 = vcmask 740440   ;;  %v270_v9 = vld [vmem:[%s782_s2] sm:$0xff] }
   0xc   : > { %227 = vst.msk [vmem:[#allocation2] sm:$0xf] %vm226_vm0, %v622_v0  ;;  %228 = vst.msk [vmem:[#allocation2 + $0x4] sm:$0xf] %vm226_vm0, %v622_v0  ;;  %331 = vmatprep.subr.bf16.mxu0 %v622_v0  ;;  %606 = vset.pattern.permute.xlu0 %v622_v0  ;;  %s580_s20 = sshll.u32 %s789_s19, 3  ;;  %vm327_vm3 = vcmask 130048   ;;  %v249_v20 = vlaneseq }
   0xd   : > { %245 = vst.msk [vmem:[#allocation3] sm:$0xf] %vm226_vm0, %v622_v0  ;;  %246 = vst.msk [vmem:[#allocation3 + $0x4] sm:$0xf] %vm226_vm0, %v622_v0  ;;  %607 = vset.pattern.permute.xlu1 %v622_v0  ;;  %446 = vmatprep.subr.bf16.mxu1 %v622_v0  ;;  %s219_s23 = scalar_lea.vmem %s780_s0, %s580_s20  ;;  %v610_v8 = vld [vmem:[%s781_s1 + $0x4] ss:$8 sps:$4 sm:$0xff]  }
   0xe   : > { %230 = vst.msk [vmem:[#allocation2] sm:$0xf] %vm229_vm1, %v622_v0  ;;  %231 = vst.msk [vmem:[#allocation2 + $0x4] sm:$0xf] %vm229_vm1, %v622_v0  ;;  %v232_v1 = vld [vmem:[%s219_s23] sm:$0xf]  ;;  %569 = vmatprep.mubr.msk.bf16.mxu0 %vm327_vm3, %v610_v8 }
   0xf   : > { %247 = vst.msk [vmem:[#allocation3] sm:$0xf] %vm229_vm1, %v622_v0  ;;  %248 = vst.msk [vmem:[#allocation3 + $0x4] sm:$0xf] %vm229_vm1, %v622_v0  ;;  %236 = vrot.lane.b32.xlu0 %v232_v1, %s623_s24  ;;  %v233_v2 = vld [vmem:[%s219_s23 + $0x4] sm:$0xf] }
  0x10   : > { %v271_v10 = vld [vmem:[%s782_s2 + $0x8] sm:$0xff]  ;;  %v250_v21 = vand.u32 127, %v249_v20  ;;  %v274_v50 = vld [vmem:[%s784_s4] sm:$0xff]  ;;  %vm499_vm8 = vcmask 650240  }
  0x11   : > { %v608_v19 = vld [vmem:[%s781_s1] ss:$8 sps:$4 sm:$0xff]   ;;  %v613_v51 = vld [vmem:[%s783_s3 + $0x4] ss:$8 sps:$4 sm:$0xff]  }
  0x12   : > { %v723_v22 = vmul.u32.u64.low 3435973837, %v250_v21  ;;  %v724_v23 = vmul.u32.u64.high 3435973837, %v250_v21, %v723_v22  ;;  %v275_v49 = vld [vmem:[%s784_s4 + $0x8] sm:$0xff]  ;;  %575 = vmatprep.mubr.msk.bf16.mxu1 %vm327_vm3, %v613_v51 }
  0x13   : > { %238 = vrot.lane.b32.xlu0 %v233_v2, %s623_s24  ;;  %v611_v60 = vld [vmem:[%s783_s3] ss:$8 sps:$4 sm:$0xff]  }
  0x14   : > { %v257_v24 = vshrl.u32 %v724_v23, 3 }
  0x16   : > { %v258_v25 = vmul.u32 10, %v257_v24 }
  0x18   : > { %v259_v26 = vsub.s32 %v250_v21, %v258_v25 }
  0x1a   : > { %vm262_vm4 = vcmp.ne.s32.totalorder %v259_v26, 0  ;;  %vm263_vm5 = vcmp.lt.s32.totalorder %v259_v26, 0  ;;  %v265_v27 = vadd.s32 10, %v259_v26 }
  0x1b   : > { %vm264_vm6 = vmand %vm263_vm5, %vm262_vm4 }
  0x1c   : > { %v266_v29 = vsel %vm264_vm6, %v265_v27, %v259_v26 }
  0x1d   : > { %vm727_vm7 = vcmp.lt.s32.totalorder %v266_v29, 8 }
  0x81   : > { %v237_v3 = vpop.permute.xlu0 %236 }
  0x82   : > { %243 = vst.msk [vmem:[#allocation2] sm:$0xf] %vm242_vm2, %v237_v3 }
  0x85   : > { %v239_v4 = vpop.permute.xlu0 %238 }
  0x86   : > { %244 = vst.msk [vmem:[#allocation2 + $0x4] sm:$0xf] %vm242_vm2, %v239_v4 }
  0x89   : > { %v276_v5 = vld [vmem:[#allocation2] sm:$0xf] }
  0x8d   : > { %v277_v6 = vld [vmem:[#allocation2 + $0x4] sm:$0xf] }
  0x8e   : > { %v566_v7 = vcombine.low %v276_v5, %v277_v6 }
  0x90   : > { %296 = vrot.lane.b32.xlu0 %v566_v7, %s624_s25  ;;  %302 = vrot.lane.b32.xlu1 %v566_v7, %s625_s26 }
  0x94   : > { %290 = vrot.lane.b32.xlu0 %v566_v7, %s626_s27  ;;  %299 = vrot.lane.b32.xlu1 %v566_v7, %s627_s28 }
  0x98   : > { %284 = vrot.lane.b32.xlu0 %v566_v7, %s628_s29  ;;  %293 = vrot.lane.b32.xlu1 %v566_v7, %s629_s30 }
  0x9c   : > { %287 = vrot.lane.b32.xlu1 %v566_v7, %s630_s6  ;;  %310 = vperm.xlu0 %606, %v270_v9  }
  0xa0   : > { %305 = vrot.lane.b32.xlu1 %v566_v7, %s631_s7 }
  0xa4   : > { %315 = vperm.xlu1 %607, %v271_v10  }
 0x102   : > { %v303_v11 = vpop.permute.xlu1 %302  ;;  %v297_v13 = vpop.permute.xlu0 %296 }
 0x103   : > { %332 = vmatpush1.bf16.msra.mxu0 %v303_v11 }
 0x104   : > { %333 = vmatprep.subr.bf16.mxu0 %v622_v0 }
 0x106   : > { %v300_v12 = vpop.permute.xlu1 %299  ;;  %v291_v15 = vpop.permute.xlu0 %290 }
 0x107   : > { %334 = vmatpush1.bf16.msra.mxu0 %v300_v12 }
 0x108   : > { %335 = vmatprep.subr.bf16.mxu0 %v622_v0 }
 0x10a   : > { %v294_v14 = vpop.permute.xlu1 %293  ;;  %v285_v17 = vpop.permute.xlu0 %284 }
 0x10b   : > { %336 = vmatpush1.bf16.msra.mxu0 %v297_v13 }
 0x10c   : > { %337 = vmatprep.subr.bf16.mxu0 %v622_v0 }
 0x10e   : > { %v288_v16 = vpop.permute.xlu1 %287 }
 0x10f   : > { %338 = vmatpush1.bf16.msra.mxu0 %v294_v14 }
 0x110   : > { %339 = vmatprep.subr.bf16.mxu0 %v622_v0 }
 0x112   : > { %v306_v18 = vpop.permute.xlu1 %305 }
 0x113   : > { %340 = vmatpush1.bf16.msra.mxu0 %v291_v15 }
 0x114   : > { %341 = vmatprep.subr.bf16.mxu0 %v622_v0 }
 0x117   : > { %342 = vmatpush1.bf16.msra.mxu0 %v288_v16  ;;  %v311_v28 = vpop.permute.xlu0 %310 }
 0x118   : > { %343 = vmatprep.subr.bf16.mxu0 %v622_v0 }
 0x11b   : > { %344 = vmatpush1.bf16.msra.mxu0 %v285_v17 }
 0x11c   : > { %345 = vmatprep.subr.bf16.mxu0 %v622_v0 }
 0x11f   : > { %346 = vmatpush1.bf16.msra.mxu0 %v566_v7  ;;  %v316_v34 = vpop.permute.xlu1 %315 }
 0x120   : > { %361 = vmatprep.subr.bf16.mxu0 %v622_v0 }
 0x123   : > { %362 = vmatpush2.bf16.msra.mxu0 %v306_v18 }
 0x126   : > { %364 = vmatmul.mubr.bf16.vlgmr.msra.gmra.mxu0 %v608_v19 }
 0x1e6   : > { %v365_v30 = vpop.f32.mrf.mxu0 }
 0x1e7   : > { %v366_v31 = vadd.f32 %v365_v30, %v311_v28 }
 0x1e8   : > { %v367_v33 = vpop.f32.mrf.mxu0 }
 0x1e9   : > { %v372_v35 = vmax.f32 %v366_v31, 0.0 }
 0x1ea   : > { %v368_v36 = vpop.f32.mrf.mxu0 }
 0x1eb   : > { %v376_v37 = vsel %vm727_vm7, %v372_v35, 0.0  ;;  %v369_v38 = vadd.f32 %v368_v36, %v316_v34 }
 0x1ec   : > { %v582_v39 = vpack.c.bf16 %v376_v37, %v376_v37  ;;  %v370_v40 = vpop.f32.mrf.mxu0 }
 0x1ed   : > { %v373_v41 = vmax.f32 %v369_v38, 0.0 }
 0x1ee   : > { %384 = vrot.lane.b32.xlu1 %v582_v39, %s623_s24 }
 0x1ef   : > { %v377_v42 = vsel %vm727_vm7, %v373_v41, 0.0 }
 0x1f0   : > { %v583_v43 = vpack.c.bf16 %v377_v42, %v377_v42 }
 0x1f2   : > { %386 = vrot.lane.b32.xlu0 %v583_v43, %s623_s24 }
 0x260   : > { %v385_v44 = vpop.permute.xlu1 %384 }
 0x261   : > { %390 = vst.msk [vmem:[#allocation3] sm:$0xf] %vm242_vm2, %v385_v44 }
 0x264   : > { %v387_v45 = vpop.permute.xlu0 %386 }
 0x265   : > { %391 = vst.msk [vmem:[#allocation3 + $0x4] sm:$0xf] %vm242_vm2, %v387_v45 }
 0x268   : > { %v392_v46 = vld [vmem:[#allocation3] sm:$0xf] }
 0x26c   : > { %v393_v47 = vld [vmem:[#allocation3 + $0x4] sm:$0xf] }
 0x26d   : > { %v572_v48 = vcombine.low %v392_v46, %v393_v47 }
 0x26f   : > { %415 = vrot.lane.b32.xlu0 %v572_v48, %s627_s28  ;;  %418 = vrot.lane.b32.xlu1 %v572_v48, %s625_s26 }
 0x273   : > { %409 = vrot.lane.b32.xlu0 %v572_v48, %s629_s30  ;;  %412 = vrot.lane.b32.xlu1 %v572_v48, %s624_s25 }
 0x277   : > { %403 = vrot.lane.b32.xlu0 %v572_v48, %s630_s6  ;;  %406 = vrot.lane.b32.xlu1 %v572_v48, %s626_s27 }
 0x27b   : > { %421 = vrot.lane.b32.xlu0 %v572_v48, %s631_s7  ;;  %400 = vrot.lane.b32.xlu1 %v572_v48, %s628_s29  ;;  %s224_s29 = scalar_lea.vmem %s785_s5, %s580_s20 }
 0x27f   : > { %431 = vperm.xlu0 %606, %v275_v49   ;;  %426 = vperm.xlu1 %607, %v274_v50  }
 0x2e1   : > { %v419_v52 = vpop.permute.xlu1 %418  ;;  %v416_v53 = vpop.permute.xlu0 %415 }
 0x2e2   : > { %447 = vmatpush1.bf16.msra.mxu1 %v419_v52 }
 0x2e3   : > { %448 = vmatprep.subr.bf16.mxu1 %v622_v0 }
 0x2e5   : > { %v413_v54 = vpop.permute.xlu1 %412  ;;  %v410_v55 = vpop.permute.xlu0 %409 }
 0x2e6   : > { %449 = vmatpush1.bf16.msra.mxu1 %v416_v53 }
 0x2e7   : > { %450 = vmatprep.subr.bf16.mxu1 %v622_v0 }
 0x2e9   : > { %v407_v56 = vpop.permute.xlu1 %406  ;;  %v404_v57 = vpop.permute.xlu0 %403 }
 0x2ea   : > { %451 = vmatpush1.bf16.msra.mxu1 %v413_v54 }
 0x2eb   : > { %452 = vmatprep.subr.bf16.mxu1 %v622_v0 }
 0x2ed   : > { %v401_v58 = vpop.permute.xlu1 %400  ;;  %v422_v59 = vpop.permute.xlu0 %421 }
 0x2ee   : > { %453 = vmatpush1.bf16.msra.mxu1 %v410_v55 }
 0x2ef   : > { %454 = vmatprep.subr.bf16.mxu1 %v622_v0 }
 0x2f2   : > { %455 = vmatpush1.bf16.msra.mxu1 %v407_v56 }
 0x2f3   : > { %456 = vmatprep.subr.bf16.mxu1 %v622_v0 }
 0x2f6   : > { %457 = vmatpush1.bf16.msra.mxu1 %v404_v57 }
 0x2f7   : > { %458 = vmatprep.subr.bf16.mxu1 %v622_v0 }
 0x2fa   : > { %459 = vmatpush1.bf16.msra.mxu1 %v401_v58  ;;  %v427_v61 = vpop.permute.xlu1 %426  ;;  %v432_v3 = vpop.permute.xlu0 %431 }
 0x2fb   : > { %460 = vmatprep.subr.bf16.mxu1 %v622_v0 }
 0x2fe   : > { %461 = vmatpush1.bf16.msra.mxu1 %v572_v48 }
 0x2ff   : > { %476 = vmatprep.subr.bf16.mxu1 %v622_v0 }
 0x302   : > { %477 = vmatpush2.bf16.msra.mxu1 %v422_v59 }
 0x305   : > { %479 = vmatmul.mubr.bf16.vlgmr.msra.gmra.mxu1 %v611_v60 }
 0x3c5   : > { %v480_v62 = vpop.f32.mrf.mxu1 }
 0x3c6   : > { %v481_v63 = vadd.f32 %v480_v62, %v427_v61 }
 0x3c7   : > { %v482_v1 = vpop.f32.mrf.mxu1 }
 0x3c8   : > { %v487_v2 = vmax.f32 %v481_v63, 0.0 }
 0x3c9   : > { %v483_v4 = vpop.f32.mrf.mxu1 }
 0x3ca   : > { %v489_v0 = vsel %vm727_vm7, %v487_v2, 0.0  ;;  %v484_v5 = vadd.f32 %v483_v4, %v432_v3 }
 0x3cb   : > { %v584_v6 = vpack.c.bf16 %v489_v0, %v489_v0  ;;  %v485_v7 = vpop.f32.mrf.mxu1 }
 0x3cc   : > { %v488_v8 = vmax.f32 %v484_v5, 0.0 }
 0x3cd   : > { %500 = vst.msk [vmem:[%s224_s29] sm:$0xf] %vm499_vm8, %v584_v6 }
 0x3ce   : > { %v490_v9 = vsel %vm727_vm7, %v488_v8, 0.0 }
 0x3cf   : > { %v585_v10 = vpack.c.bf16 %v490_v9, %v490_v9 }
 0x3d1   : > { %501 = vst.msk [vmem:[%s224_s29 + $0x4] sm:$0xf] %vm499_vm8, %v585_v10 }
 0x3d2 PF: > { %s15_s18 = sadd.s32 1, %s620_s18  }
 0x3d3   : > { %p12_p4 = scmp.ge.s32.totalorder %s15_s18, 4  }
 0x3d5   :  { %14 = sbr.rel (!%p12_p4) target bundleno = 1 (0x1), region = 70 }

// kernel: featurenet_forward.6
= control target key start
LH: loop header
LB: loop body
LE: loop exit
PB: predicated region body
PF: predicated region fallthrough
CT: control target
= control target key end

     0   :  { %s552_s12 = smov 0   ;;  %s642_s0 = inlined_call_operand.vmem [shape: bf16[2,4,8,108], index: 0, kind: input, shape index: {}]   ;;  %s643_s1 = inlined_call_operand.vmem [shape: bf16[16,200], index: 1, kind: input, shape index: {}]   ;;  %s644_s2 = inlined_call_operand.vmem [shape: f32[16,1], index: 2, kind: input, shape index: {}]   ;;  %s645_s3 = inlined_call_operand.vmem [shape: bf16[2,16,80], index: 3, kind: output, shape index: {}]  }
   0x1 LB: > { %s456_s13 = sadd.s32 4294967295, %s519_s12   ;;  %p460_p0 = scmp.ge.s32.totalorder %s519_s12, 1  ;;  %s519_s12 = sphi %s552_s12, %s13_s12  }
   0x2   : > { %p137_p1 = scmp.lt.s32.totalorder %s519_s12, 3 }
   0x4   : > { %p138_p2 = pnand %p460_p0, %p137_p1 }
   0x5   : > { %p161_p3 = scmp.lt.s32.totalorder (!%p138_p2), %s456_s13, 1  ;;  %s521_s18 = smov (!%p138_p2), 118  }
   0x6   : > { %141 = sbr.rel (%p138_p2) target bundleno = 472 (0x1d8), region = 32  ;;  %s522_s19 = smov (!%p138_p2), 117  }
   0x7   : > { %s524_s20 = smov (!%p138_p2), 119   ;;  %s525_s21 = smov (!%p138_p2), 1  }
   0x8   : > { %s526_s22 = smov (!%p138_p2), 127   ;;  %s527_s23 = smov (!%p138_p2), 107  }
   0x9   : > { %s528_s24 = smov (!%p138_p2), 108   ;;  %s529_s25 = smov (!%p138_p2), 106  }
   0xa   : > { %s530_s26 = smov (!%p138_p2), 116   ;;  %s531_s27 = smov (!%p138_p2), 126  }
   0xb   : > { %s647_s13 = smov (!%p161_p3, %s456_s13), 1  ;;  %v523_v4 = vmov 0   ;;  %vm237_vm0 = vcmask 1043456   ;;  %v512_v13 = vld [vmem:[%s643_s1 + $0x4] ss:$8 sps:$4 sm:$0xff]   ;;  %vm336_vm1 = vcmask 588800   ;;  %v176_v50 = vlaneseq }
   0xc   : > { %s479_s14 = sshll.u32 %s647_s13, 4  ;;  %343 = vmatprep.subr.bf16.mxu0 %v523_v4  ;;  %504 = vset.pattern.permute.xlu1 %v523_v4  ;;  %v174_v19 = vld [vmem:[%s644_s2] sm:$0xff]  ;;  %v175_v23 = vld [vmem:[%s644_s2 + $0x8] sm:$0xff]  ;;  %s480_s9 = sshll.u32 %s647_s13, 3  ;;  %vm398_vm6 = vcmask 650240  }
   0xd   : > { %s165_s17 = scalar_lea.vmem %s642_s0, %s479_s14  ;;  %505 = vset.pattern.permute.xlu0 %v523_v4  ;;  %474 = vmatprep.mubr.msk.bf16.mxu0 %vm336_vm1, %v512_v13  ;;  %v510_v49 = vld [vmem:[%s643_s1] ss:$8 sps:$4 sm:$0xff]   ;;  %v177_v51 = vand.u32 127, %v176_v50  ;;  %s170_s14 = scalar_lea.vmem %s645_s3, %s480_s9 }
   0xe   : > { %v467_v0 = vld [vmem:[%s165_s17 + $0xc] sm:$0xf]  ;;  %v466_v2 = vld [vmem:[%s165_s17 + $0x8] sm:$0xf]  ;;  %v570_v5 = vld [vmem:[%s165_s17 + $0x4] ss:$0 sps:$4 sm:$0xff]  }
   0xf   : > { %v471_v1 = vcombine.low %v467_v0, %v467_v0  ;;  %v470_v3 = vcombine.low %v466_v2, %v466_v2  ;;  %v576_v6 = vld [vmem:[%s165_s17] sm:$0xf]  ;;  %v631_v52 = vmul.u32.u64.low 3435973837, %v177_v51  ;;  %v632_v53 = vmul.u32.u64.high 3435973837, %v177_v51, %v631_v52 }
  0x10   : > { %v468_v7 = vcombine.low %v576_v6, %v576_v6 }
  0x11   : > { %285 = vrot.lane.b32.xlu0 %v471_v1, %s521_s18  ;;  %276 = vrot.lane.b32.xlu1 %v470_v3, %s522_s19  ;;  %v184_v54 = vshrl.u32 %v632_v53, 3 }
  0x13   : > { %v185_v55 = vmul.u32 10, %v184_v54 }
  0x15   : > { %283 = vrot.lane.b32.xlu0 %v471_v1, %s524_s20  ;;  %281 = vrot.lane.b32.xlu1 %v471_v1, %s525_s21  ;;  %v186_v56 = vsub.s32 %v177_v51, %v185_v55 }
  0x17   : > { %vm189_vm2 = vcmp.ne.s32.totalorder %v186_v56, 0  ;;  %vm190_vm3 = vcmp.lt.s32.totalorder %v186_v56, 0  ;;  %v192_v57 = vadd.s32 10, %v186_v56 }
  0x18   : > { %vm191_vm4 = vmand %vm190_vm3, %vm189_vm2 }
  0x19   : > { %272 = vrot.lane.b32.xlu0 %v470_v3, %s524_s20  ;;  %274 = vrot.lane.b32.xlu1 %v470_v3, %s521_s18  ;;  %v193_v59 = vsel %vm191_vm4, %v192_v57, %v186_v56 }
  0x1a   : > { %vm194_vm5 = vcmp.lt.s32.totalorder %v193_v59, 8 }
  0x1d   : > { %270 = vrot.lane.b32.xlu0 %v470_v3, %s526_s22  ;;  %232 = vrot.lane.b32.xlu1 %v570_v5, %s527_s23 }
  0x21   : > { %228 = vrot.lane.b32.xlu0 %v570_v5, %s522_s19  ;;  %230 = vrot.lane.b32.xlu1 %v570_v5, %s528_s24 }
  0x25   : > { %224 = vrot.lane.b32.xlu0 %v570_v5, %s526_s22  ;;  %226 = vrot.lane.b32.xlu1 %v570_v5, %s521_s18 }
  0x29   : > { %219 = vrot.lane.b32.xlu0 %v468_v7, %s529_s25  ;;  %215 = vrot.lane.b32.xlu1 %v468_v7, %s528_s24 }
  0x2d   : > { %217 = vrot.lane.b32.xlu0 %v468_v7, %s527_s23  ;;  %211 = vrot.lane.b32.xlu1 %v468_v7, %s522_s19 }
  0x31   : > { %213 = vrot.lane.b32.xlu0 %v468_v7, %s530_s26  ;;  %207 = vrot.lane.b32.xlu1 %v468_v7, %s531_s27 }
  0x35   : > { %209 = vrot.lane.b32.xlu0 %v468_v7, %s521_s18  ;;  %205 = vrot.lane.b32.xlu1 %v468_v7, %s526_s22 }
  0x83   : > { %v286_v8 = vpop.permute.xlu0 %285  ;;  %v277_v9 = vpop.permute.xlu1 %276 }
  0x84   : > { %311 = vrot.lane.b32.xlu0 %v286_v8, %s526_s22 }
  0x87   : > { %v284_v10 = vpop.permute.xlu0 %283  ;;  %v282_v11 = vpop.permute.xlu1 %281 }
  0x88   : > { %v298_v12 = vsel %vm237_vm0, %v467_v0, %v284_v10  ;;  %v295_v14 = vsel %vm237_vm0, %v277_v9, %v282_v11 }
  0x89   : > { %309 = vrot.lane.b32.xlu1 %v298_v12, %s526_s22  ;;  %307 = vrot.lane.b32.xlu0 %v295_v14, %s526_s22 }
  0x8b   : > { %v273_v15 = vpop.permute.xlu0 %272  ;;  %v275_v16 = vpop.permute.xlu1 %274 }
  0x8c   : > { %v292_v17 = vsel %vm237_vm0, %v273_v15, %v275_v16 }
  0x8d   : > { %305 = vrot.lane.b32.xlu1 %v292_v17, %s526_s22 }
  0x8f   : > { %v271_v18 = vpop.permute.xlu0 %270  ;;  %v233_v21 = vpop.permute.xlu1 %232 }
  0x90   : > { %v289_v20 = vsel %vm237_vm0, %v466_v2, %v271_v18  ;;  %v268_v22 = vsel %vm237_vm0, %v233_v21, %v470_v3 }
  0x91   : > { %303 = vrot.lane.b32.xlu0 %v289_v20, %s526_s22  ;;  %344 = vmatpush1.bf16.msra.mxu0 %v268_v22 }
  0x92   : > { %319 = vperm.xlu1 %504, %v174_v19   ;;  %345 = vmatprep.subr.bf16.mxu0 %v523_v4 }
  0x93   : > { %v229_v24 = vpop.permute.xlu0 %228  ;;  %v231_v25 = vpop.permute.xlu1 %230 }
  0x94   : > { %v264_v26 = vsel %vm237_vm0, %v229_v24, %v231_v25 }
  0x95   : > { %324 = vperm.xlu0 %505, %v175_v23   ;;  %346 = vmatpush1.bf16.msra.mxu0 %v264_v26 }
  0x96   : > { %347 = vmatprep.subr.bf16.mxu0 %v523_v4 }
  0x97   : > { %v225_v27 = vpop.permute.xlu0 %224  ;;  %v227_v28 = vpop.permute.xlu1 %226 }
  0x98   : > { %v260_v29 = vsel %vm237_vm0, %v225_v27, %v227_v28 }
  0x99   : > { %348 = vmatpush1.bf16.msra.mxu0 %v260_v29 }
  0x9a   : > { %349 = vmatprep.subr.bf16.mxu0 %v523_v4 }
  0x9b   : > { %v220_v30 = vpop.permute.xlu0 %219  ;;  %v216_v32 = vpop.permute.xlu1 %215 }
  0x9c   : > { %v256_v31 = vsel %vm237_vm0, %v220_v30, %v570_v5 }
  0x9d   : > { %350 = vmatpush1.bf16.msra.mxu0 %v256_v31 }
  0x9e   : > { %351 = vmatprep.subr.bf16.mxu0 %v523_v4 }
  0x9f   : > { %v218_v33 = vpop.permute.xlu0 %217  ;;  %v212_v35 = vpop.permute.xlu1 %211 }
  0xa0   : > { %v252_v34 = vsel %vm237_vm0, %v216_v32, %v218_v33 }
  0xa1   : > { %352 = vmatpush1.bf16.msra.mxu0 %v252_v34 }
  0xa2   : > { %353 = vmatprep.subr.bf16.mxu0 %v523_v4 }
  0xa3   : > { %v214_v36 = vpop.permute.xlu0 %213  ;;  %v208_v38 = vpop.permute.xlu1 %207 }
  0xa4   : > { %v248_v37 = vsel %vm237_vm0, %v212_v35, %v214_v36 }
  0xa5   : > { %354 = vmatpush1.bf16.msra.mxu0 %v248_v37 }
  0xa6   : > { %355 = vmatprep.subr.bf16.mxu0 %v523_v4 }
  0xa7   : > { %v210_v39 = vpop.permute.xlu0 %209  ;;  %v206_v41 = vpop.permute.xlu1 %205 }
  0xa8   : > { %v244_v40 = vsel %vm237_vm0, %v208_v38, %v210_v39  ;;  %v240_v42 = vsel %vm237_vm0, %v576_v6, %v206_v41 }
  0xa9   : > { %356 = vmatpush1.bf16.msra.mxu0 %v244_v40 }
  0xaa   : > { %357 = vmatprep.subr.bf16.mxu0 %v523_v4 }
  0xad   : > { %358 = vmatpush1.bf16.msra.mxu0 %v240_v42 }
  0xae   : > { %365 = vmatprep.subr.bf16.mxu0 %v523_v4 }
  0xf6   : > { %v312_v43 = vpop.permute.xlu0 %311 }
  0xf7   : > { %v341_v44 = vsel %vm237_vm0, %v312_v43, 0 }
  0xf8   : > { %366 = vmatpush2.bf16.msra.mxu0 %v341_v44 }
  0xf9   : > { %367 = vmatprep.subr.bf16.mxu0 %v523_v4 }
  0xfb   : > { %v310_v45 = vpop.permute.xlu1 %309  ;;  %v308_v46 = vpop.permute.xlu0 %307 }
  0xfc   : > { %368 = vmatpush2.bf16.msra.mxu0 %v310_v45 }
  0xfd   : > { %369 = vmatprep.subr.bf16.mxu0 %v523_v4 }
  0xff   : > { %v306_v47 = vpop.permute.xlu1 %305 }
 0x100   : > { %370 = vmatpush2.bf16.msra.mxu0 %v308_v46 }
 0x101   : > { %371 = vmatprep.subr.bf16.mxu0 %v523_v4 }
 0x103   : > { %v304_v48 = vpop.permute.xlu0 %303 }
 0x104   : > { %372 = vmatpush2.bf16.msra.mxu0 %v306_v47 }
 0x105   : > { %373 = vmatprep.subr.bf16.mxu0 %v523_v4 }
 0x108   : > { %374 = vmatpush2.bf16.msra.mxu0 %v304_v48 }
 0x10b   : > { %376 = vmatmul.mubr.bf16.vlgmr.msra.gmra.mxu0 %v510_v49 }
 0x10d   : > { %v320_v58 = vpop.permute.xlu1 %319 }
 0x110   : > { %v325_v63 = vpop.permute.xlu0 %324 }
 0x1cb   : > { %v377_v60 = vpop.f32.mrf.mxu0 }
 0x1cc   : > { %v378_v61 = vadd.f32 %v377_v60, %v320_v58 }
 0x1cd   : > { %v379_v62 = vpop.f32.mrf.mxu0 }
 0x1ce   : > { %v384_v0 = vmax.f32 %v378_v61, 0.0 }
 0x1cf   : > { %v380_v1 = vpop.f32.mrf.mxu0 }
 0x1d0   : > { %v388_v2 = vsel %vm194_vm5, %v384_v0, 0.0  ;;  %v381_v3 = vadd.f32 %v380_v1, %v325_v63 }
 0x1d1   : > { %v481_v4 = vpack.c.bf16 %v388_v2, %v388_v2  ;;  %v382_v5 = vpop.f32.mrf.mxu0 }
 0x1d2   : > { %v385_v6 = vmax.f32 %v381_v3, 0.0 }
 0x1d3   : > { %399 = vst.msk [vmem:[%s170_s14] sm:$0xf] %vm398_vm6, %v481_v4 }
 0x1d4   : > { %v389_v7 = vsel %vm194_vm5, %v385_v6, 0.0 }
 0x1d5   : > { %v482_v8 = vpack.c.bf16 %v389_v7, %v389_v7 }
 0x1d7   : > { %400 = vst.msk [vmem:[%s170_s14 + $0x4] sm:$0xf] %vm398_vm6, %v482_v8 }
 0x1d8 PF: > { %s13_s12 = sadd.s32 1, %s519_s12  }
 0x1d9   : > { %p10_p4 = scmp.ge.s32.totalorder %s13_s12, 4  }
 0x1db   :  { %12 = sbr.rel (!%p10_p4) target bundleno = 1 (0x1), region = 65 }

// kernel: featurenet_forward.8
= control target key start
LH: loop header
LB: loop body
LE: loop exit
PB: predicated region body
PF: predicated region fallthrough
CT: control target
= control target key end

     0   :  { %s711_s12 = smov 0   ;;  %s842_s0 = inlined_call_operand.vmem [shape: bf16[2,4,16,44], index: 0, kind: input, shape index: {}]   ;;  %s843_s1 = inlined_call_operand.vmem [shape: bf16[32,400], index: 1, kind: input, shape index: {}]   ;;  %s844_s2 = inlined_call_operand.vmem [shape: f32[32,1], index: 2, kind: input, shape index: {}]   ;;  %s845_s3 = inlined_call_operand.vmem [shape: bf16[2,32,24], index: 3, kind: output, shape index: {}]  }
   0x1 LB: > { %s564_s13 = sadd.s32 4294967295, %s678_s12   ;;  %p568_p0 = scmp.ge.s32.totalorder %s678_s12, 1  ;;  %s678_s12 = sphi %s711_s12, %s13_s12  }
   0x2   : > { %p137_p1 = scmp.lt.s32.totalorder %s678_s12, 3 }
   0x4   : > { %p138_p2 = pnand %p568_p0, %p137_p1 }
   0x5   : > { %p161_p3 = scmp.lt.s32.totalorder (!%p138_p2), %s564_s13, 1  ;;  %s680_s18 = smov (!%p138_p2), 123  }
   0x6   : > { %141 = sbr.rel (%p138_p2) target bundleno = 496 (0x1f0), region = 32  ;;  %s681_s19 = smov (!%p138_p2), 121  }
   0x7   : > { %s682_s20 = smov (!%p138_p2), 1   ;;  %s683_s21 = smov (!%p138_p2), 122  }
   0x8   : > { %s684_s22 = smov (!%p138_p2), 127   ;;  %s685_s23 = smov (!%p138_p2), 115  }
   0x9   : > { %s686_s24 = smov (!%p138_p2), 116   ;;  %s688_s25 = smov (!%p138_p2), 120  }
   0xa   : > { %s689_s30 = smov (!%p138_p2), 126   ;;  %s690_s4 = smov (!%p138_p2), 114  }
   0xb   : > { %s849_s13 = smov (!%p161_p3, %s564_s13), 1  ;;  %v687_v4 = vmov 0   ;;  %v662_v14 = vld [vmem:[%s843_s1 + $0x4] ss:$16 sps:$4 sm:$0xff]   ;;  %v665_v17 = vld [vmem:[%s843_s1 + $0xc] ss:$16 sps:$4 sm:$0xff]   ;;  %v184_v45 = vlaneseq }
   0xc   : > { %s599_s14 = sshll.u32 %s849_s13, 5  ;;  %429 = vmatprep.subr.bf16.mxu1 %v687_v4  ;;  %654 = vset.pattern.permute.xlu0 %v687_v4  ;;  %vm373_vm0 = vcmask 130048   ;;  %v180_v21 = vld [vmem:[%s844_s2] sm:$0xff]  ;;  %v181_v22 = vld [vmem:[%s844_s2 + $0x8] sm:$0xff]  ;;  %v182_v23 = vld [vmem:[%s844_s2 + $0x10] sm:$0xff]  ;;  %s600_s27 = sshll.u32 %s849_s13, 4 }
   0xd   : > { %s165_s17 = scalar_lea.vmem %s842_s0, %s599_s14  ;;  %655 = vset.pattern.permute.xlu1 %v687_v4  ;;  %412 = vmatprep.mubr.bf16.mxu0 %v662_v14  ;;  %v183_v24 = vld [vmem:[%s844_s2 + $0x18] sm:$0xff]  ;;  %v660_v38 = vld [vmem:[%s843_s1] ss:$16 sps:$4 sm:$0xff]   ;;  %v666_v40 = vld [vmem:[%s843_s1 + $0x24] ss:$16 sps:$4 sm:$0xff]   ;;  %v185_v46 = vand.u32 127, %v184_v45 }
   0xe   : > { %v656_v0 = vld [vmem:[%s165_s17 + $0x18] sm:$0xff]   ;;  %v657_v1 = vld [vmem:[%s165_s17 + $0x10] sm:$0xff]   ;;  %v728_v2 = vld [vmem:[%s165_s17] sm:$0xff]   ;;  %591 = vmatprep.mubr.msk.bf16.mxu1 %vm373_vm0, %v665_v17  ;;  %vm504_vm5 = vcmask 191488  }
   0xf   : > { %286 = vrot.lane.b32.xlu0 %v656_v0, %s680_s18  ;;  %277 = vrot.lane.b32.xlu1 %v657_v1, %s681_s19  ;;  %v732_v3 = vld [vmem:[%s165_s17 + $0x8] sm:$0xff]   ;;  %v668_v43 = vld [vmem:[%s843_s1 + $0x20] ss:$16 sps:$4 sm:$0xff]   ;;  %v815_v47 = vmul.u32.u64.low 2863311531, %v185_v46  ;;  %v816_v48 = vmul.u32.u64.high 2863311531, %v185_v46, %v815_v47 }
  0x10   : > { %605 = vmatprep.subr.bf16.mxu0 %v657_v1  ;;  %v663_v41 = vld [vmem:[%s843_s1 + $0x8] ss:$16 sps:$4 sm:$0xff]   ;;  %v669_v42 = vld [vmem:[%s843_s1 + $0x2c] ss:$16 sps:$4 sm:$0xff]  }
  0x11   : > { %v671_v44 = vld [vmem:[%s843_s1 + $0x28] ss:$16 sps:$4 sm:$0xff]   ;;  %v192_v49 = vshrl.u32 %v816_v48, 2 }
  0x13   : > { %284 = vrot.lane.b32.xlu0 %v656_v0, %s682_s20  ;;  %275 = vrot.lane.b32.xlu1 %v657_v1, %s683_s21  ;;  %v193_v50 = vmul.u32 6, %v192_v49 }
  0x15   : > { %v194_v51 = vsub.s32 %v185_v46, %v193_v50 }
  0x17   : > { %273 = vrot.lane.b32.xlu0 %v657_v1, %s680_s18  ;;  %271 = vrot.lane.b32.xlu1 %v657_v1, %s684_s22  ;;  %vm197_vm1 = vcmp.ne.s32.totalorder %v194_v51, 0  ;;  %vm198_vm2 = vcmp.lt.s32.totalorder %v194_v51, 0  ;;  %v200_v53 = vadd.s32 6, %v194_v51 }
  0x18   : > { %vm199_vm3 = vmand %vm198_vm2, %vm197_vm1 }
  0x19   : > { %v201_v60 = vsel %vm199_vm3, %v200_v53, %v194_v51 }
  0x1a   : > { %vm820_vm4 = vcmp.lt.s32.totalorder %v201_v60, 4 }
  0x1b   : > { %288 = vrot.lane.b32.xlu0 %v656_v0, %s683_s21  ;;  %238 = vrot.lane.b32.xlu1 %v728_v2, %s685_s23 }
  0x1f   : > { %235 = vrot.lane.b32.xlu0 %v728_v2, %s686_s24  ;;  %262 = vrot.lane.b32.xlu1 %v732_v3, %s685_s23 }
  0x23   : > { %259 = vrot.lane.b32.xlu0 %v732_v3, %s686_s24  ;;  %300 = vrot.lane.b32.xlu1 %v656_v0, %s684_s22 }
  0x27   : > { %232 = vrot.lane.b32.xlu1 %v728_v2, %s688_s25 }
  0x2b   : > { %256 = vrot.lane.b32.xlu1 %v732_v3, %s681_s19 }
  0x2f   : > { %226 = vrot.lane.b32.xlu1 %v728_v2, %s683_s21 }
  0x81   : > { %v287_v5 = vpop.permute.xlu0 %286  ;;  %v278_v6 = vpop.permute.xlu1 %277 }
  0x82   : > { %302 = vrot.lane.b32.xlu0 %v287_v5, %s684_s22  ;;  %296 = vrot.lane.b32.xlu1 %v278_v6, %s684_s22 }
  0x85   : > { %v285_v7 = vpop.permute.xlu0 %284  ;;  %v276_v8 = vpop.permute.xlu1 %275 }
  0x86   : > { %229 = vrot.lane.b32.xlu0 %v728_v2, %s681_s19  ;;  %250 = vrot.lane.b32.xlu1 %v732_v3, %s684_s22 }
  0x89   : > { %v274_v9 = vpop.permute.xlu0 %273  ;;  %v753_v10 = vpop.permute.xlu1 %271 }
  0x8a   : > { %298 = vrot.lane.b32.xlu0 %v285_v7, %s684_s22  ;;  %292 = vrot.lane.b32.xlu1 %v274_v9, %s684_s22 }
  0x8d   : > { %v289_v11 = vpop.permute.xlu0 %288  ;;  %v239_v12 = vpop.permute.xlu1 %238 }
  0x8e   : > { %253 = vrot.lane.b32.xlu0 %v732_v3, %s683_s21  ;;  %290 = vrot.lane.b32.xlu1 %v753_v10, %s684_s22 }
  0x8f   : > { %606 = vmatpush3.bf16.msra.mxu0 %v239_v12 }
  0x91   : > { %v236_v13 = vpop.permute.xlu0 %235  ;;  %v263_v15 = vpop.permute.xlu1 %262 }
  0x92   : > { %294 = vrot.lane.b32.xlu0 %v276_v8, %s684_s22  ;;  %304 = vrot.lane.b32.xlu1 %v289_v11, %s684_s22 }
  0x93   : > { %607 = vmatprep.subr.bf16.mxu0 %v263_v15 }
  0x94   : > { %608 = vmatpush3.bf16.msra.mxu0 %v236_v13 }
  0x95   : > { %v260_v16 = vpop.permute.xlu0 %259  ;;  %v301_v18 = vpop.permute.xlu1 %300 }
  0x96   : > { %223 = vrot.lane.b32.xlu0 %v728_v2, %s689_s30  ;;  %609 = vmatprep.subr.bf16.mxu0 %v260_v16  ;;  %s170_s30 = scalar_lea.vmem %s845_s3, %s600_s27 }
  0x97   : > { %322 = vperm.xlu1 %655, %v181_v22  }
  0x99   : > { %v233_v19 = vpop.permute.xlu1 %232 }
  0x9a   : > { %220 = vrot.lane.b32.xlu0 %v728_v2, %s684_s22  ;;  %610 = vmatpush3.bf16.msra.mxu0 %v233_v19 }
  0x9b   : > { %327 = vperm.xlu1 %655, %v182_v23  }
  0x9d   : > { %v257_v20 = vpop.permute.xlu1 %256 }
  0x9e   : > { %241 = vrot.lane.b32.xlu0 %v728_v2, %s690_s4  ;;  %611 = vmatprep.subr.bf16.mxu0 %v257_v20 }
  0xa1   : > { %v227_v25 = vpop.permute.xlu1 %226 }
  0xa2   : > { %317 = vperm.xlu0 %654, %v180_v21  }
  0xa6   : > { %332 = vperm.xlu0 %654, %v183_v24  }
  0xf4   : > { %v303_v26 = vpop.permute.xlu0 %302  ;;  %v297_v28 = vpop.permute.xlu1 %296 }
  0xf5   : > { %430 = vmatpush1.bf16.msra.mxu1 %v303_v26 }
  0xf6   : > { %431 = vmatprep.subr.bf16.mxu1 %v687_v4 }
  0xf8   : > { %v230_v27 = vpop.permute.xlu0 %229  ;;  %v251_v30 = vpop.permute.xlu1 %250 }
  0xf9   : > { %612 = vmatpush3.bf16.msra.mxu0 %v230_v27  ;;  %432 = vmatpush1.bf16.msra.mxu1 %v301_v18 }
  0xfa   : > { %433 = vmatprep.subr.bf16.mxu1 %v687_v4 }
  0xfc   : > { %v299_v29 = vpop.permute.xlu0 %298  ;;  %v293_v33 = vpop.permute.xlu1 %292 }
  0xfd   : > { %434 = vmatpush1.bf16.msra.mxu1 %v299_v29 }
  0xfe   : > { %435 = vmatprep.subr.bf16.mxu1 %v687_v4 }
 0x100   : > { %v254_v31 = vpop.permute.xlu0 %253  ;;  %v291_v35 = vpop.permute.xlu1 %290 }
 0x101   : > { %613 = vmatprep.subr.bf16.mxu0 %v254_v31  ;;  %436 = vmatpush1.bf16.msra.mxu1 %v297_v28 }
 0x102   : > { %614 = vmatpush3.bf16.msra.mxu0 %v227_v25  ;;  %437 = vmatprep.subr.bf16.mxu1 %v687_v4 }
 0x103   : > { %615 = vmatprep.subr.bf16.mxu0 %v251_v30 }
 0x104   : > { %v295_v32 = vpop.permute.xlu0 %294  ;;  %v305_v39 = vpop.permute.xlu1 %304 }
 0x105   : > { %438 = vmatpush1.bf16.msra.mxu1 %v295_v32 }
 0x106   : > { %439 = vmatprep.subr.bf16.mxu1 %v687_v4 }
 0x108   : > { %v224_v34 = vpop.permute.xlu0 %223 }
 0x109   : > { %616 = vmatpush3.bf16.msra.mxu0 %v224_v34  ;;  %440 = vmatpush1.bf16.msra.mxu1 %v293_v33 }
 0x10a   : > { %617 = vmatprep.subr.bf16.mxu0 %v732_v3  ;;  %441 = vmatprep.subr.bf16.mxu1 %v687_v4 }
 0x10c   : > { %v221_v36 = vpop.permute.xlu0 %220 }
 0x10d   : > { %618 = vmatpush3.bf16.msra.mxu0 %v221_v36  ;;  %442 = vmatpush1.bf16.msra.mxu1 %v291_v35 }
 0x10e   : > { %443 = vmatprep.subr.bf16.mxu1 %v687_v4 }
 0x110   : > { %v242_v37 = vpop.permute.xlu0 %241 }
 0x111   : > { %619 = vmatprep.subr.bf16.mxu0 %v242_v37  ;;  %444 = vmatpush1.bf16.msra.mxu1 %v753_v10 }
 0x112   : > { %620 = vmatpush3.bf16.msra.mxu0 %v728_v2  ;;  %459 = vmatprep.subr.bf16.mxu1 %v687_v4  ;;  %v323_v59 = vpop.permute.xlu1 %322 }
 0x115   : > { %413 = vmatmul.mubr.bf16.vlgmr.msra.gmra.mxu0 %v660_v38  ;;  %460 = vmatpush2.bf16.msra.mxu1 %v305_v39 }
 0x116   : > { %420 = vmatprep.mubr.bf16.mxu0 %v666_v40  ;;  %v328_v9 = vpop.permute.xlu1 %327 }
 0x118   : > { %462 = vmatmul.mubr.bf16.vlgmr.msra.gmra.mxu1 %v663_v41 }
 0x119   : > { %592 = vmatprep.mubr.msk.bf16.mxu1 %vm373_vm0, %v669_v42 }
 0x11d   : > { %421 = vmatmul.mubr.bf16.gmra.mxu0 %v668_v43  ;;  %v318_v55 = vpop.permute.xlu0 %317 }
 0x120   : > { %470 = vmatmul.mubr.bf16.gmra.mxu1 %v671_v44 }
 0x121   : > { %v333_v25 = vpop.permute.xlu0 %332 }
 0x1d5   : > { %v621_v52 = vpop.f32.mrf.mxu0 }
 0x1d7   : > { %v622_v54 = vpop.f32.mrf.mxu0 }
 0x1d8   : > { %v623_v56 = vadd.f32 %v622_v54, %v621_v52  ;;  %v463_v57 = vpop.f32.mrf.mxu1 }
 0x1d9   : > { %v624_v58 = vpop.f32.mrf.mxu0 }
 0x1da   : > { %v415_v61 = vadd.f32 %v623_v56, %v318_v55  ;;  %v465_v62 = vpop.f32.mrf.mxu1 }
 0x1db   : > { %v625_v63 = vpop.f32.mrf.mxu0 }
 0x1dc   : > { %v464_v0 = vadd.f32 %v463_v57, %v415_v61  ;;  %v626_v1 = vadd.f32 %v625_v63, %v624_v58  ;;  %v466_v2 = vpop.f32.mrf.mxu1 }
 0x1dd   : > { %v627_v4 = vpop.f32.mrf.mxu0 }
 0x1de   : > { %v478_v5 = vmax.f32 %v464_v0, 0.0  ;;  %v418_v6 = vadd.f32 %v626_v1, %v323_v59  ;;  %v468_v7 = vpop.f32.mrf.mxu1 }
 0x1df   : > { %v628_v8 = vpop.f32.mrf.mxu0 }
 0x1e0   : > { %v484_v10 = vsel %vm820_vm4, %v478_v5, 0.0  ;;  %v467_v11 = vadd.f32 %v466_v2, %v418_v6  ;;  %v629_v12 = vadd.f32 %v628_v8, %v627_v4  ;;  %v471_v13 = vpop.f32.mrf.mxu1 }
 0x1e1   : > { %v601_v14 = vpack.c.bf16 %v484_v10, %v484_v10  ;;  %v630_v15 = vpop.f32.mrf.mxu0 }
 0x1e2   : > { %v479_v16 = vmax.f32 %v467_v11, 0.0  ;;  %v423_v17 = vadd.f32 %v629_v12, %v328_v9  ;;  %v473_v18 = vpop.f32.mrf.mxu1 }
 0x1e3   : > { %505 = vst.msk [vmem:[%s170_s30] sm:$0xf] %vm504_vm5, %v601_v14  ;;  %v631_v19 = vpop.f32.mrf.mxu0 }
 0x1e4   : > { %v485_v20 = vsel %vm820_vm4, %v479_v16, 0.0  ;;  %v472_v21 = vadd.f32 %v471_v13, %v423_v17  ;;  %v632_v22 = vadd.f32 %v631_v19, %v630_v15  ;;  %v474_v23 = vpop.f32.mrf.mxu1 }
 0x1e5   : > { %v602_v24 = vpack.c.bf16 %v485_v20, %v485_v20 }
 0x1e6   : > { %v480_v26 = vmax.f32 %v472_v21, 0.0  ;;  %v426_v27 = vadd.f32 %v632_v22, %v333_v25  ;;  %v476_v28 = vpop.f32.mrf.mxu1 }
 0x1e7   : > { %506 = vst.msk [vmem:[%s170_s30 + $0x4] sm:$0xf] %vm504_vm5, %v602_v24 }
 0x1e8   : > { %v486_v29 = vsel %vm820_vm4, %v480_v26, 0.0  ;;  %v475_v30 = vadd.f32 %v474_v23, %v426_v27 }
 0x1e9   : > { %v603_v31 = vpack.c.bf16 %v486_v29, %v486_v29 }
 0x1ea   : > { %v481_v32 = vmax.f32 %v475_v30, 0.0 }
 0x1eb   : > { %507 = vst.msk [vmem:[%s170_s30 + $0x8] sm:$0xf] %vm504_vm5, %v603_v31 }
 0x1ec   : > { %v487_v33 = vsel %vm820_vm4, %v481_v32, 0.0 }
 0x1ed   : > { %v604_v34 = vpack.c.bf16 %v487_v33, %v487_v33 }
 0x1ef   : > { %508 = vst.msk [vmem:[%s170_s30 + $0xc] sm:$0xf] %vm504_vm5, %v604_v34 }
 0x1f0 PF: > { %s13_s12 = sadd.s32 1, %s678_s12  }
 0x1f1   : > { %p10_p4 = scmp.ge.s32.totalorder %s13_s12, 4  }
 0x1f3   :  { %12 = sbr.rel (!%p10_p4) target bundleno = 1 (0x1), region = 65 }

// kernel: featurenet_forward.9
= control target key start
LH: loop header
LB: loop body
LE: loop exit
PB: predicated region body
PF: predicated region fallthrough
CT: control target
= control target key end

     0   :  { %s1058_s18 = smov 0   ;;  %s1255_s0 = inlined_call_operand.vmem [shape: bf16[2,32,24], index: 0, kind: input, shape index: {}]   ;;  %s1256_s1 = inlined_call_operand.vmem [shape: bf16[32,288], index: 1, kind: input, shape index: {}]   ;;  %s1257_s2 = inlined_call_operand.vmem [shape: f32[32,1], index: 2, kind: input, shape index: {}]   ;;  %s1258_s3 = inlined_call_operand.vmem [shape: bf16[32,288], index: 3, kind: input, shape index: {}]   ;;  %s1259_s4 = inlined_call_operand.vmem [shape: f32[32,1], index: 4, kind: input, shape index: {}]   ;;  %s1260_s5 = inlined_call_operand.vmem [shape: f32[2,32,24], index: 5, kind: output, shape index: {}]  }
   0x1 LB: > { %s851_s19 = sadd.s32 4294967295, %s1016_s18   ;;  %p855_p0 = scmp.ge.s32.totalorder %s1016_s18, 1  ;;  %s1016_s18 = sphi %s1058_s18, %s15_s18  }
   0x2   : > { %p187_p1 = scmp.lt.s32.totalorder %s1016_s18, 3 }
   0x4   : > { %p188_p2 = pnand %p855_p0, %p187_p1 }
   0x5   : > { %p1066_p3 = scmp.lt.s32.totalorder (!%p188_p2), %s851_s19, 1  ;;  %s1019_s25 = smov (!%p188_p2), 7  }
   0x6   : > { %191 = sbr.rel (%p188_p2) target bundleno = 996 (0x3e4), region = 40  ;;  %s1020_s26 = smov (!%p188_p2), 115  }
   0x7   : > { %s1021_s27 = smov (!%p188_p2), 122   ;;  %s1022_s28 = smov (!%p188_p2), 126  }
   0x8   : > { %s1023_s29 = smov (!%p188_p2), 116   ;;  %s1024_s30 = smov (!%p188_p2), 127  }
   0x9   : > { %s1025_s6 = smov (!%p188_p2), 120   ;;  %s1026_s11 = smov (!%p188_p2), 121  }
   0xa   : > { %s1027_s12 = smov (!%p188_p2), 114  }
   0xb   : > { %vm226_vm0 = vcmask 52224   ;;  %vm231_vm1 = vcmask 355576   ;;  %v1018_v0 = vmov 0   ;;  %s1265_s19 = smov (!%p1066_p3, %s851_s19), 1  ;;  %vm256_vm2 = vcmask 248888   ;;  %v299_v17 = vld [vmem:[%s1257_s2 + $0x18] sm:$0xff] }
   0xc   : > { %229 = vst.msk [vmem:[#allocation2 + $0x8] sm:$0xf] %vm226_vm0, %v1018_v0  ;;  %227 = vst.msk [vmem:[#allocation2] sm:$0xf] %vm226_vm0, %v1018_v0  ;;  %993 = vset.pattern.permute.xlu1 %v1018_v0  ;;  %992 = vset.pattern.permute.xlu0 %v1018_v0  ;;  %s886_s21 = sshll.u32 %s1265_s19, 4  ;;  %vm426_vm3 = vcmask 261120   ;;  %v269_v41 = vlaneseq }
   0xd   : > { %228 = vst.msk [vmem:[#allocation2 + $0x4] sm:$0xf] %vm226_vm0, %v1018_v0  ;;  %230 = vst.msk [vmem:[#allocation2 + $0xc] sm:$0xf] %vm226_vm0, %v1018_v0  ;;  %s219_s24 = scalar_lea.vmem %s1255_s0, %s886_s21  ;;  %v996_v15 = vld [vmem:[%s1256_s1 + $0x4] ss:$12 sps:$4 sm:$0xff]  }
   0xe   : > { %261 = vst.msk [vmem:[#allocation3] sm:$0xf] %vm226_vm0, %v1018_v0  ;;  %262 = vst.msk [vmem:[#allocation3 + $0x4] sm:$0xf] %vm226_vm0, %v1018_v0  ;;  %v238_v1 = vld [vmem:[%s219_s24 + $0x8] sm:$0xf]  ;;  %465 = vmatprep.mubr.bf16.mxu0 %v996_v15 }
   0xf   : > { %263 = vst.msk [vmem:[#allocation3 + $0x8] sm:$0xf] %vm226_vm0, %v1018_v0  ;;  %264 = vst.msk [vmem:[#allocation3 + $0xc] sm:$0xf] %vm226_vm0, %v1018_v0  ;;  %v236_v2 = vld [vmem:[%s219_s24] sm:$0xf]  ;;  %248 = vrot.lane.b32.xlu0 %v238_v1, %s1019_s25 }
  0x10   : > { %234 = vst.msk [vmem:[#allocation2 + $0x8] sm:$0xf] %vm231_vm1, %v1018_v0  ;;  %232 = vst.msk [vmem:[#allocation2] sm:$0xf] %vm231_vm1, %v1018_v0  ;;  %244 = vrot.lane.b32.xlu1 %v236_v2, %s1019_s25  ;;  %v239_v3 = vld [vmem:[%s219_s24 + $0xc] sm:$0xf] }
  0x11   : > { %233 = vst.msk [vmem:[#allocation2 + $0x4] sm:$0xf] %vm231_vm1, %v1018_v0  ;;  %235 = vst.msk [vmem:[#allocation2 + $0xc] sm:$0xf] %vm231_vm1, %v1018_v0  ;;  %v237_v4 = vld [vmem:[%s219_s24 + $0x4] sm:$0xf] }
  0x12   : > { %265 = vst.msk [vmem:[#allocation3] sm:$0xf] %vm231_vm1, %v1018_v0  ;;  %266 = vst.msk [vmem:[#allocation3 + $0x4] sm:$0xf] %vm231_vm1, %v1018_v0  ;;  %v997_v16 = vld [vmem:[%s1256_s1 + $0x8] ss:$12 sps:$4 sm:$0xff]  }
  0x13   : > { %267 = vst.msk [vmem:[#allocation3 + $0x8] sm:$0xf] %vm231_vm1, %v1018_v0  ;;  %268 = vst.msk [vmem:[#allocation3 + $0xc] sm:$0xf] %vm231_vm1, %v1018_v0  ;;  %250 = vrot.lane.b32.xlu0 %v239_v3, %s1019_s25  ;;  %960 = vmatprep.mubr.msk.bf16.mxu1 %vm426_vm3, %v997_v16  ;;  %v298_v18 = vld [vmem:[%s1257_s2 + $0x10] sm:$0xff]  ;;  %v296_v19 = vld [vmem:[%s1257_s2] sm:$0xff] }
  0x14   : > { %246 = vrot.lane.b32.xlu1 %v237_v4, %s1019_s25  ;;  %v297_v20 = vld [vmem:[%s1257_s2 + $0x8] sm:$0xff]  ;;  %v1001_v40 = vld [vmem:[%s1256_s1 + $0x18] ss:$12 sps:$4 sm:$0xff]   ;;  %v270_v42 = vand.u32 127, %v269_v41  ;;  %s887_s10 = sshll.u32 %s1265_s19, 5  ;;  %vm791_vm8 = vcmask 195584  }
  0x15   : > { %v994_v36 = vld [vmem:[%s1256_s1] ss:$12 sps:$4 sm:$0xff]   ;;  %v999_v38 = vld [vmem:[%s1256_s1 + $0x1c] ss:$12 sps:$4 sm:$0xff]  }
  0x16   : > { %v998_v39 = vld [vmem:[%s1256_s1 + $0x20] ss:$12 sps:$4 sm:$0xff]   ;;  %v1164_v43 = vmul.u32.u64.low 2863311531, %v270_v42  ;;  %v1165_v44 = vmul.u32.u64.high 2863311531, %v270_v42, %v1164_v43  ;;  %v311_v41 = vld [vmem:[%s1259_s4 + $0x18] sm:$0xff] }
  0x18   : > { %v277_v45 = vshrl.u32 %v1165_v44, 2 }
  0x1a   : > { %v278_v48 = vmul.u32 6, %v277_v45 }
  0x1c   : > { %v279_v55 = vsub.s32 %v270_v42, %v278_v48  ;;  %v310_v42 = vld [vmem:[%s1259_s4 + $0x10] sm:$0xff] }
  0x1e   : > { %vm282_vm4 = vcmp.ne.s32.totalorder %v279_v55, 0  ;;  %vm283_vm5 = vcmp.lt.s32.totalorder %v279_v55, 0  ;;  %v285_v0 = vadd.s32 6, %v279_v55 }
  0x1f   : > { %vm284_vm6 = vmand %vm283_vm5, %vm282_vm4 }
  0x81   : > { %v249_v5 = vpop.permute.xlu0 %248 }
  0x82   : > { %v245_v6 = vpop.permute.xlu1 %244  ;;  %259 = vst.msk [vmem:[#allocation2 + $0x8] sm:$0xf] %vm256_vm2, %v249_v5 }
  0x83   : > { %257 = vst.msk [vmem:[#allocation2] sm:$0xf] %vm256_vm2, %v245_v6 }
  0x85   : > { %v251_v7 = vpop.permute.xlu0 %250 }
  0x86   : > { %v247_v8 = vpop.permute.xlu1 %246  ;;  %260 = vst.msk [vmem:[#allocation2 + $0xc] sm:$0xf] %vm256_vm2, %v251_v7 }
  0x87   : > { %258 = vst.msk [vmem:[#allocation2 + $0x4] sm:$0xf] %vm256_vm2, %v247_v8  ;;  %v286_v8 = vsel %vm284_vm6, %v285_v0, %v279_v55 }
  0x88   : > { %vm1168_vm7 = vcmp.lt.s32.totalorder %v286_v8, 4 }
  0x89   : > { %v314_v9 = vld [vmem:[#allocation2 + $0x8] sm:$0xf] }
  0x8a   : > { %v312_v12 = vld [vmem:[#allocation2] sm:$0xf] }
  0x8d   : > { %v315_v10 = vld [vmem:[#allocation2 + $0xc] sm:$0xf] }
  0x8e   : > { %v1094_v11 = vcombine.low %v314_v9, %v315_v10  ;;  %v313_v13 = vld [vmem:[#allocation2 + $0x4] sm:$0xf] }
  0x8f   : > { %v1100_v14 = vcombine.low %v312_v12, %v313_v13 }
  0x90   : > { %366 = vrot.lane.b32.xlu0 %v1094_v11, %s1020_s26  ;;  %342 = vrot.lane.b32.xlu1 %v1094_v11, %s1021_s27 }
  0x94   : > { %340 = vrot.lane.b32.xlu1 %v1100_v14, %s1021_s27  ;;  %364 = vrot.lane.b32.xlu0 %v1100_v14, %s1020_s26 }
  0x98   : > { %336 = vrot.lane.b32.xlu1 %v1094_v11, %s1022_s28  ;;  %360 = vrot.lane.b32.xlu0 %v1094_v11, %s1023_s29 }
  0x9c   : > { %334 = vrot.lane.b32.xlu1 %v1100_v14, %s1022_s28  ;;  %358 = vrot.lane.b32.xlu0 %v1100_v14, %s1023_s29 }
  0xa0   : > { %330 = vrot.lane.b32.xlu1 %v1094_v11, %s1024_s30  ;;  %354 = vrot.lane.b32.xlu0 %v1094_v11, %s1025_s6 }
  0xa4   : > { %328 = vrot.lane.b32.xlu1 %v1100_v14, %s1024_s30  ;;  %352 = vrot.lane.b32.xlu0 %v1100_v14, %s1025_s6 }
  0xa8   : > { %346 = vrot.lane.b32.xlu1 %v1100_v14, %s1026_s11  ;;  %348 = vrot.lane.b32.xlu0 %v1094_v11, %s1026_s11 }
  0xac   : > { %370 = vrot.lane.b32.xlu1 %v1100_v14, %s1027_s12  ;;  %372 = vrot.lane.b32.xlu0 %v1094_v11, %s1027_s12 }
  0xb0   : > { %393 = vperm.xlu1 %993, %v299_v17   ;;  %388 = vperm.xlu0 %992, %v298_v18  }
  0xb4   : > { %378 = vperm.xlu1 %993, %v296_v19   ;;  %383 = vperm.xlu0 %992, %v297_v20  }
 0x102   : > { %v367_v21 = vpop.permute.xlu0 %366  ;;  %v343_v22 = vpop.permute.xlu1 %342 }
 0x103   : > { %892 = vmatprep.subr.bf16.mxu0 %v367_v21 }
 0x104   : > { %893 = vmatpush3.bf16.msra.mxu0 %v343_v22 }
 0x106   : > { %v365_v23 = vpop.permute.xlu0 %364  ;;  %v341_v24 = vpop.permute.xlu1 %340 }
 0x107   : > { %894 = vmatprep.subr.bf16.mxu0 %v365_v23 }
 0x108   : > { %895 = vmatpush3.bf16.msra.mxu0 %v341_v24 }
 0x10a   : > { %v361_v25 = vpop.permute.xlu0 %360  ;;  %v337_v26 = vpop.permute.xlu1 %336 }
 0x10b   : > { %896 = vmatprep.subr.bf16.mxu0 %v361_v25 }
 0x10c   : > { %897 = vmatpush3.bf16.msra.mxu0 %v337_v26 }
 0x10e   : > { %v359_v27 = vpop.permute.xlu0 %358  ;;  %v335_v28 = vpop.permute.xlu1 %334 }
 0x10f   : > { %898 = vmatprep.subr.bf16.mxu0 %v359_v27 }
 0x110   : > { %899 = vmatpush3.bf16.msra.mxu0 %v335_v28 }
 0x112   : > { %v355_v29 = vpop.permute.xlu0 %354  ;;  %v331_v30 = vpop.permute.xlu1 %330 }
 0x113   : > { %900 = vmatprep.subr.bf16.mxu0 %v355_v29 }
 0x114   : > { %901 = vmatpush3.bf16.msra.mxu0 %v331_v30 }
 0x116   : > { %v353_v31 = vpop.permute.xlu0 %352  ;;  %v329_v32 = vpop.permute.xlu1 %328 }
 0x117   : > { %902 = vmatprep.subr.bf16.mxu0 %v353_v31 }
 0x118   : > { %903 = vmatpush3.bf16.msra.mxu0 %v329_v32 }
 0x11a   : > { %v349_v33 = vpop.permute.xlu0 %348  ;;  %v347_v34 = vpop.permute.xlu1 %346 }
 0x11b   : > { %904 = vmatprep.subr.bf16.mxu0 %v349_v33 }
 0x11c   : > { %905 = vmatpush3.bf16.msra.mxu0 %v1094_v11 }
 0x11d   : > { %906 = vmatprep.subr.bf16.mxu0 %v347_v34 }
 0x11e   : > { %v373_v35 = vpop.permute.xlu0 %372  ;;  %v371_v37 = vpop.permute.xlu1 %370 }
 0x11f   : > { %956 = vmatprep.subr.bf16.mxu1 %v373_v35 }
 0x120   : > { %907 = vmatpush3.bf16.msra.mxu0 %v1100_v14  ;;  %957 = vmatpush3.bf16.msra.mxu1 %v373_v35 }
 0x121   : > { %958 = vmatprep.subr.bf16.mxu1 %v371_v37 }
 0x123   : > { %466 = vmatmul.mubr.bf16.vlgmr.msra.gmra.mxu0 %v994_v36 }
 0x124   : > { %959 = vmatpush3.bf16.msra.mxu1 %v371_v37  ;;  %473 = vmatprep.mubr.bf16.mxu0 %v999_v38  ;;  %v1004_v37 = vld [vmem:[%s1258_s3 + $0x4] ss:$12 sps:$4 sm:$0xff]   ;;  %v1005_v38 = vld [vmem:[%s1258_s3 + $0x8] ss:$12 sps:$4 sm:$0xff]  }
 0x127   : > { %961 = vmatmul.mubr.msk.bf16.vlgmr.msra.gmra.mxu1 %vm426_vm3, %v998_v39  ;;  %v309_v39 = vld [vmem:[%s1259_s4 + $0x8] sm:$0xff] }
 0x128   : > { %721 = vmatprep.mubr.bf16.mxu1 %v1004_v37 }
 0x12b   : > { %474 = vmatmul.mubr.bf16.gmra.mxu0 %v1001_v40  ;;  %v394_v46 = vpop.permute.xlu1 %393  ;;  %v389_v50 = vpop.permute.xlu0 %388  ;;  %v308_v40 = vld [vmem:[%s1259_s4] sm:$0xff] }
 0x12c   : > { %968 = vmatprep.mubr.msk.bf16.mxu0 %vm426_vm3, %v1005_v38 }
 0x12f   : > { %v379_v54 = vpop.permute.xlu1 %378  ;;  %v384_v61 = vpop.permute.xlu0 %383 }
 0x1e3   : > { %v908_v47 = vpop.f32.mrf.mxu0 }
 0x1e5   : > { %v909_v49 = vpop.f32.mrf.mxu0 }
 0x1e6   : > { %v910_v53 = vadd.f32 %v909_v49, %v908_v47 }
 0x1e7   : > { %v911_v51 = vpop.f32.mrf.mxu0  ;;  %v962_v52 = vpop.f32.mrf.mxu1 }
 0x1e8   : > { %v468_v59 = vadd.f32 %v910_v53, %v379_v54 }
 0x1e9   : > { %v912_v56 = vpop.f32.mrf.mxu0  ;;  %v516_v57 = vpop.f32.mrf.mxu1 }
 0x1ea   : > { %v913_v60 = vadd.f32 %v912_v56, %v911_v51  ;;  %v517_v3 = vadd.f32 %v516_v57, %v468_v59 }
 0x1eb   : > { %v914_v58 = vpop.f32.mrf.mxu0  ;;  %v963_v62 = vpop.f32.mrf.mxu1 }
 0x1ec   : > { %v471_v4 = vadd.f32 %v913_v60, %v384_v61  ;;  %v531_v11 = vmax.f32 %v517_v3, 0.0  ;;  %v1007_v60 = vld [vmem:[%s1258_s3 + $0x1c] ss:$12 sps:$4 sm:$0xff]   ;;  %v1006_v61 = vld [vmem:[%s1258_s3 + $0x20] ss:$12 sps:$4 sm:$0xff]  }
 0x1ed   : > { %v915_v63 = vpop.f32.mrf.mxu0  ;;  %v519_v6 = vpop.f32.mrf.mxu1 }
 0x1ee   : > { %v916_v1 = vadd.f32 %v915_v63, %v914_v58  ;;  %v520_v13 = vadd.f32 %v519_v6, %v471_v4  ;;  %v537_v19 = vsel %vm1168_vm7, %v531_v11, 0.0  ;;  %v1002_v58 = vld [vmem:[%s1258_s3] ss:$12 sps:$4 sm:$0xff]  }
 0x1ef   : > { %v917_v2 = vpop.f32.mrf.mxu0  ;;  %v888_v23 = vpack.c.bf16 %v537_v19, %v537_v19 }
 0x1f0   : > { %v476_v5 = vadd.f32 %v916_v1, %v389_v50  ;;  %v532_v20 = vmax.f32 %v520_v13, 0.0 }
 0x1f1   : > { %v918_v7 = vpop.f32.mrf.mxu0 }
 0x1f2   : > { %v525_v9 = vadd.f32 %v962_v52, %v476_v5  ;;  %v919_v10 = vadd.f32 %v918_v7, %v917_v2  ;;  %v538_v25 = vsel %vm1168_vm7, %v532_v20, 0.0 }
 0x1f3   : > { %v889_v26 = vpack.c.bf16 %v538_v25, %v538_v25 }
 0x1f4   : > { %v533_v12 = vmax.f32 %v525_v9, 0.0  ;;  %v479_v14 = vadd.f32 %v919_v10, %v394_v46 }
 0x1f6   : > { %v528_v16 = vadd.f32 %v963_v62, %v479_v14  ;;  %v539_v17 = vsel %vm1168_vm7, %v533_v12, 0.0  ;;  %v1009_v62 = vld [vmem:[%s1258_s3 + $0x18] ss:$12 sps:$4 sm:$0xff]  }
 0x1f7   : > { %v890_v18 = vpack.c.bf16 %v539_v17, %v539_v17 }
 0x1f8   : > { %v534_v21 = vmax.f32 %v528_v16, 0.0 }
 0x1f9   : > { %557 = vrot.lane.b32.xlu1 %v890_v18, %s1019_s25 }
 0x1fa   : > { %v540_v22 = vsel %vm1168_vm7, %v534_v21, 0.0 }
 0x1fb   : > { %v891_v24 = vpack.c.bf16 %v540_v22, %v540_v22 }
 0x1fd   : > { %559 = vrot.lane.b32.xlu0 %v891_v24, %s1019_s25  ;;  %553 = vrot.lane.b32.xlu1 %v888_v23, %s1019_s25 }
 0x201   : > { %555 = vrot.lane.b32.xlu0 %v889_v26, %s1019_s25  ;;  %s224_s25 = scalar_lea.vmem %s1260_s5, %s887_s10 }
 0x26b   : > { %v558_v27 = vpop.permute.xlu1 %557 }
 0x26c   : > { %567 = vst.msk [vmem:[#allocation3 + $0x8] sm:$0xf] %vm256_vm2, %v558_v27 }
 0x26f   : > { %v560_v28 = vpop.permute.xlu0 %559  ;;  %v554_v29 = vpop.permute.xlu1 %553 }
 0x270   : > { %568 = vst.msk [vmem:[#allocation3 + $0xc] sm:$0xf] %vm256_vm2, %v560_v28  ;;  %565 = vst.msk [vmem:[#allocation3] sm:$0xf] %vm256_vm2, %v554_v29 }
 0x273   : > { %v556_v30 = vpop.permute.xlu0 %555  ;;  %v571_v31 = vld [vmem:[#allocation3 + $0x8] sm:$0xf] }
 0x274   : > { %566 = vst.msk [vmem:[#allocation3 + $0x4] sm:$0xf] %vm256_vm2, %v556_v30 }
 0x277   : > { %v572_v32 = vld [vmem:[#allocation3 + $0xc] sm:$0xf]  ;;  %v569_v34 = vld [vmem:[#allocation3] sm:$0xf] }
 0x278   : > { %v875_v33 = vcombine.low %v571_v31, %v572_v32 }
 0x27a   : > { %599 = vrot.lane.b32.xlu0 %v875_v33, %s1021_s27  ;;  %623 = vrot.lane.b32.xlu1 %v875_v33, %s1020_s26 }
 0x27b   : > { %v570_v35 = vld [vmem:[#allocation3 + $0x4] sm:$0xf] }
 0x27c   : > { %v874_v36 = vcombine.low %v569_v34, %v570_v35 }
 0x27e   : > { %597 = vrot.lane.b32.xlu0 %v874_v36, %s1021_s27  ;;  %621 = vrot.lane.b32.xlu1 %v874_v36, %s1020_s26 }
 0x282   : > { %593 = vrot.lane.b32.xlu0 %v875_v33, %s1022_s28  ;;  %617 = vrot.lane.b32.xlu1 %v875_v33, %s1023_s29 }
 0x286   : > { %591 = vrot.lane.b32.xlu0 %v874_v36, %s1022_s28  ;;  %615 = vrot.lane.b32.xlu1 %v874_v36, %s1023_s29 }
 0x28a   : > { %587 = vrot.lane.b32.xlu0 %v875_v33, %s1024_s30  ;;  %611 = vrot.lane.b32.xlu1 %v875_v33, %s1025_s6 }
 0x28e   : > { %585 = vrot.lane.b32.xlu0 %v874_v36, %s1024_s30  ;;  %609 = vrot.lane.b32.xlu1 %v874_v36, %s1025_s6 }
 0x292   : > { %603 = vrot.lane.b32.xlu0 %v874_v36, %s1026_s11  ;;  %605 = vrot.lane.b32.xlu1 %v875_v33, %s1026_s11 }
 0x296   : > { %627 = vrot.lane.b32.xlu0 %v874_v36, %s1027_s12  ;;  %629 = vrot.lane.b32.xlu1 %v875_v33, %s1027_s12 }
 0x29a   : > { %640 = vperm.xlu0 %992, %v309_v39   ;;  %635 = vperm.xlu1 %993, %v308_v40  }
 0x29e   : > { %650 = vperm.xlu0 %992, %v311_v41   ;;  %645 = vperm.xlu1 %993, %v310_v42  }
 0x2ec   : > { %v600_v43 = vpop.permute.xlu0 %599  ;;  %v624_v44 = vpop.permute.xlu1 %623 }
 0x2ed   : > { %924 = vmatprep.subr.bf16.mxu1 %v624_v44 }
 0x2ee   : > { %925 = vmatpush3.bf16.msra.mxu1 %v600_v43 }
 0x2f0   : > { %v598_v45 = vpop.permute.xlu0 %597  ;;  %v622_v46 = vpop.permute.xlu1 %621 }
 0x2f1   : > { %926 = vmatprep.subr.bf16.mxu1 %v622_v46 }
 0x2f2   : > { %927 = vmatpush3.bf16.msra.mxu1 %v598_v45 }
 0x2f4   : > { %v594_v47 = vpop.permute.xlu0 %593  ;;  %v618_v48 = vpop.permute.xlu1 %617 }
 0x2f5   : > { %928 = vmatprep.subr.bf16.mxu1 %v618_v48 }
 0x2f6   : > { %929 = vmatpush3.bf16.msra.mxu1 %v594_v47 }
 0x2f8   : > { %v592_v49 = vpop.permute.xlu0 %591  ;;  %v616_v50 = vpop.permute.xlu1 %615 }
 0x2f9   : > { %930 = vmatprep.subr.bf16.mxu1 %v616_v50 }
 0x2fa   : > { %931 = vmatpush3.bf16.msra.mxu1 %v592_v49 }
 0x2fc   : > { %v588_v51 = vpop.permute.xlu0 %587  ;;  %v612_v52 = vpop.permute.xlu1 %611 }
 0x2fd   : > { %932 = vmatprep.subr.bf16.mxu1 %v612_v52 }
 0x2fe   : > { %933 = vmatpush3.bf16.msra.mxu1 %v588_v51 }
 0x300   : > { %v586_v53 = vpop.permute.xlu0 %585  ;;  %v610_v54 = vpop.permute.xlu1 %609 }
 0x301   : > { %934 = vmatprep.subr.bf16.mxu1 %v610_v54 }
 0x302   : > { %935 = vmatpush3.bf16.msra.mxu1 %v586_v53 }
 0x304   : > { %v604_v55 = vpop.permute.xlu0 %603  ;;  %v606_v56 = vpop.permute.xlu1 %605 }
 0x305   : > { %936 = vmatprep.subr.bf16.mxu1 %v606_v56 }
 0x306   : > { %937 = vmatpush3.bf16.msra.mxu1 %v875_v33 }
 0x307   : > { %938 = vmatprep.subr.bf16.mxu1 %v604_v55 }
 0x308   : > { %v630_v57 = vpop.permute.xlu1 %629  ;;  %v628_v59 = vpop.permute.xlu0 %627 }
 0x309   : > { %964 = vmatprep.subr.bf16.mxu0 %v630_v57 }
 0x30a   : > { %939 = vmatpush3.bf16.msra.mxu1 %v874_v36  ;;  %965 = vmatpush3.bf16.msra.mxu0 %v630_v57 }
 0x30b   : > { %966 = vmatprep.subr.bf16.mxu0 %v628_v59 }
 0x30d   : > { %722 = vmatmul.mubr.bf16.vlgmr.msra.gmra.mxu1 %v1002_v58 }
 0x30e   : > { %967 = vmatpush3.bf16.msra.mxu0 %v628_v59  ;;  %729 = vmatprep.mubr.bf16.mxu1 %v1007_v60 }
 0x311   : > { %969 = vmatmul.mubr.msk.bf16.vlgmr.msra.gmra.mxu0 %vm426_vm3, %v1006_v61 }
 0x315   : > { %730 = vmatmul.mubr.bf16.gmra.mxu1 %v1009_v62  ;;  %v636_v1 = vpop.permute.xlu1 %635  ;;  %v641_v8 = vpop.permute.xlu0 %640 }
 0x319   : > { %v646_v20 = vpop.permute.xlu1 %645  ;;  %v651_v27 = vpop.permute.xlu0 %650 }
 0x3cd   : > { %v940_v63 = vpop.f32.mrf.mxu1 }
 0x3cf   : > { %v941_v0 = vpop.f32.mrf.mxu1 }
 0x3d0   : > { %v942_v2 = vadd.f32 %v941_v0, %v940_v63 }
 0x3d1   : > { %v943_v3 = vpop.f32.mrf.mxu1  ;;  %v970_v4 = vpop.f32.mrf.mxu0 }
 0x3d2   : > { %v724_v5 = vadd.f32 %v942_v2, %v636_v1 }
 0x3d3   : > { %v944_v6 = vpop.f32.mrf.mxu1  ;;  %v772_v7 = vpop.f32.mrf.mxu0 }
 0x3d4   : > { %v945_v9 = vadd.f32 %v944_v6, %v943_v3  ;;  %v773_v10 = vadd.f32 %v772_v7, %v724_v5 }
 0x3d5   : > { %v946_v11 = vpop.f32.mrf.mxu1  ;;  %v971_v12 = vpop.f32.mrf.mxu0 }
 0x3d6   : > { %v787_v13 = vsel %vm1168_vm7, %v773_v10, 0.0  ;;  %v727_v14 = vadd.f32 %v945_v9, %v641_v8 }
 0x3d7   : > { %792 = vst.msk [vmem:[%s224_s25] sm:$0xff] %vm791_vm8, %v787_v13  ;;  %v947_v16 = vpop.f32.mrf.mxu1  ;;  %v775_v17 = vpop.f32.mrf.mxu0 }
 0x3d8   : > { %v948_v18 = vadd.f32 %v947_v16, %v946_v11  ;;  %v776_v19 = vadd.f32 %v775_v17, %v727_v14 }
 0x3d9   : > { %v949_v21 = vpop.f32.mrf.mxu1 }
 0x3da   : > { %v732_v22 = vadd.f32 %v948_v18, %v646_v20  ;;  %v788_v23 = vsel %vm1168_vm7, %v776_v19, 0.0 }
 0x3db   : > { %793 = vst.msk [vmem:[%s224_s25 + $0x8] sm:$0xff] %vm791_vm8, %v788_v23  ;;  %v950_v24 = vpop.f32.mrf.mxu1 }
 0x3dc   : > { %v781_v25 = vadd.f32 %v970_v4, %v732_v22  ;;  %v951_v26 = vadd.f32 %v950_v24, %v949_v21 }
 0x3de   : > { %v789_v28 = vsel %vm1168_vm7, %v781_v25, 0.0  ;;  %v735_v29 = vadd.f32 %v951_v26, %v651_v27 }
 0x3df   : > { %794 = vst.msk [vmem:[%s224_s25 + $0x10] sm:$0xff] %vm791_vm8, %v789_v28 }
 0x3e0   : > { %v784_v30 = vadd.f32 %v971_v12, %v735_v29 }
 0x3e2   : > { %v790_v31 = vsel %vm1168_vm7, %v784_v30, 0.0 }
 0x3e3   : > { %795 = vst.msk [vmem:[%s224_s25 + $0x18] sm:$0xff] %vm791_vm8, %v790_v31 }
 0x3e4 PF: > { %s15_s18 = sadd.s32 1, %s1016_s18  }
 0x3e5   : > { %p12_p4 = scmp.ge.s32.totalorder %s15_s18, 4  }
 0x3e7   :  { %14 = sbr.rel (!%p12_p4) target bundleno = 1 (0x1), region = 70 }

</bundles_post_ra>
